<compile_context>
chip_gen: v6e
topology: v6e:2x2x1
jax: 0.10.0
libtpu: 0.0.40
codegen_flags: <defaults>
</compile_context>

<pallas_src>
import functools

import jax
import jax.numpy as jnp
import numpy as np
from jax import lax
from jax.experimental import pallas as pl
from jax.experimental.pallas import tpu as pltpu


# ---------------------------------------------------------------------------
# pltpu.roll capability / direction probe (run once, eagerly, outside any jit)
# ---------------------------------------------------------------------------

def _roll_probe_kernel(x_ref, o_ref):
    o_ref[...] = pltpu.roll(x_ref[...], 1, axis=1)


@functools.lru_cache(maxsize=None)
def _pltpu_roll_sign():
    """+1 if pltpu.roll matches jnp.roll, -1 if reversed, 0 -> use jnp.roll."""
    try:
        n = 256
        x = jnp.tile(jnp.arange(n, dtype=jnp.float32)[None, :], (4, 1))
        out = pl.pallas_call(
            _roll_probe_kernel,
            out_shape=jax.ShapeDtypeStruct((4, n), jnp.float32),
        )(x)
        row = np.asarray(jax.device_get(out))[0]
        if row[0] == n - 1 and row[1] == 0:
            return 1
        if row[0] == 1 and row[2] == 3:
            return -1
    except Exception:
        pass
    return 0


def _roll_lanes(x, shift):
    """Circular shift along the last (lane) axis, jnp.roll semantics."""
    n = x.shape[-1]
    shift = shift % n
    if shift == 0:
        return x
    if n % 128 == 0:
        sign = _pltpu_roll_sign()
        if sign == 1:
            return pltpu.roll(x, shift, axis=x.ndim - 1)
        if sign == -1:
            return pltpu.roll(x, n - shift, axis=x.ndim - 1)
    return jnp.roll(x, shift, axis=-1)


# ---------------------------------------------------------------------------
# In-kernel building blocks (flat NCHW values: (C, H*W), lanes = H*W)
# ---------------------------------------------------------------------------

def _elu(v):
    # ELU(alpha=1); exp argument clamped at 0 so the positive branch never overflows.
    return jnp.where(v > 0.0, v, jnp.exp(jnp.minimum(v, 0.0)) - 1.0)


def _im2col(x, mask, width):
    """9-tap im2col of a flat (Cin, H*W) image -> (9*Cin, H*W).

    Each tap is a cyclic lane shift of the flat image; the precomputed 0/1 tap
    masks implement the zero padding (and kill elements that wrap across
    row/image boundaries).
    """
    cols = []
    tap = 0
    for dy in (-1, 0, 1):
        for dx in (-1, 0, 1):
            off = dy * width + dx
            shifted = x if off == 0 else _roll_lanes(x, -off)
            cols.append(shifted * mask[tap:tap + 1, :])
            tap += 1
    return jnp.concatenate(cols, axis=0)


def _mm(a, b):
    return jnp.dot(a, b, preferred_element_type=jnp.float32)


def _upconv2x2(x, wstack_ref, u_ref):
    """ConvTranspose2d(kernel=2, stride=2): one fused contribution dot
    with the host-stacked (4*Cout, Cin) weight, then 4 scatter dots."""
    wstack = wstack_ref[...]                     # (4*Cout, Cin)
    cout = wstack.shape[0] // 4
    contrib = _mm(wstack, x)                     # (4*Cout, hi*wi)
    out = None
    for p in range(4):                           # p = dy*2 + dx
        scat = _mm(contrib[p * cout:(p + 1) * cout, :], u_ref[p])
        out = scat if out is None else out + scat
    return out


def _prune(x, wlh_ref, thresh):
    """PruningLayer: sigmoid(1x1 conv) >= alpha  <=>  logits >= logit(alpha).

    The 1x1 conv has K=Cin<=8 and M=1, so it is done as a broadcast multiply +
    cross-sublane reduce instead of an MXU push/pop; the sigmoid is removed by
    thresholding in logit space (exactly equivalent, sigmoid is monotonic).
    """
    z = jnp.sum(x * wlh_ref[...], axis=0, keepdims=True)   # (1, H*W) logits
    return x * (z >= thresh).astype(x.dtype)


# ---------------------------------------------------------------------------
# The fused whole-Net kernel (one image per grid step, everything in VMEM)
# ---------------------------------------------------------------------------

def _net_kernel(x_ref,
                m0_ref, m1_ref, m2_ref, s0_ref, s1_ref, u21_ref, u10_ref,
                we1c_ref, we1d_ref, we2c_ref, we2d_ref, wbrc_ref, wbru_ref,
                wd2cu_ref, wd2cs_ref, wd2lh_ref, wd2u_ref,
                wd1cu_ref, wd1cs_ref, wd1lh_ref, wd1f_ref,
                o_ref, *, w0, w1, w2, thresh):
    x = x_ref[...]                                          # (C, H*W)
    m0 = m0_ref[...]
    m1 = m1_ref[...]
    m2 = m2_ref[...]

    # enc1 (EncoderBox @ HxW): ConvBlock then DownConv (stride-2 sample via S0).
    skip1 = _elu(_mm(we1c_ref[...], _im2col(x, m0, w0)))
    skip1_p = _im2col(skip1, m0, w0)            # cached full-res patches (reused in dec1)
    down1 = _elu(_mm(_mm(we1d_ref[...], skip1_p), s0_ref[...]))

    # enc2 (EncoderBox @ H/2)
    skip2 = _elu(_mm(we2c_ref[...], _im2col(down1, m1, w1)))
    skip2_p = _im2col(skip2, m1, w1)            # cached half-res patches (reused in dec2)
    down2 = _elu(_mm(_mm(we2d_ref[...], skip2_p), s1_ref[...]))

    # bridge (ConvBlock @ H/4, then UpConv to H/2)
    b = _elu(_mm(wbrc_ref[...], _im2col(down2, m2, w2)))
    up_b = _elu(_upconv2x2(b, wbru_ref, u21_ref))

    # dec2 (DecoderBox @ H/2 -> H): [cat, ConvBlock] done as split-weight dots
    # on the up patches + cached skip2 patches, then pruning, UpConv.
    y2 = _elu(_mm(wd2cu_ref[...], _im2col(up_b, m1, w1)) + _mm(wd2cs_ref[...], skip2_p))
    y2 = _prune(y2, wd2lh_ref, thresh)
    up2 = _elu(_upconv2x2(y2, wd2u_ref, u10_ref))

    # dec1 (FinalDecoderBox @ H): same split-weight trick, pruning, FinalConv (no ELU).
    y1 = _elu(_mm(wd1cu_ref[...], _im2col(up2, m0, w0)) + _mm(wd1cs_ref[...], skip1_p))
    y1 = _prune(y1, wd1lh_ref, thresh)
    o_ref[...] = _mm(wd1f_ref[...], _im2col(y1, m0, w0)).astype(o_ref.dtype)


# ---------------------------------------------------------------------------
# Host-side constant tables (lru_cache'd) and weight packing (baked by jit)
# ---------------------------------------------------------------------------

@functools.lru_cache(maxsize=None)
def _tap_masks(h, w):
    """(9, h*w) 0/1 masks; mask[t, y*w+x] = 1 iff tap (dy, dx) stays in bounds."""
    yy, xx = np.mgrid[0:h, 0:w]
    rows = []
    for dy in (-1, 0, 1):
        for dx in (-1, 0, 1):
            ok = (yy + dy >= 0) & (yy + dy < h) & (xx + dx >= 0) & (xx + dx < w)
            rows.append(ok.reshape(-1))
    return np.stack(rows).astype(np.float32)


@functools.lru_cache(maxsize=None)
def _down_select(h, w):
    """(h*w, (h//2)*(w//2)) 0/1 matrix sampling even rows/cols (stride-2 pad-1 conv)."""
    ho, wo = h // 2, w // 2
    s = np.zeros((h * w, ho * wo), np.float32)
    for yo in range(ho):
        for xo in range(wo):
            s[(2 * yo) * w + 2 * xo, yo * wo + xo] = 1.0
    return s


@functools.lru_cache(maxsize=None)
def _up_scatter(hi, wi):
    """(4, hi*wi, 4*hi*wi) 0/1 scatter matrices for ConvTranspose2d(k=2, s=2)."""
    ho, wo = 2 * hi, 2 * wi
    u = np.zeros((4, hi * wi, ho * wo), np.float32)
    for dy in range(2):
        for dx in range(2):
            p = dy * 2 + dx
            for yi in range(hi):
                for xi in range(wi):
                    u[p, yi * wi + xi, (2 * yi + dy) * wo + (2 * xi + dx)] = 1.0
    return u


def _w3x3_to_2d(w):
    """(Cout, Cin, 3, 3) -> (Cout, 9*Cin); column = (ky*3 + kx)*Cin + ci."""
    co, ci, kh, kw = w.shape
    return jnp.transpose(w, (0, 2, 3, 1)).reshape(co, kh * kw * ci)


def _w3x3_split_cols(w, c_first):
    """Split a (Cout, C1+C2, 3, 3) weight into packed (Cout, 9*C1) / (Cout, 9*C2)."""
    return _w3x3_to_2d(w[:, :c_first]), _w3x3_to_2d(w[:, c_first:])


def _wupconv_stacked(wt):
    """(Cin, Cout, 2, 2) ConvTranspose2d weight -> (4*Cout, Cin); row block p=dy*2+dx."""
    blocks = [jnp.transpose(wt[:, :, dy, dx], (1, 0))
              for dy in range(2) for dx in range(2)]
    return jnp.concatenate(blocks, axis=0)


# ---------------------------------------------------------------------------
# Wrapper: Net.forward (NCHW in, NCHW out)
# ---------------------------------------------------------------------------

def _net_forward_impl(x, params, *, alpha=0.5):
    x = jnp.asarray(x, jnp.float32)
    n, c, h, w = x.shape
    assert h % 4 == 0 and w % 4 == 0, "spatial dims must be divisible by 4"
    h1, w1, h2, w2 = h // 2, w // 2, h // 4, w // 4
    hw0 = h * w
    oc = params["d1f"].shape[0]

    if not (0.0 < alpha < 1.0):
        raise ValueError("alpha must be in (0, 1)")
    thresh = float(np.log(alpha) - np.log1p(-alpha))   # logit(alpha)

    f32 = lambda a: jnp.asarray(a, jnp.float32)
    d2c_up, d2c_sk = _w3x3_split_cols(f32(params["d2c"]), c)
    d1c_up, d1c_sk = _w3x3_split_cols(f32(params["d1c"]), c)
    aux = [
        f32(_tap_masks(h, w)), f32(_tap_masks(h1, w1)), f32(_tap_masks(h2, w2)),
        f32(_down_select(h, w)), f32(_down_select(h1, w1)),
        f32(_up_scatter(h2, w2)), f32(_up_scatter(h1, w1)),
        _w3x3_to_2d(f32(params["e1c"])), _w3x3_to_2d(f32(params["e1d"])),
        _w3x3_to_2d(f32(params["e2c"])), _w3x3_to_2d(f32(params["e2d"])),
        _w3x3_to_2d(f32(params["brc"])), _wupconv_stacked(f32(params["bru"])),
        d2c_up, d2c_sk, f32(params["d2lh"]).reshape(c, 1),
        _wupconv_stacked(f32(params["d2u"])),
        d1c_up, d1c_sk, f32(params["d1lh"]).reshape(c, 1),
        _w3x3_to_2d(f32(params["d1f"])),
    ]

    def replicated(a):
        nd = a.ndim
        return pl.BlockSpec(tuple(a.shape), lambda i, _nd=nd: (0,) * _nd)

    in_specs = [pl.BlockSpec((None, c, hw0), lambda i: (i, 0, 0))]
    in_specs += [replicated(a) for a in aux]

    kernel = functools.partial(_net_kernel, w0=w, w1=w1, w2=w2, thresh=thresh)
    out_flat = pl.pallas_call(
        kernel,
        out_shape=jax.ShapeDtypeStruct((n, oc, hw0), jnp.float32),
        grid=(n,),
        in_specs=in_specs,
        out_specs=pl.BlockSpec((None, oc, hw0), lambda i: (i, 0, 0)),
        compiler_params=pltpu.CompilerParams(dimension_semantics=("parallel",)),
    )(x.reshape(n, c, hw0), *aux)

    # Row-major (N, OC, H*W) and (N, OC, H, W) share the same layout -> free.
    return out_flat.reshape(n, oc, h, w)


_net_forward_jit = jax.jit(_net_forward_impl, static_argnames=("alpha",))


def net_forward(x, params, *, alpha=0.5):
    _pltpu_roll_sign()          # prime the roll probe eagerly (outside any trace)
    return _net_forward_jit(x, params, alpha=alpha)


# ---------------------------------------------------------------------------
# Pure-JAX reference (PyTorch Conv2d / ConvTranspose2d / F.elu semantics)
# ---------------------------------------------------------------------------

def _reference_net(x, p, *, alpha=0.5):
    hi = lax.Precision.HIGHEST

    def conv3(v, wt, stride=1):
        return lax.conv_general_dilated(
            v, wt, (stride, stride), ((1, 1), (1, 1)),
            dimension_numbers=("NCHW", "OIHW", "NCHW"), precision=hi)

    def conv_block(v, wt):
        return _elu(conv3(v, wt))

    def upconv(v, wt):
        n, _, hh, ww = v.shape
        co = wt.shape[1]
        out = jnp.zeros((n, co, 2 * hh, 2 * ww), v.dtype)
        for dy in range(2):
            for dx in range(2):
                contrib = jnp.einsum("nihw,io->nohw", v, wt[:, :, dy, dx],
                                     precision=hi)
                out = out.at[:, :, dy::2, dx::2].set(contrib)
        return _elu(out)

    def prune(v, wlh):
        z = lax.conv_general_dilated(v, wlh, (1, 1), ((0, 0), (0, 0)),
                                     dimension_numbers=("NCHW", "OIHW", "NCHW"),
                                     precision=hi)
        lh = 1.0 / (1.0 + jnp.exp(-z))
        return v * (lh >= alpha).astype(v.dtype)

    skip1 = conv_block(x, p["e1c"])
    xd = _elu(conv3(skip1, p["e1d"], stride=2))
    skip2 = conv_block(xd, p["e2c"])
    xd = _elu(conv3(skip2, p["e2d"], stride=2))
    xb = upconv(conv_block(xd, p["brc"]), p["bru"])
    y = conv_block(jnp.concatenate([xb, skip2], axis=1), p["d2c"])
    y = upconv(prune(y, p["d2lh"]), p["d2u"])
    y = conv_block(jnp.concatenate([y, skip1], axis=1), p["d1c"])
    y = prune(y, p["d1lh"])
    return conv3(y, p["d1f"])


if __name__ == "__main__":
    # Net(in_channels=4, out_channels=3), batch=2, spatial 16x16.
    N, C, OC, H, W = 2, 4, 3, 16, 16
    keys = jax.random.split(jax.random.PRNGKey(0), 16)

    def rand(k, shape, scale=0.1):
        return scale * jax.random.normal(k, shape, dtype=jnp.float32)

    params = {
        "e1c": rand(keys[0], (C, C, 3, 3)),   "e1d": rand(keys[1], (C, C, 3, 3)),
        "e2c": rand(keys[2], (C, C, 3, 3)),   "e2d": rand(keys[3], (C, C, 3, 3)),
        "brc": rand(keys[4], (C, C, 3, 3)),   "bru": rand(keys[5], (C, C, 2, 2)),
        "d2c": rand(keys[6], (C, 2 * C, 3, 3)),
        "d2lh": rand(keys[7], (1, C, 1, 1), scale=1.0),
        "d2u": rand(keys[8], (C, C, 2, 2)),
        "d1c": rand(keys[9], (C, 2 * C, 3, 3)),
        "d1lh": rand(keys[10], (1, C, 1, 1), scale=1.0),
        "d1f": rand(keys[11], (OC, C, 3, 3)),
    }
    x = jax.random.normal(keys[12], (N, C, H, W), dtype=jnp.float32)

    out = jax.block_until_ready(net_forward(x, params, alpha=0.5))
    assert out.shape == (N, OC, H, W), out.shape

    ref = _reference_net(x, params, alpha=0.5)
    max_err = float(jnp.max(jnp.abs(out - ref)))
    assert jnp.allclose(out, ref, rtol=2e-3, atol=2e-3), f"max abs err = {max_err}"
    print("KERNEL_OK")
</pallas_src>

<mosaic_0001>
module attributes {stable_mosaic.version = 11 : i64} {
  func.func @_roll_probe_kernel(%arg0: memref<4x256xf32, #tpu.memory_space<vmem>>, %arg1: memref<4x256xf32, #tpu.memory_space<vmem>>) attributes {dimension_semantics = [], scalar_prefetch = 0 : i64, scratch_operands = 0 : i64, tpu.core_type = #tpu.core_type<tc>} {
    %c0 = arith.constant 0 : index
    %c0_0 = arith.constant 0 : index
    %0 = vector.load %arg0[%c0, %c0_0] : memref<4x256xf32, #tpu.memory_space<vmem>>, vector<4x256xf32>
    %c1_i32 = arith.constant 1 : i32
    %1 = tpu.dynamic_rotate %0 by %c1_i32 dim 1 : vector<4x256xf32>, i32 -> vector<4x256xf32>
    %c0_1 = arith.constant 0 : index
    %c0_2 = arith.constant 0 : index
    %2 = vector.load %arg1[%c0_1, %c0_2] : memref<4x256xf32, #tpu.memory_space<vmem>>, vector<4x256xf32>
    tpu.vector_store %arg1[%c0_1, %c0_2], %1 {strides = array<i32>} : memref<4x256xf32, #tpu.memory_space<vmem>>, vector<4x256xf32>,
    return
  }
}

module attributes {stable_mosaic.version = 11 : i64} {
  func.func @_net_kernel(%arg0: i32, %arg1: memref<1x4x256xf32, #tpu.memory_space<vmem>>, %arg2: memref<9x256xf32, #tpu.memory_space<vmem>>, %arg3: memref<9x64xf32, #tpu.memory_space<vmem>>, %arg4: memref<9x16xf32, #tpu.memory_space<vmem>>, %arg5: memref<256x64xf32, #tpu.memory_space<vmem>>, %arg6: memref<64x16xf32, #tpu.memory_space<vmem>>, %arg7: memref<4x16x64xf32, #tpu.memory_space<vmem>>, %arg8: memref<4x64x256xf32, #tpu.memory_space<vmem>>, %arg9: memref<4x36xf32, #tpu.memory_space<vmem>>, %arg10: memref<4x36xf32, #tpu.memory_space<vmem>>, %arg11: memref<4x36xf32, #tpu.memory_space<vmem>>, %arg12: memref<4x36xf32, #tpu.memory_space<vmem>>, %arg13: memref<4x36xf32, #tpu.memory_space<vmem>>, %arg14: memref<16x4xf32, #tpu.memory_space<vmem>>, %arg15: memref<4x36xf32, #tpu.memory_space<vmem>>, %arg16: memref<4x36xf32, #tpu.memory_space<vmem>>, %arg17: memref<4x1xf32, #tpu.memory_space<vmem>>, %arg18: memref<16x4xf32, #tpu.memory_space<vmem>>, %arg19: memref<4x36xf32, #tpu.memory_space<vmem>>, %arg20: memref<4x36xf32, #tpu.memory_space<vmem>>, %arg21: memref<4x1xf32, #tpu.memory_space<vmem>>, %arg22: memref<3x36xf32, #tpu.memory_space<vmem>>, %arg23: memref<1x3x256xf32, #tpu.memory_space<vmem>>) attributes {dimension_semantics = [#tpu.dimension_semantics<parallel>], iteration_bounds = array<i64: 2>, scalar_prefetch = 0 : i64, scratch_operands = 0 : i64, tpu.core_type = #tpu.core_type<tc>, window_params = [{transform_indices = @transform_0, window_bounds = array<i64: 1, 4, 256>}, {pipeline_mode = #tpu.pipeline_mode<synchronous>, transform_indices = @transform_1, window_bounds = array<i64: 9, 256>}, {pipeline_mode = #tpu.pipeline_mode<synchronous>, transform_indices = @transform_2, window_bounds = array<i64: 9, 64>}, {pipeline_mode = #tpu.pipeline_mode<synchronous>, transform_indices = @transform_3, window_bounds = array<i64: 9, 16>}, {pipeline_mode = #tpu.pipeline_mode<synchronous>, transform_indices = @transform_4, window_bounds = array<i64: 256, 64>}, {pipeline_mode = #tpu.pipeline_mode<synchronous>, transform_indices = @transform_5, window_bounds = array<i64: 64, 16>}, {pipeline_mode = #tpu.pipeline_mode<synchronous>, transform_indices = @transform_6, window_bounds = array<i64: 4, 16, 64>}, {pipeline_mode = #tpu.pipeline_mode<synchronous>, transform_indices = @transform_7, window_bounds = array<i64: 4, 64, 256>}, {pipeline_mode = #tpu.pipeline_mode<synchronous>, transform_indices = @transform_8, window_bounds = array<i64: 4, 36>}, {pipeline_mode = #tpu.pipeline_mode<synchronous>, transform_indices = @transform_9, window_bounds = array<i64: 4, 36>}, {pipeline_mode = #tpu.pipeline_mode<synchronous>, transform_indices = @transform_10, window_bounds = array<i64: 4, 36>}, {pipeline_mode = #tpu.pipeline_mode<synchronous>, transform_indices = @transform_11, window_bounds = array<i64: 4, 36>}, {pipeline_mode = #tpu.pipeline_mode<synchronous>, transform_indices = @transform_12, window_bounds = array<i64: 4, 36>}, {pipeline_mode = #tpu.pipeline_mode<synchronous>, transform_indices = @transform_13, window_bounds = array<i64: 16, 4>}, {pipeline_mode = #tpu.pipeline_mode<synchronous>, transform_indices = @transform_14, window_bounds = array<i64: 4, 36>}, {pipeline_mode = #tpu.pipeline_mode<synchronous>, transform_indices = @transform_15, window_bounds = array<i64: 4, 36>}, {pipeline_mode = #tpu.pipeline_mode<synchronous>, transform_indices = @transform_16, window_bounds = array<i64: 4, 1>}, {pipeline_mode = #tpu.pipeline_mode<synchronous>, transform_indices = @transform_17, window_bounds = array<i64: 16, 4>}, {pipeline_mode = #tpu.pipeline_mode<synchronous>, transform_indices = @transform_18, window_bounds = array<i64: 4, 36>}, {pipeline_mode = #tpu.pipeline_mode<synchronous>, transform_indices = @transform_19, window_bounds = array<i64: 4, 36>}, {pipeline_mode = #tpu.pipeline_mode<synchronous>, transform_indices = @transform_20, window_bounds = array<i64: 4, 1>}, {pipeline_mode = #tpu.pipeline_mode<synchronous>, transform_indices = @transform_21, window_bounds = array<i64: 3, 36>}, {transform_indices = @transform_22, window_bounds = array<i64: 1, 3, 256>}]} {
    %c0 = arith.constant 0 : index
    %c0_0 = arith.constant 0 : index
    %c0_1 = arith.constant 0 : index
    %0 = vector.load %arg1[%c0, %c0_0, %c0_1] : memref<1x4x256xf32, #tpu.memory_space<vmem>>, vector<1x4x256xf32>
    %1 = vector.shape_cast %0 : vector<1x4x256xf32> to vector<4x256xf32>
    %c0_2 = arith.constant 0 : index
    %c0_3 = arith.constant 0 : index
    %2 = vector.load %arg2[%c0_2, %c0_3] : memref<9x256xf32, #tpu.memory_space<vmem>>, vector<9x256xf32>
    %c0_4 = arith.constant 0 : index
    %c0_5 = arith.constant 0 : index
    %3 = vector.load %arg3[%c0_4, %c0_5] : memref<9x64xf32, #tpu.memory_space<vmem>>, vector<9x64xf32>
    %c0_6 = arith.constant 0 : index
    %c0_7 = arith.constant 0 : index
    %4 = vector.load %arg4[%c0_6, %c0_7] : memref<9x16xf32, #tpu.memory_space<vmem>>, vector<9x16xf32>
    %c0_8 = arith.constant 0 : index
    %c0_9 = arith.constant 0 : index
    %5 = vector.load %arg9[%c0_8, %c0_9] : memref<4x36xf32, #tpu.memory_space<vmem>>, vector<4x36xf32>
    %6 = vector.extract_strided_slice %1 {offsets = [0, 239], sizes = [4, 17], strides = [1, 1]} : vector<4x256xf32> to vector<4x17xf32>
    %7 = vector.extract_strided_slice %1 {offsets = [0, 0], sizes = [4, 239], strides = [1, 1]} : vector<4x256xf32> to vector<4x239xf32>
    %8 = tpu.concatenate %6, %7 in 1 : vector<4x17xf32>, vector<4x239xf32> -> vector<4x256xf32>
    %9 = vector.extract_strided_slice %2 {offsets = [0, 0], sizes = [1, 256], strides = [1, 1]} : vector<9x256xf32> to vector<1x256xf32>
    %10 = vector.broadcast %9 : vector<1x256xf32> to vector<4x256xf32>
    %11 = arith.mulf %8, %10 : vector<4x256xf32>
    %12 = vector.extract_strided_slice %1 {offsets = [0, 240], sizes = [4, 16], strides = [1, 1]} : vector<4x256xf32> to vector<4x16xf32>
    %13 = vector.extract_strided_slice %1 {offsets = [0, 0], sizes = [4, 240], strides = [1, 1]} : vector<4x256xf32> to vector<4x240xf32>
    %14 = tpu.concatenate %12, %13 in 1 : vector<4x16xf32>, vector<4x240xf32> -> vector<4x256xf32>
    %15 = vector.extract_strided_slice %2 {offsets = [1, 0], sizes = [1, 256], strides = [1, 1]} : vector<9x256xf32> to vector<1x256xf32>
    %16 = vector.broadcast %15 : vector<1x256xf32> to vector<4x256xf32>
    %17 = arith.mulf %14, %16 : vector<4x256xf32>
    %18 = vector.extract_strided_slice %1 {offsets = [0, 241], sizes = [4, 15], strides = [1, 1]} : vector<4x256xf32> to vector<4x15xf32>
    %19 = vector.extract_strided_slice %1 {offsets = [0, 0], sizes = [4, 241], strides = [1, 1]} : vector<4x256xf32> to vector<4x241xf32>
    %20 = tpu.concatenate %18, %19 in 1 : vector<4x15xf32>, vector<4x241xf32> -> vector<4x256xf32>
    %21 = vector.extract_strided_slice %2 {offsets = [2, 0], sizes = [1, 256], strides = [1, 1]} : vector<9x256xf32> to vector<1x256xf32>
    %22 = vector.broadcast %21 : vector<1x256xf32> to vector<4x256xf32>
    %23 = arith.mulf %20, %22 : vector<4x256xf32>
    %24 = vector.extract_strided_slice %1 {offsets = [0, 255], sizes = [4, 1], strides = [1, 1]} : vector<4x256xf32> to vector<4x1xf32>
    %25 = vector.extract_strided_slice %1 {offsets = [0, 0], sizes = [4, 255], strides = [1, 1]} : vector<4x256xf32> to vector<4x255xf32>
    %26 = tpu.concatenate %24, %25 in 1 : vector<4x1xf32>, vector<4x255xf32> -> vector<4x256xf32>
    %27 = vector.extract_strided_slice %2 {offsets = [3, 0], sizes = [1, 256], strides = [1, 1]} : vector<9x256xf32> to vector<1x256xf32>
    %28 = vector.broadcast %27 : vector<1x256xf32> to vector<4x256xf32>
    %29 = arith.mulf %26, %28 : vector<4x256xf32>
    %30 = vector.extract_strided_slice %2 {offsets = [4, 0], sizes = [1, 256], strides = [1, 1]} : vector<9x256xf32> to vector<1x256xf32>
    %31 = vector.broadcast %30 : vector<1x256xf32> to vector<4x256xf32>
    %32 = arith.mulf %1, %31 : vector<4x256xf32>
    %33 = vector.extract_strided_slice %1 {offsets = [0, 1], sizes = [4, 255], strides = [1, 1]} : vector<4x256xf32> to vector<4x255xf32>
    %34 = vector.extract_strided_slice %1 {offsets = [0, 0], sizes = [4, 1], strides = [1, 1]} : vector<4x256xf32> to vector<4x1xf32>
    %35 = tpu.concatenate %33, %34 in 1 : vector<4x255xf32>, vector<4x1xf32> -> vector<4x256xf32>
    %36 = vector.extract_strided_slice %2 {offsets = [5, 0], sizes = [1, 256], strides = [1, 1]} : vector<9x256xf32> to vector<1x256xf32>
    %37 = vector.broadcast %36 : vector<1x256xf32> to vector<4x256xf32>
    %38 = arith.mulf %35, %37 : vector<4x256xf32>
    %39 = vector.extract_strided_slice %1 {offsets = [0, 15], sizes = [4, 241], strides = [1, 1]} : vector<4x256xf32> to vector<4x241xf32>
    %40 = vector.extract_strided_slice %1 {offsets = [0, 0], sizes = [4, 15], strides = [1, 1]} : vector<4x256xf32> to vector<4x15xf32>
    %41 = tpu.concatenate %39, %40 in 1 : vector<4x241xf32>, vector<4x15xf32> -> vector<4x256xf32>
    %42 = vector.extract_strided_slice %2 {offsets = [6, 0], sizes = [1, 256], strides = [1, 1]} : vector<9x256xf32> to vector<1x256xf32>
    %43 = vector.broadcast %42 : vector<1x256xf32> to vector<4x256xf32>
    %44 = arith.mulf %41, %43 : vector<4x256xf32>
    %45 = vector.extract_strided_slice %1 {offsets = [0, 16], sizes = [4, 240], strides = [1, 1]} : vector<4x256xf32> to vector<4x240xf32>
    %46 = vector.extract_strided_slice %1 {offsets = [0, 0], sizes = [4, 16], strides = [1, 1]} : vector<4x256xf32> to vector<4x16xf32>
    %47 = tpu.concatenate %45, %46 in 1 : vector<4x240xf32>, vector<4x16xf32> -> vector<4x256xf32>
    %48 = vector.extract_strided_slice %2 {offsets = [7, 0], sizes = [1, 256], strides = [1, 1]} : vector<9x256xf32> to vector<1x256xf32>
    %49 = vector.broadcast %48 : vector<1x256xf32> to vector<4x256xf32>
    %50 = arith.mulf %47, %49 : vector<4x256xf32>
    %51 = vector.extract_strided_slice %1 {offsets = [0, 17], sizes = [4, 239], strides = [1, 1]} : vector<4x256xf32> to vector<4x239xf32>
    %52 = vector.extract_strided_slice %1 {offsets = [0, 0], sizes = [4, 17], strides = [1, 1]} : vector<4x256xf32> to vector<4x17xf32>
    %53 = tpu.concatenate %51, %52 in 1 : vector<4x239xf32>, vector<4x17xf32> -> vector<4x256xf32>
    %54 = vector.extract_strided_slice %2 {offsets = [8, 0], sizes = [1, 256], strides = [1, 1]} : vector<9x256xf32> to vector<1x256xf32>
    %55 = vector.broadcast %54 : vector<1x256xf32> to vector<4x256xf32>
    %56 = arith.mulf %53, %55 : vector<4x256xf32>
    %57 = tpu.concatenate %11, %17, %23, %29, %32, %38, %44, %50, %56 in 0 : vector<4x256xf32>, vector<4x256xf32>, vector<4x256xf32>, vector<4x256xf32>, vector<4x256xf32>, vector<4x256xf32>, vector<4x256xf32>, vector<4x256xf32>, vector<4x256xf32> -> vector<36x256xf32>
    %cst = arith.constant dense<0.000000e+00> : vector<4x256xf32>
    %58 = tpu.matmul %5, %57, %cst {dimension_numbers = #tpu.dot_dimension_numbers<[1], [0], [0], [1], [0, 0, 1, 1], [], []>} : vector<4x36xf32>, vector<36x256xf32>, vector<4x256xf32> -> vector<4x256xf32>
    %cst_10 = arith.constant 0.000000e+00 : f32
    %59 = vector.broadcast %cst_10 : f32 to vector<4x256xf32>
    %60 = arith.cmpf ogt, %58, %59 : vector<4x256xf32>
    %cst_11 = arith.constant 0.000000e+00 : f32
    %61 = vector.broadcast %cst_11 : f32 to vector<4x256xf32>
    %62 = arith.minimumf %58, %61 : vector<4x256xf32>
    %63 = math.exp %62 : vector<4x256xf32>
    %cst_12 = arith.constant 1.000000e+00 : f32
    %64 = vector.broadcast %cst_12 : f32 to vector<4x256xf32>
    %65 = arith.subf %63, %64 : vector<4x256xf32>
    %66 = arith.select %60, %58, %65 : vector<4x256xi1>, vector<4x256xf32>
    %67 = vector.extract_strided_slice %66 {offsets = [0, 239], sizes = [4, 17], strides = [1, 1]} : vector<4x256xf32> to vector<4x17xf32>
    %68 = vector.extract_strided_slice %66 {offsets = [0, 0], sizes = [4, 239], strides = [1, 1]} : vector<4x256xf32> to vector<4x239xf32>
    %69 = tpu.concatenate %67, %68 in 1 : vector<4x17xf32>, vector<4x239xf32> -> vector<4x256xf32>
    %70 = vector.extract_strided_slice %2 {offsets = [0, 0], sizes = [1, 256], strides = [1, 1]} : vector<9x256xf32> to vector<1x256xf32>
    %71 = vector.broadcast %70 : vector<1x256xf32> to vector<4x256xf32>
    %72 = arith.mulf %69, %71 : vector<4x256xf32>
    %73 = vector.extract_strided_slice %66 {offsets = [0, 240], sizes = [4, 16], strides = [1, 1]} : vector<4x256xf32> to vector<4x16xf32>
    %74 = vector.extract_strided_slice %66 {offsets = [0, 0], sizes = [4, 240], strides = [1, 1]} : vector<4x256xf32> to vector<4x240xf32>
    %75 = tpu.concatenate %73, %74 in 1 : vector<4x16xf32>, vector<4x240xf32> -> vector<4x256xf32>
    %76 = vector.extract_strided_slice %2 {offsets = [1, 0], sizes = [1, 256], strides = [1, 1]} : vector<9x256xf32> to vector<1x256xf32>
    %77 = vector.broadcast %76 : vector<1x256xf32> to vector<4x256xf32>
    %78 = arith.mulf %75, %77 : vector<4x256xf32>
    %79 = vector.extract_strided_slice %66 {offsets = [0, 241], sizes = [4, 15], strides = [1, 1]} : vector<4x256xf32> to vector<4x15xf32>
    %80 = vector.extract_strided_slice %66 {offsets = [0, 0], sizes = [4, 241], strides = [1, 1]} : vector<4x256xf32> to vector<4x241xf32>
    %81 = tpu.concatenate %79, %80 in 1 : vector<4x15xf32>, vector<4x241xf32> -> vector<4x256xf32>
    %82 = vector.extract_strided_slice %2 {offsets = [2, 0], sizes = [1, 256], strides = [1, 1]} : vector<9x256xf32> to vector<1x256xf32>
    %83 = vector.broadcast %82 : vector<1x256xf32> to vector<4x256xf32>
    %84 = arith.mulf %81, %83 : vector<4x256xf32>
    %85 = vector.extract_strided_slice %66 {offsets = [0, 255], sizes = [4, 1], strides = [1, 1]} : vector<4x256xf32> to vector<4x1xf32>
    %86 = vector.extract_strided_slice %66 {offsets = [0, 0], sizes = [4, 255], strides = [1, 1]} : vector<4x256xf32> to vector<4x255xf32>
    %87 = tpu.concatenate %85, %86 in 1 : vector<4x1xf32>, vector<4x255xf32> -> vector<4x256xf32>
    %88 = vector.extract_strided_slice %2 {offsets = [3, 0], sizes = [1, 256], strides = [1, 1]} : vector<9x256xf32> to vector<1x256xf32>
    %89 = vector.broadcast %88 : vector<1x256xf32> to vector<4x256xf32>
    %90 = arith.mulf %87, %89 : vector<4x256xf32>
    %91 = vector.extract_strided_slice %2 {offsets = [4, 0], sizes = [1, 256], strides = [1, 1]} : vector<9x256xf32> to vector<1x256xf32>
    %92 = vector.broadcast %91 : vector<1x256xf32> to vector<4x256xf32>
    %93 = arith.mulf %66, %92 : vector<4x256xf32>
    %94 = vector.extract_strided_slice %66 {offsets = [0, 1], sizes = [4, 255], strides = [1, 1]} : vector<4x256xf32> to vector<4x255xf32>
    %95 = vector.extract_strided_slice %66 {offsets = [0, 0], sizes = [4, 1], strides = [1, 1]} : vector<4x256xf32> to vector<4x1xf32>
    %96 = tpu.concatenate %94, %95 in 1 : vector<4x255xf32>, vector<4x1xf32> -> vector<4x256xf32>
    %97 = vector.extract_strided_slice %2 {offsets = [5, 0], sizes = [1, 256], strides = [1, 1]} : vector<9x256xf32> to vector<1x256xf32>
    %98 = vector.broadcast %97 : vector<1x256xf32> to vector<4x256xf32>
    %99 = arith.mulf %96, %98 : vector<4x256xf32>
    %100 = vector.extract_strided_slice %66 {offsets = [0, 15], sizes = [4, 241], strides = [1, 1]} : vector<4x256xf32> to vector<4x241xf32>
    %101 = vector.extract_strided_slice %66 {offsets = [0, 0], sizes = [4, 15], strides = [1, 1]} : vector<4x256xf32> to vector<4x15xf32>
    %102 = tpu.concatenate %100, %101 in 1 : vector<4x241xf32>, vector<4x15xf32> -> vector<4x256xf32>
    %103 = vector.extract_strided_slice %2 {offsets = [6, 0], sizes = [1, 256], strides = [1, 1]} : vector<9x256xf32> to vector<1x256xf32>
    %104 = vector.broadcast %103 : vector<1x256xf32> to vector<4x256xf32>
    %105 = arith.mulf %102, %104 : vector<4x256xf32>
    %106 = vector.extract_strided_slice %66 {offsets = [0, 16], sizes = [4, 240], strides = [1, 1]} : vector<4x256xf32> to vector<4x240xf32>
    %107 = vector.extract_strided_slice %66 {offsets = [0, 0], sizes = [4, 16], strides = [1, 1]} : vector<4x256xf32> to vector<4x16xf32>
    %108 = tpu.concatenate %106, %107 in 1 : vector<4x240xf32>, vector<4x16xf32> -> vector<4x256xf32>
    %109 = vector.extract_strided_slice %2 {offsets = [7, 0], sizes = [1, 256], strides = [1, 1]} : vector<9x256xf32> to vector<1x256xf32>
    %110 = vector.broadcast %109 : vector<1x256xf32> to vector<4x256xf32>
    %111 = arith.mulf %108, %110 : vector<4x256xf32>
    %112 = vector.extract_strided_slice %66 {offsets = [0, 17], sizes = [4, 239], strides = [1, 1]} : vector<4x256xf32> to vector<4x239xf32>
    %113 = vector.extract_strided_slice %66 {offsets = [0, 0], sizes = [4, 17], strides = [1, 1]} : vector<4x256xf32> to vector<4x17xf32>
    %114 = tpu.concatenate %112, %113 in 1 : vector<4x239xf32>, vector<4x17xf32> -> vector<4x256xf32>
    %115 = vector.extract_strided_slice %2 {offsets = [8, 0], sizes = [1, 256], strides = [1, 1]} : vector<9x256xf32> to vector<1x256xf32>
    %116 = vector.broadcast %115 : vector<1x256xf32> to vector<4x256xf32>
    %117 = arith.mulf %114, %116 : vector<4x256xf32>
    %118 = tpu.concatenate %72, %78, %84, %90, %93, %99, %105, %111, %117 in 0 : vector<4x256xf32>, vector<4x256xf32>, vector<4x256xf32>, vector<4x256xf32>, vector<4x256xf32>, vector<4x256xf32>, vector<4x256xf32>, vector<4x256xf32>, vector<4x256xf32> -> vector<36x256xf32>
    %c0_13 = arith.constant 0 : index
    %c0_14 = arith.constant 0 : index
    %119 = vector.load %arg10[%c0_13, %c0_14] : memref<4x36xf32, #tpu.memory_space<vmem>>, vector<4x36xf32>
    %cst_15 = arith.constant dense<0.000000e+00> : vector<4x256xf32>
    %120 = tpu.matmul %119, %118, %cst_15 {dimension_numbers = #tpu.dot_dimension_numbers<[1], [0], [0], [1], [0, 0, 1, 1], [], []>} : vector<4x36xf32>, vector<36x256xf32>, vector<4x256xf32> -> vector<4x256xf32>
    %c0_16 = arith.constant 0 : index
    %c0_17 = arith.constant 0 : index
    %121 = vector.load %arg5[%c0_16, %c0_17] : memref<256x64xf32, #tpu.memory_space<vmem>>, vector<256x64xf32>
    %cst_18 = arith.constant dense<0.000000e+00> : vector<4x64xf32>
    %122 = tpu.matmul %120, %121, %cst_18 {dimension_numbers = #tpu.dot_dimension_numbers<[1], [0], [0], [1], [0, 0, 1, 1], [], []>} : vector<4x256xf32>, vector<256x64xf32>, vector<4x64xf32> -> vector<4x64xf32>
    %cst_19 = arith.constant 0.000000e+00 : f32
    %123 = vector.broadcast %cst_19 : f32 to vector<4x64xf32>
    %124 = arith.cmpf ogt, %122, %123 : vector<4x64xf32>
    %cst_20 = arith.constant 0.000000e+00 : f32
    %125 = vector.broadcast %cst_20 : f32 to vector<4x64xf32>
    %126 = arith.minimumf %122, %125 : vector<4x64xf32>
    %127 = math.exp %126 : vector<4x64xf32>
    %cst_21 = arith.constant 1.000000e+00 : f32
    %128 = vector.broadcast %cst_21 : f32 to vector<4x64xf32>
    %129 = arith.subf %127, %128 : vector<4x64xf32>
    %130 = arith.select %124, %122, %129 : vector<4x64xi1>, vector<4x64xf32>
    %c0_22 = arith.constant 0 : index
    %c0_23 = arith.constant 0 : index
    %131 = vector.load %arg11[%c0_22, %c0_23] : memref<4x36xf32, #tpu.memory_space<vmem>>, vector<4x36xf32>
    %132 = vector.extract_strided_slice %130 {offsets = [0, 55], sizes = [4, 9], strides = [1, 1]} : vector<4x64xf32> to vector<4x9xf32>
    %133 = vector.extract_strided_slice %130 {offsets = [0, 0], sizes = [4, 55], strides = [1, 1]} : vector<4x64xf32> to vector<4x55xf32>
    %134 = tpu.concatenate %132, %133 in 1 : vector<4x9xf32>, vector<4x55xf32> -> vector<4x64xf32>
    %135 = vector.extract_strided_slice %3 {offsets = [0, 0], sizes = [1, 64], strides = [1, 1]} : vector<9x64xf32> to vector<1x64xf32>
    %136 = vector.broadcast %135 : vector<1x64xf32> to vector<4x64xf32>
    %137 = arith.mulf %134, %136 : vector<4x64xf32>
    %138 = vector.extract_strided_slice %130 {offsets = [0, 56], sizes = [4, 8], strides = [1, 1]} : vector<4x64xf32> to vector<4x8xf32>
    %139 = vector.extract_strided_slice %130 {offsets = [0, 0], sizes = [4, 56], strides = [1, 1]} : vector<4x64xf32> to vector<4x56xf32>
    %140 = tpu.concatenate %138, %139 in 1 : vector<4x8xf32>, vector<4x56xf32> -> vector<4x64xf32>
    %141 = vector.extract_strided_slice %3 {offsets = [1, 0], sizes = [1, 64], strides = [1, 1]} : vector<9x64xf32> to vector<1x64xf32>
    %142 = vector.broadcast %141 : vector<1x64xf32> to vector<4x64xf32>
    %143 = arith.mulf %140, %142 : vector<4x64xf32>
    %144 = vector.extract_strided_slice %130 {offsets = [0, 57], sizes = [4, 7], strides = [1, 1]} : vector<4x64xf32> to vector<4x7xf32>
    %145 = vector.extract_strided_slice %130 {offsets = [0, 0], sizes = [4, 57], strides = [1, 1]} : vector<4x64xf32> to vector<4x57xf32>
    %146 = tpu.concatenate %144, %145 in 1 : vector<4x7xf32>, vector<4x57xf32> -> vector<4x64xf32>
    %147 = vector.extract_strided_slice %3 {offsets = [2, 0], sizes = [1, 64], strides = [1, 1]} : vector<9x64xf32> to vector<1x64xf32>
    %148 = vector.broadcast %147 : vector<1x64xf32> to vector<4x64xf32>
    %149 = arith.mulf %146, %148 : vector<4x64xf32>
    %150 = vector.extract_strided_slice %130 {offsets = [0, 63], sizes = [4, 1], strides = [1, 1]} : vector<4x64xf32> to vector<4x1xf32>
    %151 = vector.extract_strided_slice %130 {offsets = [0, 0], sizes = [4, 63], strides = [1, 1]} : vector<4x64xf32> to vector<4x63xf32>
    %152 = tpu.concatenate %150, %151 in 1 : vector<4x1xf32>, vector<4x63xf32> -> vector<4x64xf32>
    %153 = vector.extract_strided_slice %3 {offsets = [3, 0], sizes = [1, 64], strides = [1, 1]} : vector<9x64xf32> to vector<1x64xf32>
    %154 = vector.broadcast %153 : vector<1x64xf32> to vector<4x64xf32>
    %155 = arith.mulf %152, %154 : vector<4x64xf32>
    %156 = vector.extract_strided_slice %3 {offsets = [4, 0], sizes = [1, 64], strides = [1, 1]} : vector<9x64xf32> to vector<1x64xf32>
    %157 = vector.broadcast %156 : vector<1x64xf32> to vector<4x64xf32>
    %158 = arith.mulf %130, %157 : vector<4x64xf32>
    %159 = vector.extract_strided_slice %130 {offsets = [0, 1], sizes = [4, 63], strides = [1, 1]} : vector<4x64xf32> to vector<4x63xf32>
    %160 = vector.extract_strided_slice %130 {offsets = [0, 0], sizes = [4, 1], strides = [1, 1]} : vector<4x64xf32> to vector<4x1xf32>
    %161 = tpu.concatenate %159, %160 in 1 : vector<4x63xf32>, vector<4x1xf32> -> vector<4x64xf32>
    %162 = vector.extract_strided_slice %3 {offsets = [5, 0], sizes = [1, 64], strides = [1, 1]} : vector<9x64xf32> to vector<1x64xf32>
    %163 = vector.broadcast %162 : vector<1x64xf32> to vector<4x64xf32>
    %164 = arith.mulf %161, %163 : vector<4x64xf32>
    %165 = vector.extract_strided_slice %130 {offsets = [0, 7], sizes = [4, 57], strides = [1, 1]} : vector<4x64xf32> to vector<4x57xf32>
    %166 = vector.extract_strided_slice %130 {offsets = [0, 0], sizes = [4, 7], strides = [1, 1]} : vector<4x64xf32> to vector<4x7xf32>
    %167 = tpu.concatenate %165, %166 in 1 : vector<4x57xf32>, vector<4x7xf32> -> vector<4x64xf32>
    %168 = vector.extract_strided_slice %3 {offsets = [6, 0], sizes = [1, 64], strides = [1, 1]} : vector<9x64xf32> to vector<1x64xf32>
    %169 = vector.broadcast %168 : vector<1x64xf32> to vector<4x64xf32>
    %170 = arith.mulf %167, %169 : vector<4x64xf32>
    %171 = vector.extract_strided_slice %130 {offsets = [0, 8], sizes = [4, 56], strides = [1, 1]} : vector<4x64xf32> to vector<4x56xf32>
    %172 = vector.extract_strided_slice %130 {offsets = [0, 0], sizes = [4, 8], strides = [1, 1]} : vector<4x64xf32> to vector<4x8xf32>
    %173 = tpu.concatenate %171, %172 in 1 : vector<4x56xf32>, vector<4x8xf32> -> vector<4x64xf32>
    %174 = vector.extract_strided_slice %3 {offsets = [7, 0], sizes = [1, 64], strides = [1, 1]} : vector<9x64xf32> to vector<1x64xf32>
    %175 = vector.broadcast %174 : vector<1x64xf32> to vector<4x64xf32>
    %176 = arith.mulf %173, %175 : vector<4x64xf32>
    %177 = vector.extract_strided_slice %130 {offsets = [0, 9], sizes = [4, 55], strides = [1, 1]} : vector<4x64xf32> to vector<4x55xf32>
    %178 = vector.extract_strided_slice %130 {offsets = [0, 0], sizes = [4, 9], strides = [1, 1]} : vector<4x64xf32> to vector<4x9xf32>
    %179 = tpu.concatenate %177, %178 in 1 : vector<4x55xf32>, vector<4x9xf32> -> vector<4x64xf32>
    %180 = vector.extract_strided_slice %3 {offsets = [8, 0], sizes = [1, 64], strides = [1, 1]} : vector<9x64xf32> to vector<1x64xf32>
    %181 = vector.broadcast %180 : vector<1x64xf32> to vector<4x64xf32>
    %182 = arith.mulf %179, %181 : vector<4x64xf32>
    %183 = tpu.concatenate %137, %143, %149, %155, %158, %164, %170, %176, %182 in 0 : vector<4x64xf32>, vector<4x64xf32>, vector<4x64xf32>, vector<4x64xf32>, vector<4x64xf32>, vector<4x64xf32>, vector<4x64xf32>, vector<4x64xf32>, vector<4x64xf32> -> vector<36x64xf32>
    %cst_24 = arith.constant dense<0.000000e+00> : vector<4x64xf32>
    %184 = tpu.matmul %131, %183, %cst_24 {dimension_numbers = #tpu.dot_dimension_numbers<[1], [0], [0], [1], [0, 0, 1, 1], [], []>} : vector<4x36xf32>, vector<36x64xf32>, vector<4x64xf32> -> vector<4x64xf32>
    %cst_25 = arith.constant 0.000000e+00 : f32
    %185 = vector.broadcast %cst_25 : f32 to vector<4x64xf32>
    %186 = arith.cmpf ogt, %184, %185 : vector<4x64xf32>
    %cst_26 = arith.constant 0.000000e+00 : f32
    %187 = vector.broadcast %cst_26 : f32 to vector<4x64xf32>
    %188 = arith.minimumf %184, %187 : vector<4x64xf32>
    %189 = math.exp %188 : vector<4x64xf32>
    %cst_27 = arith.constant 1.000000e+00 : f32
    %190 = vector.broadcast %cst_27 : f32 to vector<4x64xf32>
    %191 = arith.subf %189, %190 : vector<4x64xf32>
    %192 = arith.select %186, %184, %191 : vector<4x64xi1>, vector<4x64xf32>
    %193 = vector.extract_strided_slice %192 {offsets = [0, 55], sizes = [4, 9], strides = [1, 1]} : vector<4x64xf32> to vector<4x9xf32>
    %194 = vector.extract_strided_slice %192 {offsets = [0, 0], sizes = [4, 55], strides = [1, 1]} : vector<4x64xf32> to vector<4x55xf32>
    %195 = tpu.concatenate %193, %194 in 1 : vector<4x9xf32>, vector<4x55xf32> -> vector<4x64xf32>
    %196 = vector.extract_strided_slice %3 {offsets = [0, 0], sizes = [1, 64], strides = [1, 1]} : vector<9x64xf32> to vector<1x64xf32>
    %197 = vector.broadcast %196 : vector<1x64xf32> to vector<4x64xf32>
    %198 = arith.mulf %195, %197 : vector<4x64xf32>
    %199 = vector.extract_strided_slice %192 {offsets = [0, 56], sizes = [4, 8], strides = [1, 1]} : vector<4x64xf32> to vector<4x8xf32>
    %200 = vector.extract_strided_slice %192 {offsets = [0, 0], sizes = [4, 56], strides = [1, 1]} : vector<4x64xf32> to vector<4x56xf32>
    %201 = tpu.concatenate %199, %200 in 1 : vector<4x8xf32>, vector<4x56xf32> -> vector<4x64xf32>
    %202 = vector.extract_strided_slice %3 {offsets = [1, 0], sizes = [1, 64], strides = [1, 1]} : vector<9x64xf32> to vector<1x64xf32>
    %203 = vector.broadcast %202 : vector<1x64xf32> to vector<4x64xf32>
    %204 = arith.mulf %201, %203 : vector<4x64xf32>
    %205 = vector.extract_strided_slice %192 {offsets = [0, 57], sizes = [4, 7], strides = [1, 1]} : vector<4x64xf32> to vector<4x7xf32>
    %206 = vector.extract_strided_slice %192 {offsets = [0, 0], sizes = [4, 57], strides = [1, 1]} : vector<4x64xf32> to vector<4x57xf32>
    %207 = tpu.concatenate %205, %206 in 1 : vector<4x7xf32>, vector<4x57xf32> -> vector<4x64xf32>
    %208 = vector.extract_strided_slice %3 {offsets = [2, 0], sizes = [1, 64], strides = [1, 1]} : vector<9x64xf32> to vector<1x64xf32>
    %209 = vector.broadcast %208 : vector<1x64xf32> to vector<4x64xf32>
    %210 = arith.mulf %207, %209 : vector<4x64xf32>
    %211 = vector.extract_strided_slice %192 {offsets = [0, 63], sizes = [4, 1], strides = [1, 1]} : vector<4x64xf32> to vector<4x1xf32>
    %212 = vector.extract_strided_slice %192 {offsets = [0, 0], sizes = [4, 63], strides = [1, 1]} : vector<4x64xf32> to vector<4x63xf32>
    %213 = tpu.concatenate %211, %212 in 1 : vector<4x1xf32>, vector<4x63xf32> -> vector<4x64xf32>
    %214 = vector.extract_strided_slice %3 {offsets = [3, 0], sizes = [1, 64], strides = [1, 1]} : vector<9x64xf32> to vector<1x64xf32>
    %215 = vector.broadcast %214 : vector<1x64xf32> to vector<4x64xf32>
    %216 = arith.mulf %213, %215 : vector<4x64xf32>
    %217 = vector.extract_strided_slice %3 {offsets = [4, 0], sizes = [1, 64], strides = [1, 1]} : vector<9x64xf32> to vector<1x64xf32>
    %218 = vector.broadcast %217 : vector<1x64xf32> to vector<4x64xf32>
    %219 = arith.mulf %192, %218 : vector<4x64xf32>
    %220 = vector.extract_strided_slice %192 {offsets = [0, 1], sizes = [4, 63], strides = [1, 1]} : vector<4x64xf32> to vector<4x63xf32>
    %221 = vector.extract_strided_slice %192 {offsets = [0, 0], sizes = [4, 1], strides = [1, 1]} : vector<4x64xf32> to vector<4x1xf32>
    %222 = tpu.concatenate %220, %221 in 1 : vector<4x63xf32>, vector<4x1xf32> -> vector<4x64xf32>
    %223 = vector.extract_strided_slice %3 {offsets = [5, 0], sizes = [1, 64], strides = [1, 1]} : vector<9x64xf32> to vector<1x64xf32>
    %224 = vector.broadcast %223 : vector<1x64xf32> to vector<4x64xf32>
    %225 = arith.mulf %222, %224 : vector<4x64xf32>
    %226 = vector.extract_strided_slice %192 {offsets = [0, 7], sizes = [4, 57], strides = [1, 1]} : vector<4x64xf32> to vector<4x57xf32>
    %227 = vector.extract_strided_slice %192 {offsets = [0, 0], sizes = [4, 7], strides = [1, 1]} : vector<4x64xf32> to vector<4x7xf32>
    %228 = tpu.concatenate %226, %227 in 1 : vector<4x57xf32>, vector<4x7xf32> -> vector<4x64xf32>
    %229 = vector.extract_strided_slice %3 {offsets = [6, 0], sizes = [1, 64], strides = [1, 1]} : vector<9x64xf32> to vector<1x64xf32>
    %230 = vector.broadcast %229 : vector<1x64xf32> to vector<4x64xf32>
    %231 = arith.mulf %228, %230 : vector<4x64xf32>
    %232 = vector.extract_strided_slice %192 {offsets = [0, 8], sizes = [4, 56], strides = [1, 1]} : vector<4x64xf32> to vector<4x56xf32>
    %233 = vector.extract_strided_slice %192 {offsets = [0, 0], sizes = [4, 8], strides = [1, 1]} : vector<4x64xf32> to vector<4x8xf32>
    %234 = tpu.concatenate %232, %233 in 1 : vector<4x56xf32>, vector<4x8xf32> -> vector<4x64xf32>
    %235 = vector.extract_strided_slice %3 {offsets = [7, 0], sizes = [1, 64], strides = [1, 1]} : vector<9x64xf32> to vector<1x64xf32>
    %236 = vector.broadcast %235 : vector<1x64xf32> to vector<4x64xf32>
    %237 = arith.mulf %234, %236 : vector<4x64xf32>
    %238 = vector.extract_strided_slice %192 {offsets = [0, 9], sizes = [4, 55], strides = [1, 1]} : vector<4x64xf32> to vector<4x55xf32>
    %239 = vector.extract_strided_slice %192 {offsets = [0, 0], sizes = [4, 9], strides = [1, 1]} : vector<4x64xf32> to vector<4x9xf32>
    %240 = tpu.concatenate %238, %239 in 1 : vector<4x55xf32>, vector<4x9xf32> -> vector<4x64xf32>
    %241 = vector.extract_strided_slice %3 {offsets = [8, 0], sizes = [1, 64], strides = [1, 1]} : vector<9x64xf32> to vector<1x64xf32>
    %242 = vector.broadcast %241 : vector<1x64xf32> to vector<4x64xf32>
    %243 = arith.mulf %240, %242 : vector<4x64xf32>
    %244 = tpu.concatenate %198, %204, %210, %216, %219, %225, %231, %237, %243 in 0 : vector<4x64xf32>, vector<4x64xf32>, vector<4x64xf32>, vector<4x64xf32>, vector<4x64xf32>, vector<4x64xf32>, vector<4x64xf32>, vector<4x64xf32>, vector<4x64xf32> -> vector<36x64xf32>
    %c0_28 = arith.constant 0 : index
    %c0_29 = arith.constant 0 : index
    %245 = vector.load %arg12[%c0_28, %c0_29] : memref<4x36xf32, #tpu.memory_space<vmem>>, vector<4x36xf32>
    %cst_30 = arith.constant dense<0.000000e+00> : vector<4x64xf32>
    %246 = tpu.matmul %245, %244, %cst_30 {dimension_numbers = #tpu.dot_dimension_numbers<[1], [0], [0], [1], [0, 0, 1, 1], [], []>} : vector<4x36xf32>, vector<36x64xf32>, vector<4x64xf32> -> vector<4x64xf32>
    %c0_31 = arith.constant 0 : index
    %c0_32 = arith.constant 0 : index
    %247 = vector.load %arg6[%c0_31, %c0_32] : memref<64x16xf32, #tpu.memory_space<vmem>>, vector<64x16xf32>
    %cst_33 = arith.constant dense<0.000000e+00> : vector<4x16xf32>
    %248 = tpu.matmul %246, %247, %cst_33 {dimension_numbers = #tpu.dot_dimension_numbers<[1], [0], [0], [1], [0, 0, 1, 1], [], []>} : vector<4x64xf32>, vector<64x16xf32>, vector<4x16xf32> -> vector<4x16xf32>
    %cst_34 = arith.constant 0.000000e+00 : f32
    %249 = vector.broadcast %cst_34 : f32 to vector<4x16xf32>
    %250 = arith.cmpf ogt, %248, %249 : vector<4x16xf32>
    %cst_35 = arith.constant 0.000000e+00 : f32
    %251 = vector.broadcast %cst_35 : f32 to vector<4x16xf32>
    %252 = arith.minimumf %248, %251 : vector<4x16xf32>
    %253 = math.exp %252 : vector<4x16xf32>
    %cst_36 = arith.constant 1.000000e+00 : f32
    %254 = vector.broadcast %cst_36 : f32 to vector<4x16xf32>
    %255 = arith.subf %253, %254 : vector<4x16xf32>
    %256 = arith.select %250, %248, %255 : vector<4x16xi1>, vector<4x16xf32>
    %c0_37 = arith.constant 0 : index
    %c0_38 = arith.constant 0 : index
    %257 = vector.load %arg13[%c0_37, %c0_38] : memref<4x36xf32, #tpu.memory_space<vmem>>, vector<4x36xf32>
    %258 = vector.extract_strided_slice %256 {offsets = [0, 11], sizes = [4, 5], strides = [1, 1]} : vector<4x16xf32> to vector<4x5xf32>
    %259 = vector.extract_strided_slice %256 {offsets = [0, 0], sizes = [4, 11], strides = [1, 1]} : vector<4x16xf32> to vector<4x11xf32>
    %260 = tpu.concatenate %258, %259 in 1 : vector<4x5xf32>, vector<4x11xf32> -> vector<4x16xf32>
    %261 = vector.extract_strided_slice %4 {offsets = [0, 0], sizes = [1, 16], strides = [1, 1]} : vector<9x16xf32> to vector<1x16xf32>
    %262 = vector.broadcast %261 : vector<1x16xf32> to vector<4x16xf32>
    %263 = arith.mulf %260, %262 : vector<4x16xf32>
    %264 = vector.extract_strided_slice %256 {offsets = [0, 12], sizes = [4, 4], strides = [1, 1]} : vector<4x16xf32> to vector<4x4xf32>
    %265 = vector.extract_strided_slice %256 {offsets = [0, 0], sizes = [4, 12], strides = [1, 1]} : vector<4x16xf32> to vector<4x12xf32>
    %266 = tpu.concatenate %264, %265 in 1 : vector<4x4xf32>, vector<4x12xf32> -> vector<4x16xf32>
    %267 = vector.extract_strided_slice %4 {offsets = [1, 0], sizes = [1, 16], strides = [1, 1]} : vector<9x16xf32> to vector<1x16xf32>
    %268 = vector.broadcast %267 : vector<1x16xf32> to vector<4x16xf32>
    %269 = arith.mulf %266, %268 : vector<4x16xf32>
    %270 = vector.extract_strided_slice %256 {offsets = [0, 13], sizes = [4, 3], strides = [1, 1]} : vector<4x16xf32> to vector<4x3xf32>
    %271 = vector.extract_strided_slice %256 {offsets = [0, 0], sizes = [4, 13], strides = [1, 1]} : vector<4x16xf32> to vector<4x13xf32>
    %272 = tpu.concatenate %270, %271 in 1 : vector<4x3xf32>, vector<4x13xf32> -> vector<4x16xf32>
    %273 = vector.extract_strided_slice %4 {offsets = [2, 0], sizes = [1, 16], strides = [1, 1]} : vector<9x16xf32> to vector<1x16xf32>
    %274 = vector.broadcast %273 : vector<1x16xf32> to vector<4x16xf32>
    %275 = arith.mulf %272, %274 : vector<4x16xf32>
    %276 = vector.extract_strided_slice %256 {offsets = [0, 15], sizes = [4, 1], strides = [1, 1]} : vector<4x16xf32> to vector<4x1xf32>
    %277 = vector.extract_strided_slice %256 {offsets = [0, 0], sizes = [4, 15], strides = [1, 1]} : vector<4x16xf32> to vector<4x15xf32>
    %278 = tpu.concatenate %276, %277 in 1 : vector<4x1xf32>, vector<4x15xf32> -> vector<4x16xf32>
    %279 = vector.extract_strided_slice %4 {offsets = [3, 0], sizes = [1, 16], strides = [1, 1]} : vector<9x16xf32> to vector<1x16xf32>
    %280 = vector.broadcast %279 : vector<1x16xf32> to vector<4x16xf32>
    %281 = arith.mulf %278, %280 : vector<4x16xf32>
    %282 = vector.extract_strided_slice %4 {offsets = [4, 0], sizes = [1, 16], strides = [1, 1]} : vector<9x16xf32> to vector<1x16xf32>
    %283 = vector.broadcast %282 : vector<1x16xf32> to vector<4x16xf32>
    %284 = arith.mulf %256, %283 : vector<4x16xf32>
    %285 = vector.extract_strided_slice %256 {offsets = [0, 1], sizes = [4, 15], strides = [1, 1]} : vector<4x16xf32> to vector<4x15xf32>
    %286 = vector.extract_strided_slice %256 {offsets = [0, 0], sizes = [4, 1], strides = [1, 1]} : vector<4x16xf32> to vector<4x1xf32>
    %287 = tpu.concatenate %285, %286 in 1 : vector<4x15xf32>, vector<4x1xf32> -> vector<4x16xf32>
    %288 = vector.extract_strided_slice %4 {offsets = [5, 0], sizes = [1, 16], strides = [1, 1]} : vector<9x16xf32> to vector<1x16xf32>
    %289 = vector.broadcast %288 : vector<1x16xf32> to vector<4x16xf32>
    %290 = arith.mulf %287, %289 : vector<4x16xf32>
    %291 = vector.extract_strided_slice %256 {offsets = [0, 3], sizes = [4, 13], strides = [1, 1]} : vector<4x16xf32> to vector<4x13xf32>
    %292 = vector.extract_strided_slice %256 {offsets = [0, 0], sizes = [4, 3], strides = [1, 1]} : vector<4x16xf32> to vector<4x3xf32>
    %293 = tpu.concatenate %291, %292 in 1 : vector<4x13xf32>, vector<4x3xf32> -> vector<4x16xf32>
    %294 = vector.extract_strided_slice %4 {offsets = [6, 0], sizes = [1, 16], strides = [1, 1]} : vector<9x16xf32> to vector<1x16xf32>
    %295 = vector.broadcast %294 : vector<1x16xf32> to vector<4x16xf32>
    %296 = arith.mulf %293, %295 : vector<4x16xf32>
    %297 = vector.extract_strided_slice %256 {offsets = [0, 4], sizes = [4, 12], strides = [1, 1]} : vector<4x16xf32> to vector<4x12xf32>
    %298 = vector.extract_strided_slice %256 {offsets = [0, 0], sizes = [4, 4], strides = [1, 1]} : vector<4x16xf32> to vector<4x4xf32>
    %299 = tpu.concatenate %297, %298 in 1 : vector<4x12xf32>, vector<4x4xf32> -> vector<4x16xf32>
    %300 = vector.extract_strided_slice %4 {offsets = [7, 0], sizes = [1, 16], strides = [1, 1]} : vector<9x16xf32> to vector<1x16xf32>
    %301 = vector.broadcast %300 : vector<1x16xf32> to vector<4x16xf32>
    %302 = arith.mulf %299, %301 : vector<4x16xf32>
    %303 = vector.extract_strided_slice %256 {offsets = [0, 5], sizes = [4, 11], strides = [1, 1]} : vector<4x16xf32> to vector<4x11xf32>
    %304 = vector.extract_strided_slice %256 {offsets = [0, 0], sizes = [4, 5], strides = [1, 1]} : vector<4x16xf32> to vector<4x5xf32>
    %305 = tpu.concatenate %303, %304 in 1 : vector<4x11xf32>, vector<4x5xf32> -> vector<4x16xf32>
    %306 = vector.extract_strided_slice %4 {offsets = [8, 0], sizes = [1, 16], strides = [1, 1]} : vector<9x16xf32> to vector<1x16xf32>
    %307 = vector.broadcast %306 : vector<1x16xf32> to vector<4x16xf32>
    %308 = arith.mulf %305, %307 : vector<4x16xf32>
    %309 = tpu.concatenate %263, %269, %275, %281, %284, %290, %296, %302, %308 in 0 : vector<4x16xf32>, vector<4x16xf32>, vector<4x16xf32>, vector<4x16xf32>, vector<4x16xf32>, vector<4x16xf32>, vector<4x16xf32>, vector<4x16xf32>, vector<4x16xf32> -> vector<36x16xf32>
    %cst_39 = arith.constant dense<0.000000e+00> : vector<4x16xf32>
    %310 = tpu.matmul %257, %309, %cst_39 {dimension_numbers = #tpu.dot_dimension_numbers<[1], [0], [0], [1], [0, 0, 1, 1], [], []>} : vector<4x36xf32>, vector<36x16xf32>, vector<4x16xf32> -> vector<4x16xf32>
    %cst_40 = arith.constant 0.000000e+00 : f32
    %311 = vector.broadcast %cst_40 : f32 to vector<4x16xf32>
    %312 = arith.cmpf ogt, %310, %311 : vector<4x16xf32>
    %cst_41 = arith.constant 0.000000e+00 : f32
    %313 = vector.broadcast %cst_41 : f32 to vector<4x16xf32>
    %314 = arith.minimumf %310, %313 : vector<4x16xf32>
    %315 = math.exp %314 : vector<4x16xf32>
    %cst_42 = arith.constant 1.000000e+00 : f32
    %316 = vector.broadcast %cst_42 : f32 to vector<4x16xf32>
    %317 = arith.subf %315, %316 : vector<4x16xf32>
    %318 = arith.select %312, %310, %317 : vector<4x16xi1>, vector<4x16xf32>
    %c0_43 = arith.constant 0 : index
    %c0_44 = arith.constant 0 : index
    %319 = vector.load %arg14[%c0_43, %c0_44] : memref<16x4xf32, #tpu.memory_space<vmem>>, vector<16x4xf32>
    %cst_45 = arith.constant dense<0.000000e+00> : vector<16x16xf32>
    %320 = tpu.matmul %319, %318, %cst_45 {dimension_numbers = #tpu.dot_dimension_numbers<[1], [0], [0], [1], [0, 0, 1, 1], [], []>} : vector<16x4xf32>, vector<4x16xf32>, vector<16x16xf32> -> vector<16x16xf32>
    %321 = vector.extract_strided_slice %320 {offsets = [0, 0], sizes = [4, 16], strides = [1, 1]} : vector<16x16xf32> to vector<4x16xf32>
    %c0_46 = arith.constant 0 : index
    %c0_47 = arith.constant 0 : index
    %c0_48 = arith.constant 0 : index
    %322 = vector.load %arg7[%c0_46, %c0_47, %c0_48] : memref<4x16x64xf32, #tpu.memory_space<vmem>>, vector<1x16x64xf32>
    %323 = vector.shape_cast %322 : vector<1x16x64xf32> to vector<16x64xf32>
    %cst_49 = arith.constant dense<0.000000e+00> : vector<4x64xf32>
    %324 = tpu.matmul %321, %323, %cst_49 {dimension_numbers = #tpu.dot_dimension_numbers<[1], [0], [0], [1], [0, 0, 1, 1], [], []>} : vector<4x16xf32>, vector<16x64xf32>, vector<4x64xf32> -> vector<4x64xf32>
    %325 = vector.extract_strided_slice %320 {offsets = [4, 0], sizes = [4, 16], strides = [1, 1]} : vector<16x16xf32> to vector<4x16xf32>
    %c1 = arith.constant 1 : index
    %c0_50 = arith.constant 0 : index
    %c0_51 = arith.constant 0 : index
    %326 = vector.load %arg7[%c1, %c0_50, %c0_51] : memref<4x16x64xf32, #tpu.memory_space<vmem>>, vector<1x16x64xf32>
    %327 = vector.shape_cast %326 : vector<1x16x64xf32> to vector<16x64xf32>
    %cst_52 = arith.constant dense<0.000000e+00> : vector<4x64xf32>
    %328 = tpu.matmul %325, %327, %cst_52 {dimension_numbers = #tpu.dot_dimension_numbers<[1], [0], [0], [1], [0, 0, 1, 1], [], []>} : vector<4x16xf32>, vector<16x64xf32>, vector<4x64xf32> -> vector<4x64xf32>
    %329 = arith.addf %324, %328 : vector<4x64xf32>
    %330 = vector.extract_strided_slice %320 {offsets = [8, 0], sizes = [4, 16], strides = [1, 1]} : vector<16x16xf32> to vector<4x16xf32>
    %c2 = arith.constant 2 : index
    %c0_53 = arith.constant 0 : index
    %c0_54 = arith.constant 0 : index
    %331 = vector.load %arg7[%c2, %c0_53, %c0_54] : memref<4x16x64xf32, #tpu.memory_space<vmem>>, vector<1x16x64xf32>
    %332 = vector.shape_cast %331 : vector<1x16x64xf32> to vector<16x64xf32>
    %cst_55 = arith.constant dense<0.000000e+00> : vector<4x64xf32>
    %333 = tpu.matmul %330, %332, %cst_55 {dimension_numbers = #tpu.dot_dimension_numbers<[1], [0], [0], [1], [0, 0, 1, 1], [], []>} : vector<4x16xf32>, vector<16x64xf32>, vector<4x64xf32> -> vector<4x64xf32>
    %334 = arith.addf %329, %333 : vector<4x64xf32>
    %335 = vector.extract_strided_slice %320 {offsets = [12, 0], sizes = [4, 16], strides = [1, 1]} : vector<16x16xf32> to vector<4x16xf32>
    %c3 = arith.constant 3 : index
    %c0_56 = arith.constant 0 : index
    %c0_57 = arith.constant 0 : index
    %336 = vector.load %arg7[%c3, %c0_56, %c0_57] : memref<4x16x64xf32, #tpu.memory_space<vmem>>, vector<1x16x64xf32>
    %337 = vector.shape_cast %336 : vector<1x16x64xf32> to vector<16x64xf32>
    %cst_58 = arith.constant dense<0.000000e+00> : vector<4x64xf32>
    %338 = tpu.matmul %335, %337, %cst_58 {dimension_numbers = #tpu.dot_dimension_numbers<[1], [0], [0], [1], [0, 0, 1, 1], [], []>} : vector<4x16xf32>, vector<16x64xf32>, vector<4x64xf32> -> vector<4x64xf32>
    %339 = arith.addf %334, %338 : vector<4x64xf32>
    %cst_59 = arith.constant 0.000000e+00 : f32
    %340 = vector.broadcast %cst_59 : f32 to vector<4x64xf32>
    %341 = arith.cmpf ogt, %339, %340 : vector<4x64xf32>
    %cst_60 = arith.constant 0.000000e+00 : f32
    %342 = vector.broadcast %cst_60 : f32 to vector<4x64xf32>
    %343 = arith.minimumf %339, %342 : vector<4x64xf32>
    %344 = math.exp %343 : vector<4x64xf32>
    %cst_61 = arith.constant 1.000000e+00 : f32
    %345 = vector.broadcast %cst_61 : f32 to vector<4x64xf32>
    %346 = arith.subf %344, %345 : vector<4x64xf32>
    %347 = arith.select %341, %339, %346 : vector<4x64xi1>, vector<4x64xf32>
    %c0_62 = arith.constant 0 : index
    %c0_63 = arith.constant 0 : index
    %348 = vector.load %arg15[%c0_62, %c0_63] : memref<4x36xf32, #tpu.memory_space<vmem>>, vector<4x36xf32>
    %349 = vector.extract_strided_slice %347 {offsets = [0, 55], sizes = [4, 9], strides = [1, 1]} : vector<4x64xf32> to vector<4x9xf32>
    %350 = vector.extract_strided_slice %347 {offsets = [0, 0], sizes = [4, 55], strides = [1, 1]} : vector<4x64xf32> to vector<4x55xf32>
    %351 = tpu.concatenate %349, %350 in 1 : vector<4x9xf32>, vector<4x55xf32> -> vector<4x64xf32>
    %352 = vector.extract_strided_slice %3 {offsets = [0, 0], sizes = [1, 64], strides = [1, 1]} : vector<9x64xf32> to vector<1x64xf32>
    %353 = vector.broadcast %352 : vector<1x64xf32> to vector<4x64xf32>
    %354 = arith.mulf %351, %353 : vector<4x64xf32>
    %355 = vector.extract_strided_slice %347 {offsets = [0, 56], sizes = [4, 8], strides = [1, 1]} : vector<4x64xf32> to vector<4x8xf32>
    %356 = vector.extract_strided_slice %347 {offsets = [0, 0], sizes = [4, 56], strides = [1, 1]} : vector<4x64xf32> to vector<4x56xf32>
    %357 = tpu.concatenate %355, %356 in 1 : vector<4x8xf32>, vector<4x56xf32> -> vector<4x64xf32>
    %358 = vector.extract_strided_slice %3 {offsets = [1, 0], sizes = [1, 64], strides = [1, 1]} : vector<9x64xf32> to vector<1x64xf32>
    %359 = vector.broadcast %358 : vector<1x64xf32> to vector<4x64xf32>
    %360 = arith.mulf %357, %359 : vector<4x64xf32>
    %361 = vector.extract_strided_slice %347 {offsets = [0, 57], sizes = [4, 7], strides = [1, 1]} : vector<4x64xf32> to vector<4x7xf32>
    %362 = vector.extract_strided_slice %347 {offsets = [0, 0], sizes = [4, 57], strides = [1, 1]} : vector<4x64xf32> to vector<4x57xf32>
    %363 = tpu.concatenate %361, %362 in 1 : vector<4x7xf32>, vector<4x57xf32> -> vector<4x64xf32>
    %364 = vector.extract_strided_slice %3 {offsets = [2, 0], sizes = [1, 64], strides = [1, 1]} : vector<9x64xf32> to vector<1x64xf32>
    %365 = vector.broadcast %364 : vector<1x64xf32> to vector<4x64xf32>
    %366 = arith.mulf %363, %365 : vector<4x64xf32>
    %367 = vector.extract_strided_slice %347 {offsets = [0, 63], sizes = [4, 1], strides = [1, 1]} : vector<4x64xf32> to vector<4x1xf32>
    %368 = vector.extract_strided_slice %347 {offsets = [0, 0], sizes = [4, 63], strides = [1, 1]} : vector<4x64xf32> to vector<4x63xf32>
    %369 = tpu.concatenate %367, %368 in 1 : vector<4x1xf32>, vector<4x63xf32> -> vector<4x64xf32>
    %370 = vector.extract_strided_slice %3 {offsets = [3, 0], sizes = [1, 64], strides = [1, 1]} : vector<9x64xf32> to vector<1x64xf32>
    %371 = vector.broadcast %370 : vector<1x64xf32> to vector<4x64xf32>
    %372 = arith.mulf %369, %371 : vector<4x64xf32>
    %373 = vector.extract_strided_slice %3 {offsets = [4, 0], sizes = [1, 64], strides = [1, 1]} : vector<9x64xf32> to vector<1x64xf32>
    %374 = vector.broadcast %373 : vector<1x64xf32> to vector<4x64xf32>
    %375 = arith.mulf %347, %374 : vector<4x64xf32>
    %376 = vector.extract_strided_slice %347 {offsets = [0, 1], sizes = [4, 63], strides = [1, 1]} : vector<4x64xf32> to vector<4x63xf32>
    %377 = vector.extract_strided_slice %347 {offsets = [0, 0], sizes = [4, 1], strides = [1, 1]} : vector<4x64xf32> to vector<4x1xf32>
    %378 = tpu.concatenate %376, %377 in 1 : vector<4x63xf32>, vector<4x1xf32> -> vector<4x64xf32>
    %379 = vector.extract_strided_slice %3 {offsets = [5, 0], sizes = [1, 64], strides = [1, 1]} : vector<9x64xf32> to vector<1x64xf32>
    %380 = vector.broadcast %379 : vector<1x64xf32> to vector<4x64xf32>
    %381 = arith.mulf %378, %380 : vector<4x64xf32>
    %382 = vector.extract_strided_slice %347 {offsets = [0, 7], sizes = [4, 57], strides = [1, 1]} : vector<4x64xf32> to vector<4x57xf32>
    %383 = vector.extract_strided_slice %347 {offsets = [0, 0], sizes = [4, 7], strides = [1, 1]} : vector<4x64xf32> to vector<4x7xf32>
    %384 = tpu.concatenate %382, %383 in 1 : vector<4x57xf32>, vector<4x7xf32> -> vector<4x64xf32>
    %385 = vector.extract_strided_slice %3 {offsets = [6, 0], sizes = [1, 64], strides = [1, 1]} : vector<9x64xf32> to vector<1x64xf32>
    %386 = vector.broadcast %385 : vector<1x64xf32> to vector<4x64xf32>
    %387 = arith.mulf %384, %386 : vector<4x64xf32>
    %388 = vector.extract_strided_slice %347 {offsets = [0, 8], sizes = [4, 56], strides = [1, 1]} : vector<4x64xf32> to vector<4x56xf32>
    %389 = vector.extract_strided_slice %347 {offsets = [0, 0], sizes = [4, 8], strides = [1, 1]} : vector<4x64xf32> to vector<4x8xf32>
    %390 = tpu.concatenate %388, %389 in 1 : vector<4x56xf32>, vector<4x8xf32> -> vector<4x64xf32>
    %391 = vector.extract_strided_slice %3 {offsets = [7, 0], sizes = [1, 64], strides = [1, 1]} : vector<9x64xf32> to vector<1x64xf32>
    %392 = vector.broadcast %391 : vector<1x64xf32> to vector<4x64xf32>
    %393 = arith.mulf %390, %392 : vector<4x64xf32>
    %394 = vector.extract_strided_slice %347 {offsets = [0, 9], sizes = [4, 55], strides = [1, 1]} : vector<4x64xf32> to vector<4x55xf32>
    %395 = vector.extract_strided_slice %347 {offsets = [0, 0], sizes = [4, 9], strides = [1, 1]} : vector<4x64xf32> to vector<4x9xf32>
    %396 = tpu.concatenate %394, %395 in 1 : vector<4x55xf32>, vector<4x9xf32> -> vector<4x64xf32>
    %397 = vector.extract_strided_slice %3 {offsets = [8, 0], sizes = [1, 64], strides = [1, 1]} : vector<9x64xf32> to vector<1x64xf32>
    %398 = vector.broadcast %397 : vector<1x64xf32> to vector<4x64xf32>
    %399 = arith.mulf %396, %398 : vector<4x64xf32>
    %400 = tpu.concatenate %354, %360, %366, %372, %375, %381, %387, %393, %399 in 0 : vector<4x64xf32>, vector<4x64xf32>, vector<4x64xf32>, vector<4x64xf32>, vector<4x64xf32>, vector<4x64xf32>, vector<4x64xf32>, vector<4x64xf32>, vector<4x64xf32> -> vector<36x64xf32>
    %cst_64 = arith.constant dense<0.000000e+00> : vector<4x64xf32>
    %401 = tpu.matmul %348, %400, %cst_64 {dimension_numbers = #tpu.dot_dimension_numbers<[1], [0], [0], [1], [0, 0, 1, 1], [], []>} : vector<4x36xf32>, vector<36x64xf32>, vector<4x64xf32> -> vector<4x64xf32>
    %c0_65 = arith.constant 0 : index
    %c0_66 = arith.constant 0 : index
    %402 = vector.load %arg16[%c0_65, %c0_66] : memref<4x36xf32, #tpu.memory_space<vmem>>, vector<4x36xf32>
    %cst_67 = arith.constant dense<0.000000e+00> : vector<4x64xf32>
    %403 = tpu.matmul %402, %244, %cst_67 {dimension_numbers = #tpu.dot_dimension_numbers<[1], [0], [0], [1], [0, 0, 1, 1], [], []>} : vector<4x36xf32>, vector<36x64xf32>, vector<4x64xf32> -> vector<4x64xf32>
    %404 = arith.addf %401, %403 : vector<4x64xf32>
    %cst_68 = arith.constant 0.000000e+00 : f32
    %405 = vector.broadcast %cst_68 : f32 to vector<4x64xf32>
    %406 = arith.cmpf ogt, %404, %405 : vector<4x64xf32>
    %cst_69 = arith.constant 0.000000e+00 : f32
    %407 = vector.broadcast %cst_69 : f32 to vector<4x64xf32>
    %408 = arith.minimumf %404, %407 : vector<4x64xf32>
    %409 = math.exp %408 : vector<4x64xf32>
    %cst_70 = arith.constant 1.000000e+00 : f32
    %410 = vector.broadcast %cst_70 : f32 to vector<4x64xf32>
    %411 = arith.subf %409, %410 : vector<4x64xf32>
    %412 = arith.select %406, %404, %411 : vector<4x64xi1>, vector<4x64xf32>
    %c0_71 = arith.constant 0 : index
    %c0_72 = arith.constant 0 : index
    %413 = vector.load %arg17[%c0_71, %c0_72] : memref<4x1xf32, #tpu.memory_space<vmem>>, vector<4x1xf32>
    %414 = vector.broadcast %413 : vector<4x1xf32> to vector<4x64xf32>
    %415 = arith.mulf %412, %414 : vector<4x64xf32>
    %cst_73 = arith.constant dense<0.000000e+00> : vector<64xf32>
    %416 = vector.multi_reduction <add>, %415, %cst_73 [0] : vector<4x64xf32> to vector<64xf32>
    %417 = vector.shape_cast %416 : vector<64xf32> to vector<1x64xf32>
    %cst_74 = arith.constant 0.000000e+00 : f32
    %418 = vector.broadcast %cst_74 : f32 to vector<1x64xf32>
    %419 = arith.cmpf oge, %417, %418 : vector<1x64xf32>
    %420 = arith.extui %419 : vector<1x64xi1> to vector<1x64xi32>
    %421 = arith.sitofp %420 : vector<1x64xi32> to vector<1x64xf32>
    %422 = vector.broadcast %421 : vector<1x64xf32> to vector<4x64xf32>
    %423 = arith.mulf %412, %422 : vector<4x64xf32>
    %c0_75 = arith.constant 0 : index
    %c0_76 = arith.constant 0 : index
    %424 = vector.load %arg18[%c0_75, %c0_76] : memref<16x4xf32, #tpu.memory_space<vmem>>, vector<16x4xf32>
    %cst_77 = arith.constant dense<0.000000e+00> : vector<16x64xf32>
    %425 = tpu.matmul %424, %423, %cst_77 {dimension_numbers = #tpu.dot_dimension_numbers<[1], [0], [0], [1], [0, 0, 1, 1], [], []>} : vector<16x4xf32>, vector<4x64xf32>, vector<16x64xf32> -> vector<16x64xf32>
    %426 = vector.extract_strided_slice %425 {offsets = [0, 0], sizes = [4, 64], strides = [1, 1]} : vector<16x64xf32> to vector<4x64xf32>
    %c0_78 = arith.constant 0 : index
    %c0_79 = arith.constant 0 : index
    %c0_80 = arith.constant 0 : index
    %427 = vector.load %arg8[%c0_78, %c0_79, %c0_80] : memref<4x64x256xf32, #tpu.memory_space<vmem>>, vector<1x64x256xf32>
    %428 = vector.shape_cast %427 : vector<1x64x256xf32> to vector<64x256xf32>
    %cst_81 = arith.constant dense<0.000000e+00> : vector<4x256xf32>
    %429 = tpu.matmul %426, %428, %cst_81 {dimension_numbers = #tpu.dot_dimension_numbers<[1], [0], [0], [1], [0, 0, 1, 1], [], []>} : vector<4x64xf32>, vector<64x256xf32>, vector<4x256xf32> -> vector<4x256xf32>
    %430 = vector.extract_strided_slice %425 {offsets = [4, 0], sizes = [4, 64], strides = [1, 1]} : vector<16x64xf32> to vector<4x64xf32>
    %c1_82 = arith.constant 1 : index
    %c0_83 = arith.constant 0 : index
    %c0_84 = arith.constant 0 : index
    %431 = vector.load %arg8[%c1_82, %c0_83, %c0_84] : memref<4x64x256xf32, #tpu.memory_space<vmem>>, vector<1x64x256xf32>
    %432 = vector.shape_cast %431 : vector<1x64x256xf32> to vector<64x256xf32>
    %cst_85 = arith.constant dense<0.000000e+00> : vector<4x256xf32>
    %433 = tpu.matmul %430, %432, %cst_85 {dimension_numbers = #tpu.dot_dimension_numbers<[1], [0], [0], [1], [0, 0, 1, 1], [], []>} : vector<4x64xf32>, vector<64x256xf32>, vector<4x256xf32> -> vector<4x256xf32>
    %434 = arith.addf %429, %433 : vector<4x256xf32>
    %435 = vector.extract_strided_slice %425 {offsets = [8, 0], sizes = [4, 64], strides = [1, 1]} : vector<16x64xf32> to vector<4x64xf32>
    %c2_86 = arith.constant 2 : index
    %c0_87 = arith.constant 0 : index
    %c0_88 = arith.constant 0 : index
    %436 = vector.load %arg8[%c2_86, %c0_87, %c0_88] : memref<4x64x256xf32, #tpu.memory_space<vmem>>, vector<1x64x256xf32>
    %437 = vector.shape_cast %436 : vector<1x64x256xf32> to vector<64x256xf32>
    %cst_89 = arith.constant dense<0.000000e+00> : vector<4x256xf32>
    %438 = tpu.matmul %435, %437, %cst_89 {dimension_numbers = #tpu.dot_dimension_numbers<[1], [0], [0], [1], [0, 0, 1, 1], [], []>} : vector<4x64xf32>, vector<64x256xf32>, vector<4x256xf32> -> vector<4x256xf32>
    %439 = arith.addf %434, %438 : vector<4x256xf32>
    %440 = vector.extract_strided_slice %425 {offsets = [12, 0], sizes = [4, 64], strides = [1, 1]} : vector<16x64xf32> to vector<4x64xf32>
    %c3_90 = arith.constant 3 : index
    %c0_91 = arith.constant 0 : index
    %c0_92 = arith.constant 0 : index
    %441 = vector.load %arg8[%c3_90, %c0_91, %c0_92] : memref<4x64x256xf32, #tpu.memory_space<vmem>>, vector<1x64x256xf32>
    %442 = vector.shape_cast %441 : vector<1x64x256xf32> to vector<64x256xf32>
    %cst_93 = arith.constant dense<0.000000e+00> : vector<4x256xf32>
    %443 = tpu.matmul %440, %442, %cst_93 {dimension_numbers = #tpu.dot_dimension_numbers<[1], [0], [0], [1], [0, 0, 1, 1], [], []>} : vector<4x64xf32>, vector<64x256xf32>, vector<4x256xf32> -> vector<4x256xf32>
    %444 = arith.addf %439, %443 : vector<4x256xf32>
    %cst_94 = arith.constant 0.000000e+00 : f32
    %445 = vector.broadcast %cst_94 : f32 to vector<4x256xf32>
    %446 = arith.cmpf ogt, %444, %445 : vector<4x256xf32>
    %cst_95 = arith.constant 0.000000e+00 : f32
    %447 = vector.broadcast %cst_95 : f32 to vector<4x256xf32>
    %448 = arith.minimumf %444, %447 : vector<4x256xf32>
    %449 = math.exp %448 : vector<4x256xf32>
    %cst_96 = arith.constant 1.000000e+00 : f32
    %450 = vector.broadcast %cst_96 : f32 to vector<4x256xf32>
    %451 = arith.subf %449, %450 : vector<4x256xf32>
    %452 = arith.select %446, %444, %451 : vector<4x256xi1>, vector<4x256xf32>
    %c0_97 = arith.constant 0 : index
    %c0_98 = arith.constant 0 : index
    %453 = vector.load %arg19[%c0_97, %c0_98] : memref<4x36xf32, #tpu.memory_space<vmem>>, vector<4x36xf32>
    %454 = vector.extract_strided_slice %452 {offsets = [0, 239], sizes = [4, 17], strides = [1, 1]} : vector<4x256xf32> to vector<4x17xf32>
    %455 = vector.extract_strided_slice %452 {offsets = [0, 0], sizes = [4, 239], strides = [1, 1]} : vector<4x256xf32> to vector<4x239xf32>
    %456 = tpu.concatenate %454, %455 in 1 : vector<4x17xf32>, vector<4x239xf32> -> vector<4x256xf32>
    %457 = vector.extract_strided_slice %2 {offsets = [0, 0], sizes = [1, 256], strides = [1, 1]} : vector<9x256xf32> to vector<1x256xf32>
    %458 = vector.broadcast %457 : vector<1x256xf32> to vector<4x256xf32>
    %459 = arith.mulf %456, %458 : vector<4x256xf32>
    %460 = vector.extract_strided_slice %452 {offsets = [0, 240], sizes = [4, 16], strides = [1, 1]} : vector<4x256xf32> to vector<4x16xf32>
    %461 = vector.extract_strided_slice %452 {offsets = [0, 0], sizes = [4, 240], strides = [1, 1]} : vector<4x256xf32> to vector<4x240xf32>
    %462 = tpu.concatenate %460, %461 in 1 : vector<4x16xf32>, vector<4x240xf32> -> vector<4x256xf32>
    %463 = vector.extract_strided_slice %2 {offsets = [1, 0], sizes = [1, 256], strides = [1, 1]} : vector<9x256xf32> to vector<1x256xf32>
    %464 = vector.broadcast %463 : vector<1x256xf32> to vector<4x256xf32>
    %465 = arith.mulf %462, %464 : vector<4x256xf32>
    %466 = vector.extract_strided_slice %452 {offsets = [0, 241], sizes = [4, 15], strides = [1, 1]} : vector<4x256xf32> to vector<4x15xf32>
    %467 = vector.extract_strided_slice %452 {offsets = [0, 0], sizes = [4, 241], strides = [1, 1]} : vector<4x256xf32> to vector<4x241xf32>
    %468 = tpu.concatenate %466, %467 in 1 : vector<4x15xf32>, vector<4x241xf32> -> vector<4x256xf32>
    %469 = vector.extract_strided_slice %2 {offsets = [2, 0], sizes = [1, 256], strides = [1, 1]} : vector<9x256xf32> to vector<1x256xf32>
    %470 = vector.broadcast %469 : vector<1x256xf32> to vector<4x256xf32>
    %471 = arith.mulf %468, %470 : vector<4x256xf32>
    %472 = vector.extract_strided_slice %452 {offsets = [0, 255], sizes = [4, 1], strides = [1, 1]} : vector<4x256xf32> to vector<4x1xf32>
    %473 = vector.extract_strided_slice %452 {offsets = [0, 0], sizes = [4, 255], strides = [1, 1]} : vector<4x256xf32> to vector<4x255xf32>
    %474 = tpu.concatenate %472, %473 in 1 : vector<4x1xf32>, vector<4x255xf32> -> vector<4x256xf32>
    %475 = vector.extract_strided_slice %2 {offsets = [3, 0], sizes = [1, 256], strides = [1, 1]} : vector<9x256xf32> to vector<1x256xf32>
    %476 = vector.broadcast %475 : vector<1x256xf32> to vector<4x256xf32>
    %477 = arith.mulf %474, %476 : vector<4x256xf32>
    %478 = vector.extract_strided_slice %2 {offsets = [4, 0], sizes = [1, 256], strides = [1, 1]} : vector<9x256xf32> to vector<1x256xf32>
    %479 = vector.broadcast %478 : vector<1x256xf32> to vector<4x256xf32>
    %480 = arith.mulf %452, %479 : vector<4x256xf32>
    %481 = vector.extract_strided_slice %452 {offsets = [0, 1], sizes = [4, 255], strides = [1, 1]} : vector<4x256xf32> to vector<4x255xf32>
    %482 = vector.extract_strided_slice %452 {offsets = [0, 0], sizes = [4, 1], strides = [1, 1]} : vector<4x256xf32> to vector<4x1xf32>
    %483 = tpu.concatenate %481, %482 in 1 : vector<4x255xf32>, vector<4x1xf32> -> vector<4x256xf32>
    %484 = vector.extract_strided_slice %2 {offsets = [5, 0], sizes = [1, 256], strides = [1, 1]} : vector<9x256xf32> to vector<1x256xf32>
    %485 = vector.broadcast %484 : vector<1x256xf32> to vector<4x256xf32>
    %486 = arith.mulf %483, %485 : vector<4x256xf32>
    %487 = vector.extract_strided_slice %452 {offsets = [0, 15], sizes = [4, 241], strides = [1, 1]} : vector<4x256xf32> to vector<4x241xf32>
    %488 = vector.extract_strided_slice %452 {offsets = [0, 0], sizes = [4, 15], strides = [1, 1]} : vector<4x256xf32> to vector<4x15xf32>
    %489 = tpu.concatenate %487, %488 in 1 : vector<4x241xf32>, vector<4x15xf32> -> vector<4x256xf32>
    %490 = vector.extract_strided_slice %2 {offsets = [6, 0], sizes = [1, 256], strides = [1, 1]} : vector<9x256xf32> to vector<1x256xf32>
    %491 = vector.broadcast %490 : vector<1x256xf32> to vector<4x256xf32>
    %492 = arith.mulf %489, %491 : vector<4x256xf32>
    %493 = vector.extract_strided_slice %452 {offsets = [0, 16], sizes = [4, 240], strides = [1, 1]} : vector<4x256xf32> to vector<4x240xf32>
    %494 = vector.extract_strided_slice %452 {offsets = [0, 0], sizes = [4, 16], strides = [1, 1]} : vector<4x256xf32> to vector<4x16xf32>
    %495 = tpu.concatenate %493, %494 in 1 : vector<4x240xf32>, vector<4x16xf32> -> vector<4x256xf32>
    %496 = vector.extract_strided_slice %2 {offsets = [7, 0], sizes = [1, 256], strides = [1, 1]} : vector<9x256xf32> to vector<1x256xf32>
    %497 = vector.broadcast %496 : vector<1x256xf32> to vector<4x256xf32>
    %498 = arith.mulf %495, %497 : vector<4x256xf32>
    %499 = vector.extract_strided_slice %452 {offsets = [0, 17], sizes = [4, 239], strides = [1, 1]} : vector<4x256xf32> to vector<4x239xf32>
    %500 = vector.extract_strided_slice %452 {offsets = [0, 0], sizes = [4, 17], strides = [1, 1]} : vector<4x256xf32> to vector<4x17xf32>
    %501 = tpu.concatenate %499, %500 in 1 : vector<4x239xf32>, vector<4x17xf32> -> vector<4x256xf32>
    %502 = vector.extract_strided_slice %2 {offsets = [8, 0], sizes = [1, 256], strides = [1, 1]} : vector<9x256xf32> to vector<1x256xf32>
    %503 = vector.broadcast %502 : vector<1x256xf32> to vector<4x256xf32>
    %504 = arith.mulf %501, %503 : vector<4x256xf32>
    %505 = tpu.concatenate %459, %465, %471, %477, %480, %486, %492, %498, %504 in 0 : vector<4x256xf32>, vector<4x256xf32>, vector<4x256xf32>, vector<4x256xf32>, vector<4x256xf32>, vector<4x256xf32>, vector<4x256xf32>, vector<4x256xf32>, vector<4x256xf32> -> vector<36x256xf32>
    %cst_99 = arith.constant dense<0.000000e+00> : vector<4x256xf32>
    %506 = tpu.matmul %453, %505, %cst_99 {dimension_numbers = #tpu.dot_dimension_numbers<[1], [0], [0], [1], [0, 0, 1, 1], [], []>} : vector<4x36xf32>, vector<36x256xf32>, vector<4x256xf32> -> vector<4x256xf32>
    %c0_100 = arith.constant 0 : index
    %c0_101 = arith.constant 0 : index
    %507 = vector.load %arg20[%c0_100, %c0_101] : memref<4x36xf32, #tpu.memory_space<vmem>>, vector<4x36xf32>
    %cst_102 = arith.constant dense<0.000000e+00> : vector<4x256xf32>
    %508 = tpu.matmul %507, %118, %cst_102 {dimension_numbers = #tpu.dot_dimension_numbers<[1], [0], [0], [1], [0, 0, 1, 1], [], []>} : vector<4x36xf32>, vector<36x256xf32>, vector<4x256xf32> -> vector<4x256xf32>
    %509 = arith.addf %506, %508 : vector<4x256xf32>
    %cst_103 = arith.constant 0.000000e+00 : f32
    %510 = vector.broadcast %cst_103 : f32 to vector<4x256xf32>
    %511 = arith.cmpf ogt, %509, %510 : vector<4x256xf32>
    %cst_104 = arith.constant 0.000000e+00 : f32
    %512 = vector.broadcast %cst_104 : f32 to vector<4x256xf32>
    %513 = arith.minimumf %509, %512 : vector<4x256xf32>
    %514 = math.exp %513 : vector<4x256xf32>
    %cst_105 = arith.constant 1.000000e+00 : f32
    %515 = vector.broadcast %cst_105 : f32 to vector<4x256xf32>
    %516 = arith.subf %514, %515 : vector<4x256xf32>
    %517 = arith.select %511, %509, %516 : vector<4x256xi1>, vector<4x256xf32>
    %c0_106 = arith.constant 0 : index
    %c0_107 = arith.constant 0 : index
    %518 = vector.load %arg21[%c0_106, %c0_107] : memref<4x1xf32, #tpu.memory_space<vmem>>, vector<4x1xf32>
    %519 = vector.broadcast %518 : vector<4x1xf32> to vector<4x256xf32>
    %520 = arith.mulf %517, %519 : vector<4x256xf32>
    %cst_108 = arith.constant dense<0.000000e+00> : vector<256xf32>
    %521 = vector.multi_reduction <add>, %520, %cst_108 [0] : vector<4x256xf32> to vector<256xf32>
    %522 = vector.shape_cast %521 : vector<256xf32> to vector<1x256xf32>
    %cst_109 = arith.constant 0.000000e+00 : f32
    %523 = vector.broadcast %cst_109 : f32 to vector<1x256xf32>
    %524 = arith.cmpf oge, %522, %523 : vector<1x256xf32>
    %525 = arith.extui %524 : vector<1x256xi1> to vector<1x256xi32>
    %526 = arith.sitofp %525 : vector<1x256xi32> to vector<1x256xf32>
    %527 = vector.broadcast %526 : vector<1x256xf32> to vector<4x256xf32>
    %528 = arith.mulf %517, %527 : vector<4x256xf32>
    %c0_110 = arith.constant 0 : index
    %c0_111 = arith.constant 0 : index
    %529 = vector.load %arg22[%c0_110, %c0_111] : memref<3x36xf32, #tpu.memory_space<vmem>>, vector<3x36xf32>
    %530 = vector.extract_strided_slice %528 {offsets = [0, 239], sizes = [4, 17], strides = [1, 1]} : vector<4x256xf32> to vector<4x17xf32>
    %531 = vector.extract_strided_slice %528 {offsets = [0, 0], sizes = [4, 239], strides = [1, 1]} : vector<4x256xf32> to vector<4x239xf32>
    %532 = tpu.concatenate %530, %531 in 1 : vector<4x17xf32>, vector<4x239xf32> -> vector<4x256xf32>
    %533 = vector.extract_strided_slice %2 {offsets = [0, 0], sizes = [1, 256], strides = [1, 1]} : vector<9x256xf32> to vector<1x256xf32>
    %534 = vector.broadcast %533 : vector<1x256xf32> to vector<4x256xf32>
    %535 = arith.mulf %532, %534 : vector<4x256xf32>
    %536 = vector.extract_strided_slice %528 {offsets = [0, 240], sizes = [4, 16], strides = [1, 1]} : vector<4x256xf32> to vector<4x16xf32>
    %537 = vector.extract_strided_slice %528 {offsets = [0, 0], sizes = [4, 240], strides = [1, 1]} : vector<4x256xf32> to vector<4x240xf32>
    %538 = tpu.concatenate %536, %537 in 1 : vector<4x16xf32>, vector<4x240xf32> -> vector<4x256xf32>
    %539 = vector.extract_strided_slice %2 {offsets = [1, 0], sizes = [1, 256], strides = [1, 1]} : vector<9x256xf32> to vector<1x256xf32>
    %540 = vector.broadcast %539 : vector<1x256xf32> to vector<4x256xf32>
    %541 = arith.mulf %538, %540 : vector<4x256xf32>
    %542 = vector.extract_strided_slice %528 {offsets = [0, 241], sizes = [4, 15], strides = [1, 1]} : vector<4x256xf32> to vector<4x15xf32>
    %543 = vector.extract_strided_slice %528 {offsets = [0, 0], sizes = [4, 241], strides = [1, 1]} : vector<4x256xf32> to vector<4x241xf32>
    %544 = tpu.concatenate %542, %543 in 1 : vector<4x15xf32>, vector<4x241xf32> -> vector<4x256xf32>
    %545 = vector.extract_strided_slice %2 {offsets = [2, 0], sizes = [1, 256], strides = [1, 1]} : vector<9x256xf32> to vector<1x256xf32>
    %546 = vector.broadcast %545 : vector<1x256xf32> to vector<4x256xf32>
    %547 = arith.mulf %544, %546 : vector<4x256xf32>
    %548 = vector.extract_strided_slice %528 {offsets = [0, 255], sizes = [4, 1], strides = [1, 1]} : vector<4x256xf32> to vector<4x1xf32>
    %549 = vector.extract_strided_slice %528 {offsets = [0, 0], sizes = [4, 255], strides = [1, 1]} : vector<4x256xf32> to vector<4x255xf32>
    %550 = tpu.concatenate %548, %549 in 1 : vector<4x1xf32>, vector<4x255xf32> -> vector<4x256xf32>
    %551 = vector.extract_strided_slice %2 {offsets = [3, 0], sizes = [1, 256], strides = [1, 1]} : vector<9x256xf32> to vector<1x256xf32>
    %552 = vector.broadcast %551 : vector<1x256xf32> to vector<4x256xf32>
    %553 = arith.mulf %550, %552 : vector<4x256xf32>
    %554 = vector.extract_strided_slice %2 {offsets = [4, 0], sizes = [1, 256], strides = [1, 1]} : vector<9x256xf32> to vector<1x256xf32>
    %555 = vector.broadcast %554 : vector<1x256xf32> to vector<4x256xf32>
    %556 = arith.mulf %528, %555 : vector<4x256xf32>
    %557 = vector.extract_strided_slice %528 {offsets = [0, 1], sizes = [4, 255], strides = [1, 1]} : vector<4x256xf32> to vector<4x255xf32>
    %558 = vector.extract_strided_slice %528 {offsets = [0, 0], sizes = [4, 1], strides = [1, 1]} : vector<4x256xf32> to vector<4x1xf32>
    %559 = tpu.concatenate %557, %558 in 1 : vector<4x255xf32>, vector<4x1xf32> -> vector<4x256xf32>
    %560 = vector.extract_strided_slice %2 {offsets = [5, 0], sizes = [1, 256], strides = [1, 1]} : vector<9x256xf32> to vector<1x256xf32>
    %561 = vector.broadcast %560 : vector<1x256xf32> to vector<4x256xf32>
    %562 = arith.mulf %559, %561 : vector<4x256xf32>
    %563 = vector.extract_strided_slice %528 {offsets = [0, 15], sizes = [4, 241], strides = [1, 1]} : vector<4x256xf32> to vector<4x241xf32>
    %564 = vector.extract_strided_slice %528 {offsets = [0, 0], sizes = [4, 15], strides = [1, 1]} : vector<4x256xf32> to vector<4x15xf32>
    %565 = tpu.concatenate %563, %564 in 1 : vector<4x241xf32>, vector<4x15xf32> -> vector<4x256xf32>
    %566 = vector.extract_strided_slice %2 {offsets = [6, 0], sizes = [1, 256], strides = [1, 1]} : vector<9x256xf32> to vector<1x256xf32>
    %567 = vector.broadcast %566 : vector<1x256xf32> to vector<4x256xf32>
    %568 = arith.mulf %565, %567 : vector<4x256xf32>
    %569 = vector.extract_strided_slice %528 {offsets = [0, 16], sizes = [4, 240], strides = [1, 1]} : vector<4x256xf32> to vector<4x240xf32>
    %570 = vector.extract_strided_slice %528 {offsets = [0, 0], sizes = [4, 16], strides = [1, 1]} : vector<4x256xf32> to vector<4x16xf32>
    %571 = tpu.concatenate %569, %570 in 1 : vector<4x240xf32>, vector<4x16xf32> -> vector<4x256xf32>
    %572 = vector.extract_strided_slice %2 {offsets = [7, 0], sizes = [1, 256], strides = [1, 1]} : vector<9x256xf32> to vector<1x256xf32>
    %573 = vector.broadcast %572 : vector<1x256xf32> to vector<4x256xf32>
    %574 = arith.mulf %571, %573 : vector<4x256xf32>
    %575 = vector.extract_strided_slice %528 {offsets = [0, 17], sizes = [4, 239], strides = [1, 1]} : vector<4x256xf32> to vector<4x239xf32>
    %576 = vector.extract_strided_slice %528 {offsets = [0, 0], sizes = [4, 17], strides = [1, 1]} : vector<4x256xf32> to vector<4x17xf32>
    %577 = tpu.concatenate %575, %576 in 1 : vector<4x239xf32>, vector<4x17xf32> -> vector<4x256xf32>
    %578 = vector.extract_strided_slice %2 {offsets = [8, 0], sizes = [1, 256], strides = [1, 1]} : vector<9x256xf32> to vector<1x256xf32>
    %579 = vector.broadcast %578 : vector<1x256xf32> to vector<4x256xf32>
    %580 = arith.mulf %577, %579 : vector<4x256xf32>
    %581 = tpu.concatenate %535, %541, %547, %553, %556, %562, %568, %574, %580 in 0 : vector<4x256xf32>, vector<4x256xf32>, vector<4x256xf32>, vector<4x256xf32>, vector<4x256xf32>, vector<4x256xf32>, vector<4x256xf32>, vector<4x256xf32>, vector<4x256xf32> -> vector<36x256xf32>
    %cst_112 = arith.constant dense<0.000000e+00> : vector<3x256xf32>
    %582 = tpu.matmul %529, %581, %cst_112 {dimension_numbers = #tpu.dot_dimension_numbers<[1], [0], [0], [1], [0, 0, 1, 1], [], []>} : vector<3x36xf32>, vector<36x256xf32>, vector<3x256xf32> -> vector<3x256xf32>
    %c0_113 = arith.constant 0 : index
    %c0_114 = arith.constant 0 : index
    %c0_115 = arith.constant 0 : index
    %583 = vector.load %arg23[%c0_113, %c0_114, %c0_115] : memref<1x3x256xf32, #tpu.memory_space<vmem>>, vector<1x3x256xf32>
    %584 = vector.shape_cast %583 : vector<1x3x256xf32> to vector<3x256xf32>
    %585 = vector.shape_cast %582 : vector<3x256xf32> to vector<1x3x256xf32>
    tpu.vector_store %arg23[%c0_113, %c0_114, %c0_115], %585 {strides = array<i32>} : memref<1x3x256xf32, #tpu.memory_space<vmem>>, vector<1x3x256xf32>,
    return
  }
  func.func @transform_0(%arg0: i32) -> (i32, i32, i32) {
    %c0_i32 = arith.constant 0 : i32
    %c0_i32_0 = arith.constant 0 : i32
    %c0_i32_1 = arith.constant 0 : i32
    return %arg0, %c0_i32, %c0_i32_0 : i32, i32, i32
  }
  func.func @transform_1(%arg0: i32) -> (i32, i32) {
    %c0_i32 = arith.constant 0 : i32
    %c0_i32_0 = arith.constant 0 : i32
    %c0_i32_1 = arith.constant 0 : i32
    return %c0_i32, %c0_i32_0 : i32, i32
  }
  func.func @transform_2(%arg0: i32) -> (i32, i32) {
    %c0_i32 = arith.constant 0 : i32
    %c0_i32_0 = arith.constant 0 : i32
    %c0_i32_1 = arith.constant 0 : i32
    return %c0_i32, %c0_i32_0 : i32, i32
  }
  func.func @transform_3(%arg0: i32) -> (i32, i32) {
    %c0_i32 = arith.constant 0 : i32
    %c0_i32_0 = arith.constant 0 : i32
    %c0_i32_1 = arith.constant 0 : i32
    return %c0_i32, %c0_i32_0 : i32, i32
  }
  func.func @transform_4(%arg0: i32) -> (i32, i32) {
    %c0_i32 = arith.constant 0 : i32
    %c0_i32_0 = arith.constant 0 : i32
    %c0_i32_1 = arith.constant 0 : i32
    return %c0_i32, %c0_i32_0 : i32, i32
  }
  func.func @transform_5(%arg0: i32) -> (i32, i32) {
    %c0_i32 = arith.constant 0 : i32
    %c0_i32_0 = arith.constant 0 : i32
    %c0_i32_1 = arith.constant 0 : i32
    return %c0_i32, %c0_i32_0 : i32, i32
  }
  func.func @transform_6(%arg0: i32) -> (i32, i32, i32) {
    %c0_i32 = arith.constant 0 : i32
    %c0_i32_0 = arith.constant 0 : i32
    %c0_i32_1 = arith.constant 0 : i32
    %c0_i32_2 = arith.constant 0 : i32
    return %c0_i32, %c0_i32_0, %c0_i32_1 : i32, i32, i32
  }
  func.func @transform_7(%arg0: i32) -> (i32, i32, i32) {
    %c0_i32 = arith.constant 0 : i32
    %c0_i32_0 = arith.constant 0 : i32
    %c0_i32_1 = arith.constant 0 : i32
    %c0_i32_2 = arith.constant 0 : i32
    return %c0_i32, %c0_i32_0, %c0_i32_1 : i32, i32, i32
  }
  func.func @transform_8(%arg0: i32) -> (i32, i32) {
    %c0_i32 = arith.constant 0 : i32
    %c0_i32_0 = arith.constant 0 : i32
    %c0_i32_1 = arith.constant 0 : i32
    return %c0_i32, %c0_i32_0 : i32, i32
  }
  func.func @transform_9(%arg0: i32) -> (i32, i32) {
    %c0_i32 = arith.constant 0 : i32
    %c0_i32_0 = arith.constant 0 : i32
    %c0_i32_1 = arith.constant 0 : i32
    return %c0_i32, %c0_i32_0 : i32, i32
  }
  func.func @transform_10(%arg0: i32) -> (i32, i32) {
    %c0_i32 = arith.constant 0 : i32
    %c0_i32_0 = arith.constant 0 : i32
    %c0_i32_1 = arith.constant 0 : i32
    return %c0_i32, %c0_i32_0 : i32, i32
  }
  func.func @transform_11(%arg0: i32) -> (i32, i32) {
    %c0_i32 = arith.constant 0 : i32
    %c0_i32_0 = arith.constant 0 : i32
    %c0_i32_1 = arith.constant 0 : i32
    return %c0_i32, %c0_i32_0 : i32, i32
  }
  func.func @transform_12(%arg0: i32) -> (i32, i32) {
    %c0_i32 = arith.constant 0 : i32
    %c0_i32_0 = arith.constant 0 : i32
    %c0_i32_1 = arith.constant 0 : i32
    return %c0_i32, %c0_i32_0 : i32, i32
  }
  func.func @transform_13(%arg0: i32) -> (i32, i32) {
    %c0_i32 = arith.constant 0 : i32
    %c0_i32_0 = arith.constant 0 : i32
    %c0_i32_1 = arith.constant 0 : i32
    return %c0_i32, %c0_i32_0 : i32, i32
  }
  func.func @transform_14(%arg0: i32) -> (i32, i32) {
    %c0_i32 = arith.constant 0 : i32
    %c0_i32_0 = arith.constant 0 : i32
    %c0_i32_1 = arith.constant 0 : i32
    return %c0_i32, %c0_i32_0 : i32, i32
  }
  func.func @transform_15(%arg0: i32) -> (i32, i32) {
    %c0_i32 = arith.constant 0 : i32
    %c0_i32_0 = arith.constant 0 : i32
    %c0_i32_1 = arith.constant 0 : i32
    return %c0_i32, %c0_i32_0 : i32, i32
  }
  func.func @transform_16(%arg0: i32) -> (i32, i32) {
    %c0_i32 = arith.constant 0 : i32
    %c0_i32_0 = arith.constant 0 : i32
    %c0_i32_1 = arith.constant 0 : i32
    return %c0_i32, %c0_i32_0 : i32, i32
  }
  func.func @transform_17(%arg0: i32) -> (i32, i32) {
    %c0_i32 = arith.constant 0 : i32
    %c0_i32_0 = arith.constant 0 : i32
    %c0_i32_1 = arith.constant 0 : i32
    return %c0_i32, %c0_i32_0 : i32, i32
  }
  func.func @transform_18(%arg0: i32) -> (i32, i32) {
    %c0_i32 = arith.constant 0 : i32
    %c0_i32_0 = arith.constant 0 : i32
    %c0_i32_1 = arith.constant 0 : i32
    return %c0_i32, %c0_i32_0 : i32, i32
  }
  func.func @transform_19(%arg0: i32) -> (i32, i32) {
    %c0_i32 = arith.constant 0 : i32
    %c0_i32_0 = arith.constant 0 : i32
    %c0_i32_1 = arith.constant 0 : i32
    return %c0_i32, %c0_i32_0 : i32, i32
  }
  func.func @transform_20(%arg0: i32) -> (i32, i32) {
    %c0_i32 = arith.constant 0 : i32
    %c0_i32_0 = arith.constant 0 : i32
    %c0_i32_1 = arith.constant 0 : i32
    return %c0_i32, %c0_i32_0 : i32, i32
  }
  func.func @transform_21(%arg0: i32) -> (i32, i32) {
    %c0_i32 = arith.constant 0 : i32
    %c0_i32_0 = arith.constant 0 : i32
    %c0_i32_1 = arith.constant 0 : i32
    return %c0_i32, %c0_i32_0 : i32, i32
  }
  func.func @transform_22(%arg0: i32) -> (i32, i32, i32) {
    %c0_i32 = arith.constant 0 : i32
    %c0_i32_0 = arith.constant 0 : i32
    %c0_i32_1 = arith.constant 0 : i32
    return %arg0, %c0_i32, %c0_i32_0 : i32, i32, i32
  }
}

</mosaic_0001>

<bundles_post_ra>
// kernel: tpu_custom_call.1
= control target key start
LH: loop header
LB: loop body
LE: loop exit
PB: predicated region body
PF: predicated region fallthrough
CT: control target
= control target key end

     0   :  { %6 = vsyncpa [#allocation3], 0  ;;  %s121_s0 = inlined_call_operand.hbm [shape: f32[4,256], index: 0, kind: input, shape index: {}]   ;;  %s122_s1 = inlined_call_operand.hbm [shape: f32[4,256], index: 1, kind: output, shape index: {}]  }
   0x1   :  { %7 = vsyncpa [#allocation4], 0  ;;  %s102_s6 = smov [#allocation2]  }
   0x2   :  { %s14_s7 = sshll.u32 %s102_s6, 4  ;;  %s15_s7 = int_to_ptr.vmem [resolvable:$true] %s14_s7 }
   0x3   :  { %s66_s8 = scalar_lea.vmem %s15_s7, 128  ;;  %p71_p1 = scmp.lt.s32.totalorder %s15_s7, %s15_s7 }
   0x4   :  { %p67_p0 = scmp.ne.s32.totalorder %s15_s7, %s66_s8  ;;  %p72_p2 = scmp.lt.s32.totalorder %s66_s8, %s66_s8 }
   0x6   :  { %p73_p3 = por %p72_p2, %p71_p1 }
   0x8   :  { %p74_p4 = pnand %p73_p3, %p67_p0 }
   0xa   :  { %77 = shalt.err (!%p74_p4)
}
   0xb   :  { %17 = dma.hbm_to_vmem [thread:$0]  %s121_s0, 128, %s15_s7, [#allocation3]  }
   0xc   :  { %98 = dma.done.wait [#allocation3], 128  }
   0xd   :  { %99 = vsyncadd [#allocation3], 4294967168  ;;  %v21_v0 = vld [vmem:[#allocation2] sm:$0xff]  ;;  %s103_s11 = smov 1   ;;  %v29_v2 = vlaneseq  ;;  %s104_s12 = smov [#allocation5]  }
   0xe   :  { %25 = vrot.lane.b32.xlu0 %v21_v0, %s103_s11  ;;  %v23_v1 = vcombine.high %v21_v0, %v21_v0  ;;  %s45_s13 = sshll.u32 %s104_s12, 4  ;;  %s46_s13 = int_to_ptr.vmem [resolvable:$true] %s45_s13 }
   0xf   :  { %v30_v3 = vand.u32 127, %v29_v2  ;;  %s78_s0 = scalar_lea.vmem %s46_s13, 128  ;;  %p83_p6 = scmp.lt.s32.totalorder %s46_s13, %s46_s13 }
  0x10   :  { %p79_p5 = scmp.ne.s32.totalorder %s46_s13, %s78_s0  ;;  %p84_p7 = scmp.lt.s32.totalorder %s78_s0, %s78_s0 }
  0x11   :  { %vm31_vm0 = vcmp.lt.s32.totalorder %v30_v3, 1 }
  0x12   :  { %27 = vrot.lane.b32.xlu0 %v23_v1, %s103_s11  ;;  %p85_p8 = por %p84_p7, %p83_p6 }
  0x14   :  { %p86_p9 = pnand %p85_p8, %p79_p5 }
  0x80   :  { %v26_v4 = vpop.permute.xlu0 %25 }
  0x84   :  { %v28_v5 = vpop.permute.xlu0 %27 }
  0x85   :  { %v32_v6 = vsel %vm31_vm0, %v26_v4, %v28_v5  ;;  %v33_v7 = vsel %vm31_vm0, %v28_v5, %v26_v4 }
  0x86   :  { %v36_v8 = vcombine.low %v33_v7, %v32_v6 }
  0x88   :  { %38 = vst [vmem:[#allocation5] sm:$0xff] %v36_v8 }
  0x89   :  { %89 = shalt.err (!%p86_p9)
}
  0x8a   :  { %48 = dma.vmem_to_hbm [thread:$0]  %s46_s13, 128, %s122_s1, [#allocation4]  }
  0x8b   :  { %100 = dma.done.wait [#allocation4], 128  }
  0x8c   :  { %101 = vsyncadd [#allocation4], 4294967168 }
  0x8d   :  { %52 = vsyncpa [#allocation3], 1 }
  0x8e   :  { %53 = vsyncpa [#allocation4], 1 }

// kernel: _net_forward_impl.1
= control target key start
LH: loop header
LB: loop body
LE: loop exit
PB: predicated region body
PF: predicated region fallthrough
CT: control target
= control target key end

     0   :  { %s5438_s0 = inlined_call_operand.vmem [shape: f32[2,4,256], index: 0, kind: input, shape index: {}]   ;;  %s5439_s1 = inlined_call_operand.vmem [shape: f32[9,256], index: 1, kind: input, shape index: {}]   ;;  %s5440_s2 = inlined_call_operand.vmem [shape: f32[9,64], index: 2, kind: input, shape index: {}]   ;;  %s5441_s3 = inlined_call_operand.vmem [shape: f32[9,16], index: 3, kind: input, shape index: {}]   ;;  %s5442_s4 = inlined_call_operand.vmem [shape: f32[256,64], index: 4, kind: input, shape index: {}]   ;;  %s5443_s5 = inlined_call_operand.vmem [shape: f32[64,16], index: 5, kind: input, shape index: {}]   ;;  %s5444_s6 = inlined_call_operand.vmem [shape: f32[4,16,64], index: 6, kind: input, shape index: {}]   ;;  %s5445_s7 = inlined_call_operand.vmem [shape: f32[4,64,256], index: 7, kind: input, shape index: {}]   ;;  %s5446_s8 = inlined_call_operand.vmem [shape: f32[4,36], index: 8, kind: input, shape index: {}]   ;;  %s5447_s9 = inlined_call_operand.vmem [shape: f32[4,36], index: 9, kind: input, shape index: {}]   ;;  %s5448_s10 = inlined_call_operand.vmem [shape: f32[4,36], index: 10, kind: input, shape index: {}]   ;;  %s5449_s11 = inlined_call_operand.vmem [shape: f32[4,36], index: 11, kind: input, shape index: {}]   ;;  %s5450_s12 = inlined_call_operand.vmem [shape: f32[4,36], index: 12, kind: input, shape index: {}]   ;;  %s5451_s13 = inlined_call_operand.vmem [shape: f32[16,4], index: 13, kind: input, shape index: {}]   ;;  %s5452_s14 = inlined_call_operand.vmem [shape: f32[4,36], index: 14, kind: input, shape index: {}]   ;;  %s5453_s15 = inlined_call_operand.vmem [shape: f32[4,36], index: 15, kind: input, shape index: {}]   ;;  %s5454_s16 = inlined_call_operand.vmem [shape: f32[4,1], index: 16, kind: input, shape index: {}]   ;;  %s5455_s17 = inlined_call_operand.vmem [shape: f32[16,4], index: 17, kind: input, shape index: {}]   ;;  %s5456_s18 = inlined_call_operand.vmem [shape: f32[4,36], index: 18, kind: input, shape index: {}]   ;;  %s5457_s19 = inlined_call_operand.vmem [shape: f32[4,36], index: 19, kind: input, shape index: {}]   ;;  %s5458_s20 = inlined_call_operand.vmem [shape: f32[4,1], index: 20, kind: input, shape index: {}]   ;;  %s5459_s21 = inlined_call_operand.vmem [shape: f32[3,36], index: 21, kind: input, shape index: {}]   ;;  %s5460_s22 = inlined_call_operand.vmem [shape: f32[2,3,256], index: 22, kind: output, shape index: {}]  }
   0x1   :  { %5534 = sst [smem:[#allocation8_spill]] %s5438_s0 }
   0x2   :  { %5535 = sst [smem:[#allocation9_spill]] %s5439_s1 }
   0x3   :  { %5536 = sst [smem:[#allocation10_spill]] %s5440_s2 }
   0x4   :  { %5537 = sst [smem:[#allocation11_spill]] %s5441_s3  ;;  %s4253_s3 = smov 0  }
   0x5   :  { %5538 = sst [smem:[#allocation12_spill]] %s5442_s4 }
   0x6   :  { %5539 = sst [smem:[#allocation13_spill]] %s5443_s5 }
   0x7   :  { %5540 = sst [smem:[#allocation14_spill]] %s5444_s6 }
   0x8   :  { %5541 = sst [smem:[#allocation15_spill]] %s5445_s7 }
   0x9   :  { %5542 = sst [smem:[#allocation16_spill]] %s5446_s8 }
   0xa   :  { %5543 = sst [smem:[#allocation17_spill]] %s5447_s9 }
   0xb   :  { %5544 = sst [smem:[#allocation18_spill]] %s5448_s10 }
   0xc   :  { %5545 = sst [smem:[#allocation19_spill]] %s5449_s11 }
   0xd   :  { %5546 = sst [smem:[#allocation20_spill]] %s5456_s18 }
   0xe   :  { %5547 = sst [smem:[#allocation21_spill]] %s5457_s19 }
   0xf   :  { %5548 = sst [smem:[#allocation22_spill]] %s5458_s20 }
  0x10   :  { %5549 = sst [smem:[#allocation23_spill]] %s5459_s21 }
  0x11   :  { %5550 = sst [smem:[#allocation24_spill]] %s5460_s22 }
  0x12 LB: > { %5551 = sst [smem:[#allocation2_spill]] %s4099_s3  ;;  %s3680_s28 = sadd.s32 4294967295, %s4099_s3   ;;  %s4099_s3 = sphi %s4253_s3, %s32_s3  }
  0x13   : > { %p3684_p0 = scmp.ge.s32.totalorder %s4099_s3, 1  ;;  %p612_p1 = scmp.lt.s32.totalorder %s4099_s3, 3 }
  0x15   : > { %p613_p2 = pnand %p3684_p0, %p612_p1 }
  0x17   : > { %616 = sbr.rel (%p613_p2) target bundleno = 4217 (0x1079), region = 108 }
  0x1c   : > { %p674_p3 = scmp.lt.s32.totalorder %s3680_s28, 1  ;;  %s5553_s0 = sld [smem:[#allocation8_spill]]  ;;  %v4107_v2 = vmov 0.0   ;;  %v706_v3 = vlaneseq  ;;  %vm5523_vm0 = vcmask 908288   ;;  %vm896_vm1 = vcmask 1043456  }
  0x1d   : > { %s5470_s1 = smov 111   ;;  %s5468_s5 = smov 112   ;;  %979 = vmatprep.mubr.f32.mxu0 %v4107_v2  ;;  %1196 = vmatprep.mubr.f32.mxu1 %v4107_v2  ;;  %vm5508_vm2 = vcmask 1039360   ;;  %vm5520_vm3 = vcmask 916480   ;;  %vm5507_vm4 = vcmask 924672   ;;  %vm761_vm5 = vcmask 7168  }
  0x1e   : > { %s5630_s28 = smov (!%p674_p3, %s3680_s28), 1  ;;  %s5474_s24 = smov 127   ;;  %v4299_v4 = vshrl.u32 %v706_v3, 7  ;;  %vm721_vm6 = vcmask 130048   ;;  %vm741_vm7 = vcmask 121856   ;;  %vm5506_vm8 = vcmask 138240  }
  0x1f   : > { %5552 = sst [smem:[#allocation3_spill]] %s5630_s28  ;;  %s5467_s29 = sshll.u32 %s5630_s28, 3  ;;  %vm905_vm9 = vcmask 293888   ;;  %vm4120_vm13 = vmmov 0   ;;  %vm1414_vm14 = vcmask 449536   ;;  %vm1401_vm15 = vcmask 457728  }
  0x20   : > { %s5480_s6 = smov 113   ;;  %s5472_s25 = smov 1   ;;  %v4302_v5 = vsub.s32 4, %v4299_v4  ;;  %v4323_v12 = vsub.s32 5, %v4299_v4  ;;  %v4326_v13 = vsub.s32 7, %v4299_v4  ;;  %v4339_v18 = vsub.s32 6, %v4299_v4 }
  0x21   : > { %s5478_s26 = smov 16   ;;  %s5482_s2 = smov 15   ;;  %v4383_v43 = vsub.s32 3, %v4299_v4  ;;  %v4400_v59 = vsub.s32 1, %v4299_v4  ;;  %v4406_v63 = vsub.s32 2, %v4299_v4 }
  0x22   : > { %s678_s23 = scalar_lea.vmem %s5553_s0, %s5467_s29  ;;  %s5476_s27 = smov 17  }
  0x23   : > { %v4269_v0 = vld [vmem:[%s678_s23] sm:$0xff]  ;;  %s5554_s0 = sld [smem:[#allocation9_spill]]  ;;  %s5500_s23 = smov 120  }
  0x24   : > { %849 = vrot.lane.b32.xlu1 %v4269_v0, %s5470_s1  ;;  %829 = vrot.lane.b32.xlu0 %v4269_v0, %s5468_s5  ;;  %v695_v1 = vcombine.high %v4269_v0, %v4269_v0  ;;  %s5559_s8 = sld [smem:[#allocation16_spill]]  ;;  %s5564_s30 = smov 1  }
  0x25   : > { %s5560_s29 = sld [smem:[#allocation12_spill]]  ;;  %s5490_s4 = smov 65  }
  0x26   : > { %s5562_s9 = sld [smem:[#allocation17_spill]]  ;;  %s5579_s3 = smov 73  }
  0x27   : > { %s5566_s10 = sld [smem:[#allocation18_spill]]  ;;  %s4127_s21 = smov 11  }
  0x28   : > { %789 = vrot.lane.b32.xlu0 %v4269_v0, %s5474_s24  ;;  %851 = vrot.lane.b32.xlu1 %v695_v1, %s5470_s1  ;;  %s5580_s11 = sld [smem:[#allocation19_spill]]  ;;  %s4128_s22 = smov 123  }
  0x29   : > { %v4307_v6 = vld [vmem:[%s5554_s0] sm:$0xff]  ;;  %v4312_v7 = vld [vmem:[%s5554_s0 + $0x8] sm:$0xff]  ;;  %v4331_v14 = vld [vmem:[%s5554_s0 + $0x18] ss:$0 sm:$0xff]  ;;  %s5582_s18 = smov 15   ;;  %s4129_s28 = smov 13  }
  0x2a   : > { %v4316_v10 = vrot.slane %v4307_v6, %v4302_v5  ;;  %v4320_v11 = vrot.slane %v4312_v7, %v4302_v5  ;;  %v4336_v15 = vld [vmem:[%s5554_s0 + $0x10] ss:$0 sm:$0xff]  ;;  %v4347_v22 = vrot.slane %v4312_v7, %v4323_v12  ;;  %v4352_v24 = vrot.slane %v4307_v6, %v4326_v13  ;;  %s5581_s0 = sld [smem:[#allocation13_spill]]  ;;  %s4130_s20 = smov 125  }
  0x2b   : > { %v4356_v25 = vrot.slane %v4312_v7, %v4326_v13  ;;  %v4361_v27 = vrot.slane %v4307_v6, %v4323_v12  ;;  %v4366_v30 = vrot.slane %v4307_v6, %v4339_v18  ;;  %v4379_v39 = vrot.slane %v4312_v7, %v4339_v18  ;;  %s4131_s19 = smov 4   ;;  %s5584_s7 = sld [smem:[#allocation11_spill]] }
  0x2c   : > { %791 = vrot.lane.b32.xlu1 %v695_v1, %s5474_s24  ;;  %831 = vrot.lane.b32.xlu0 %v695_v1, %s5468_s5  ;;  %v786_v19 = vcombine.low %v4316_v10, %v4320_v11  ;;  %v4393_v57 = vrot.slane %v4307_v6, %v4383_v43  ;;  %v4397_v58 = vrot.slane %v4312_v7, %v4383_v43 }
  0x2e   : > { %v788_v31 = vmul.f32 %v786_v19, %v4269_v0  ;;  %v4420_v19 = vrot.slane %v4312_v7, %v4400_v59 }
  0x30   : > { %811 = vrot.lane.b32.xlu1 %v695_v1, %s5480_s6  ;;  %809 = vrot.lane.b32.xlu0 %v4269_v0, %s5480_s6  ;;  %v882_v47 = vcombine.high %v788_v31, %v788_v31 }
  0x34   : > { %759 = vrot.lane.b32.xlu1 %v4269_v0, %s5472_s25  ;;  %756 = vrot.lane.b32.xlu0 %v695_v1, %s5472_s25 }
  0x38   : > { %719 = vrot.lane.b32.xlu1 %v4269_v0, %s5478_s26  ;;  %716 = vrot.lane.b32.xlu0 %v695_v1, %s5478_s26 }
  0x3c   : > { %739 = vrot.lane.b32.xlu1 %v4269_v0, %s5482_s2  ;;  %736 = vrot.lane.b32.xlu0 %v695_v1, %s5482_s2 }
  0x40   : > { %699 = vrot.lane.b32.xlu1 %v4269_v0, %s5476_s27  ;;  %696 = vrot.lane.b32.xlu0 %v695_v1, %s5476_s27  ;;  %s5561_s27 = smov 17  }
  0x96   : > { %v850_v8 = vpop.permute.xlu1 %849  ;;  %v830_v9 = vpop.permute.xlu0 %829 }
  0x9a   : > { %v790_v16 = vpop.permute.xlu0 %789  ;;  %v852_v17 = vpop.permute.xlu1 %851 }
  0x9b   : > { %v854_v20 = vsel %vm5523_vm0, %v850_v8, %v852_v17  ;;  %v858_v21 = vsel %vm5523_vm0, %v852_v17, %v850_v8  ;;  %v4410_v8 = vsub.s32 0, %v4299_v4  ;;  %v4416_v17 = vrot.slane %v4307_v6, %v4400_v59 }
  0x9c   : > { %v868_v23 = vmul.f32 %v4331_v14, %v858_v21  ;;  %v867_v26 = vmul.f32 %v4336_v15, %v854_v20  ;;  %v4424_v20 = vrot.slane %v4307_v6, %v4406_v63  ;;  %v4428_v4 = vrot.slane %v4312_v7, %v4406_v63 }
  0x9e   : > { %3691 = vmatprep.subr.msk.mxu0 %vm896_vm1, %v868_v23  ;;  %v792_v28 = vpop.permute.xlu1 %791  ;;  %v832_v29 = vpop.permute.xlu0 %831  ;;  %5555 = vst [vmem:[#allocation4_spill] sm:$0xff] %v4424_v20  ;;  %5556 = vst [vmem:[#allocation5_spill] sm:$0xff] %v4428_v4 }
  0x9f   : > { %v794_v32 = vsel %vm5508_vm2, %v790_v16, %v792_v28  ;;  %v798_v33 = vsel %vm5508_vm2, %v792_v28, %v790_v16  ;;  %v834_v34 = vsel %vm5520_vm3, %v830_v9, %v832_v29  ;;  %v838_v35 = vsel %vm5520_vm3, %v832_v29, %v830_v9  ;;  %3692 = vmatpush1.msk.msra.mxu0 %vm896_vm1, %v867_v26 }
  0xa0   : > { %v808_v36 = vmul.f32 %v4347_v22, %v798_v33  ;;  %v847_v37 = vmul.f32 %v4352_v24, %v834_v34  ;;  %v848_v38 = vmul.f32 %v4356_v25, %v838_v35  ;;  %v807_v40 = vmul.f32 %v4361_v27, %v794_v32 }
  0xa1   : > { %v4434_v29 = vrot.slane %v4307_v6, %v4410_v8 }
  0xa2   : > { %v812_v41 = vpop.permute.xlu1 %811  ;;  %v810_v42 = vpop.permute.xlu0 %809  ;;  %v887_v44 = vrot.slane %v808_v36, 4  ;;  %v892_v48 = vrot.slane %v847_v37, 4  ;;  %v893_v49 = vrot.slane %v848_v38, 4  ;;  %v886_v52 = vrot.slane %v807_v40, 4 }
  0xa3   : > { %v814_v45 = vsel %vm5507_vm4, %v810_v42, %v812_v41  ;;  %v818_v46 = vsel %vm5507_vm4, %v812_v41, %v810_v42  ;;  %5557 = vst [vmem:[#allocation6_spill] sm:$0xff] %v4434_v29 }
  0xa4   : > { %v827_v50 = vmul.f32 %v4366_v30, %v814_v45  ;;  %v828_v51 = vmul.f32 %v4379_v39, %v818_v46  ;;  %v902_v62 = vsel %vm896_vm1, %v882_v47, %v887_v44  ;;  %v901_v0 = vsel %vm896_vm1, %v788_v31, %v886_v52  ;;  %v693_v52 = vld [vmem:[%s5559_s8] sm:$0xf]  ;;  %s5573_s8 = smov 65  }
  0xa5   : > { %v4438_v31 = vrot.slane %v4312_v7, %v4410_v8 }
  0xa6   : > { %v760_v53 = vpop.permute.xlu1 %759  ;;  %v757_v54 = vpop.permute.xlu0 %756  ;;  %v904_v55 = vsel %vm896_vm1, %v828_v51, %v893_v49  ;;  %v903_v56 = vsel %vm896_vm1, %v827_v50, %v892_v48 }
  0xa7   : > { %939 = vmatprep.subr.mxu0 %v904_v55  ;;  %v762_v60 = vsel %vm761_vm5, %v760_v53, %v757_v54  ;;  %v765_v61 = vsel %vm761_vm5, %v757_v54, %v760_v53  ;;  %5558 = vst [vmem:[#allocation7_spill] sm:$0xff] %v4438_v31 }
  0xa8   : > { %940 = vmatpush1.msra.mxu0 %v903_v56  ;;  %v774_v9 = vmul.f32 %v4393_v57, %v765_v61  ;;  %v775_v16 = vmul.f32 %v4397_v58, %v762_v60 }
  0xa9   : > { %941 = vmatprep.subr.mxu0 %v902_v62 }
  0xaa   : > { %v720_v1 = vpop.permute.xlu1 %719  ;;  %942 = vmatpush1.msra.mxu0 %v901_v0  ;;  %v717_v3 = vpop.permute.xlu0 %716  ;;  %v877_v32 = vrot.slane %v774_v9, 4  ;;  %v878_v33 = vrot.slane %v775_v16, 4 }
  0xab   : > { %v722_v21 = vsel %vm721_vm6, %v720_v1, %v717_v3  ;;  %v725_v23 = vsel %vm721_vm6, %v717_v3, %v720_v1 }
  0xac   : > { %v734_v36 = vmul.f32 %v4416_v17, %v725_v23  ;;  %v735_v37 = vmul.f32 %v4420_v19, %v722_v21  ;;  %v1234_v21 = vld [vmem:[%s5560_s29 + $0xf8] sm:$0xff] }
  0xad   : > { %v1218_v23 = vld [vmem:[%s5560_s29 + $0x78] sm:$0xff] }
  0xae   : > { %v740_v26 = vpop.permute.xlu1 %739  ;;  %v737_v28 = vpop.permute.xlu0 %736  ;;  %v871_v46 = vrot.slane %v734_v36, 4  ;;  %v872_v47 = vrot.slane %v735_v37, 4  ;;  %v1230_v36 = vld [vmem:[%s5560_s29 + $0xd8] sm:$0xff] }
  0xaf   : > { %v742_v34 = vsel %vm741_vm7, %v740_v26, %v737_v28  ;;  %v745_v35 = vsel %vm741_vm7, %v737_v28, %v740_v26  ;;  %v1233_v26 = vld [vmem:[%s5560_s29 + $0xf0] sm:$0xff]  ;;  %v1214_v37 = vld [vmem:[%s5560_s29 + $0x58] sm:$0xff] }
  0xb0   : > { %v754_v38 = vmul.f32 %v4424_v20, %v745_v35  ;;  %v755_v40 = vmul.f32 %v4428_v4, %v742_v34  ;;  %v1217_v28 = vld [vmem:[%s5560_s29 + $0x70] sm:$0xff]  ;;  %v1231_v34 = vld [vmem:[%s5560_s29 + $0xe0] sm:$0xff] }
  0xb1   : > { %v1215_v35 = vld [vmem:[%s5560_s29 + $0x60] sm:$0xff] }
  0xb2   : > { %v700_v6 = vpop.permute.xlu1 %699  ;;  %v697_v41 = vpop.permute.xlu0 %696  ;;  %v900_v42 = vsel %vm896_vm1, %v755_v40, %v878_v33  ;;  %v899_v7 = vsel %vm896_vm1, %v754_v38, %v877_v32  ;;  %v1232_v32 = vld [vmem:[%s5560_s29 + $0xe8] sm:$0xff]  ;;  %v1229_v38 = vld [vmem:[%s5560_s29 + $0xd0] sm:$0xff] }
  0xb3   : > { %v702_v44 = vsel %vm5506_vm8, %v700_v6, %v697_v41  ;;  %v705_v45 = vsel %vm5506_vm8, %v697_v41, %v700_v6  ;;  %943 = vmatprep.subr.mxu0 %v900_v42  ;;  %v1216_v33 = vld [vmem:[%s5560_s29 + $0x68] sm:$0xff]  ;;  %v1213_v40 = vld [vmem:[%s5560_s29 + $0x50] sm:$0xff]  ;;  %v1227_v42 = vld [vmem:[%s5560_s29 + $0xc0] sm:$0xff] }
  0xb4   : > { %v714_v48 = vmul.f32 %v4434_v29, %v705_v45  ;;  %v715_v49 = vmul.f32 %v4438_v31, %v702_v44  ;;  %944 = vmatpush1.msra.mxu0 %v899_v7  ;;  %v1228_v6 = vld [vmem:[%s5560_s29 + $0xc8] sm:$0xff]  ;;  %v1211_v7 = vld [vmem:[%s5560_s29 + $0x40] sm:$0xff]  ;;  %v1226_v44 = vld [vmem:[%s5560_s29 + $0xb8] sm:$0xff] }
  0xb5   : > { %v1212_v41 = vld [vmem:[%s5560_s29 + $0x48] sm:$0xff]  ;;  %v1210_v45 = vld [vmem:[%s5560_s29 + $0x38] sm:$0xff] }
  0xb6   : > { %v898_v50 = vsel %vm896_vm1, %v715_v49, %v872_v47  ;;  %v897_v51 = vsel %vm896_vm1, %v714_v48, %v871_v46  ;;  %v1225_v46 = vld [vmem:[%s5560_s29 + $0xb0] sm:$0xff]  ;;  %v1224_v48 = vld [vmem:[%s5560_s29 + $0xa8] sm:$0xff] }
  0xb7   : > { %945 = vmatprep.subr.mxu0 %v898_v50  ;;  %v1209_v47 = vld [vmem:[%s5560_s29 + $0x30] sm:$0xff]  ;;  %v1208_v49 = vld [vmem:[%s5560_s29 + $0x28] sm:$0xff]  ;;  %v1223_v50 = vld [vmem:[%s5560_s29 + $0xa0] sm:$0xff] }
  0xb8   : > { %946 = vmatpush1.msra.mxu0 %v897_v51  ;;  %v1207_v51 = vld [vmem:[%s5560_s29 + $0x20] sm:$0xff] }
  0xb9   : > { %3693 = vmatmul.mubr.msk.f32.vlgmr.msra.gmra.mxu0 %vm905_vm9, %v693_v52  ;;  %3806 = vmatprep.subr.mxu0 %v1234_v21  ;;  %v1222_v52 = vld [vmem:[%s5560_s29 + $0x98] sm:$0xff] }
  0xba   : > { %3807 = vmatpush3.msra.mxu0 %v1218_v23 }
  0xbb   : > { %3808 = vmatprep.subr.mxu0 %v1233_v26 }
  0xbc   : > { %3809 = vmatpush3.msra.mxu0 %v1217_v28 }
  0xbd   : > { %3810 = vmatprep.subr.mxu0 %v1232_v32 }
  0xbe   : > { %3811 = vmatpush3.msra.mxu0 %v1216_v33 }
  0xbf   : > { %3812 = vmatprep.subr.mxu0 %v1231_v34 }
  0xc0   : > { %3813 = vmatpush3.msra.mxu0 %v1215_v35 }
  0xc1   : > { %3814 = vmatprep.subr.mxu0 %v1230_v36 }
  0xc2   : > { %3815 = vmatpush3.msra.mxu0 %v1214_v37 }
  0xc3   : > { %3816 = vmatprep.subr.mxu0 %v1229_v38 }
  0xc4   : > { %3817 = vmatpush3.msra.mxu0 %v1213_v40 }
  0xc5   : > { %3818 = vmatprep.subr.mxu0 %v1228_v6 }
  0xc6   : > { %3819 = vmatpush3.msra.mxu0 %v1212_v41 }
  0xc7   : > { %3820 = vmatprep.subr.mxu0 %v1227_v42 }
  0xc8   : > { %3821 = vmatpush3.msra.mxu0 %v1211_v7 }
  0xc9   : > { %3822 = vmatprep.subr.mxu0 %v1226_v44 }
  0xca   : > { %3823 = vmatpush3.msra.mxu0 %v1210_v45 }
  0xcb   : > { %3824 = vmatprep.subr.mxu0 %v1225_v46 }
  0xcc   : > { %3825 = vmatpush3.msra.mxu0 %v1209_v47 }
  0xcd   : > { %3826 = vmatprep.subr.mxu0 %v1224_v48 }
  0xce   : > { %3827 = vmatpush3.msra.mxu0 %v1208_v49 }
  0xcf   : > { %3828 = vmatprep.subr.mxu0 %v1223_v50 }
  0xd0   : > { %3829 = vmatpush3.msra.mxu0 %v1207_v51 }
  0xd1   : > { %3830 = vmatprep.subr.mxu0 %v1222_v52 }
 0x179   : > { %v981_v53 = vpop.f32.mrf.mxu0 }
 0x17a   : > { %v988_v54 = vmin.f32 %v981_v53, 0.0  ;;  %vm986_vm10 = vcmp.gt.f32.partialorder %v981_v53, 0.0 }
 0x17b   : > { %v983_v55 = vpop.f32.mrf.mxu0 }
 0x17c   : > { %v990_v56 = vmul.f32 1.442695, %v988_v54  ;;  %v989_v60 = vmin.f32 %v983_v55, 0.0  ;;  %vm987_vm11 = vcmp.gt.f32.partialorder %v983_v55, 0.0  ;;  %v1221_v54 = vld [vmem:[%s5560_s29 + $0x90] sm:$0xff] }
 0x17e   : > { %4067 = vpow2.f32 %v990_v56  ;;  %v992_v61 = vmul.f32 1.442695, %v989_v60 }
 0x180   : > { %4069 = vpow2.f32 %v992_v61 }
 0x18b   : > { %v4068_v62 = vpop.eup %4067 }
 0x18c   : > { %v3694_v0 = vadd.f32 -1.0, %v4068_v62 }
 0x18d   : > { %v4070_v3 = vpop.eup %4069 }
 0x18e   : > { %v4458_v1 = vsel %vm986_vm10, %v981_v53, %v3694_v0  ;;  %v3695_v9 = vadd.f32 -1.0, %v4070_v3  ;;  %v1206_v53 = vld [vmem:[%s5560_s29 + $0x18] sm:$0xff]  ;;  %vm1375_vm10 = vcmask 515072  }
 0x18f   : > { %1036 = vrot.lane.b32.xlu1 %v4458_v1, %s5472_s25  ;;  %1068 = vrot.lane.b32.xlu0 %v4458_v1, %s5468_s5 }
 0x190   : > { %v4468_v16 = vsel %vm987_vm11, %v983_v55, %v3695_v9  ;;  %v1205_v55 = vld [vmem:[%s5560_s29 + $0x10] sm:$0xff]  ;;  %3831 = vmatpush3.msra.mxu0 %v1206_v53  ;;  %vm1388_vm11 = vcmask 465920  }
 0x191   : > { %3832 = vmatprep.subr.mxu0 %v1221_v54 }
 0x192   : > { %3833 = vmatpush3.msra.mxu0 %v1205_v55 }
 0x193   : > { %1014 = vrot.lane.b32.xlu1 %v4458_v1, %s5478_s26  ;;  %1079 = vrot.lane.b32.xlu0 %v4458_v1, %s5470_s1 }
 0x197   : > { %1046 = vrot.lane.b32.xlu0 %v4458_v1, %s5474_s24  ;;  %1070 = vrot.lane.b32.xlu1 %v4468_v16, %s5468_s5  ;;  %s5498_s5 = smov 55  }
 0x19b   : > { %1057 = vrot.lane.b32.xlu0 %v4458_v1, %s5480_s6  ;;  %1081 = vrot.lane.b32.xlu1 %v4468_v16, %s5470_s1  ;;  %s5484_s1 = smov 119  }
 0x19f   : > { %1033 = vrot.lane.b32.xlu0 %v4468_v16, %s5472_s25  ;;  %1048 = vrot.lane.b32.xlu1 %v4468_v16, %s5474_s24  ;;  %s5486_s25 = smov 63   ;;  %s5563_s24 = smov 127  }
 0x1a3   : > { %1011 = vrot.lane.b32.xlu0 %v4468_v16, %s5478_s26  ;;  %1059 = vrot.lane.b32.xlu1 %v4468_v16, %s5480_s6  ;;  %s5513_s26 = smov 56   ;;  %s5496_s6 = smov 57  }
 0x1a7   : > { %1022 = vrot.lane.b32.xlu0 %v4468_v16, %s5482_s2  ;;  %1025 = vrot.lane.b32.xlu1 %v4458_v1, %s5482_s2  ;;  %s5488_s2 = smov 121  }
 0x1ab   : > { %999 = vrot.lane.b32.xlu0 %v4468_v16, %s5561_s27  ;;  %1003 = vrot.lane.b32.xlu1 %v4458_v1, %s5561_s27  ;;  %s4126_s27 = smov 124  }
 0x201   : > { %v1037_v56 = vpop.permute.xlu1 %1036  ;;  %v1069_v60 = vpop.permute.xlu0 %1068 }
 0x205   : > { %v1015_v61 = vpop.permute.xlu1 %1014  ;;  %v1080_v62 = vpop.permute.xlu0 %1079 }
 0x209   : > { %v1047_v0 = vpop.permute.xlu0 %1046  ;;  %v1071_v3 = vpop.permute.xlu1 %1070 }
 0x20a   : > { %v1072_v23 = vsel %vm5520_vm3, %v1069_v60, %v1071_v3  ;;  %v1076_v32 = vsel %vm5520_vm3, %v1071_v3, %v1069_v60  ;;  %v1044_v60 = vmul.f32 %v4458_v1, %v4316_v10 }
 0x20b   : > { %v1077_v35 = vmul.f32 %v1072_v23, %v4352_v24  ;;  %v1078_v38 = vmul.f32 %v1076_v32, %v4356_v25  ;;  %v1045_v23 = vmul.f32 %v4468_v16, %v4320_v11 }
 0x20d   : > { %v1058_v9 = vpop.permute.xlu0 %1057  ;;  %v1082_v21 = vpop.permute.xlu1 %1081  ;;  %v1110_v7 = vrot.slane %v1077_v35, 4  ;;  %v1111_v47 = vrot.slane %v1078_v38, 4 }
 0x20e   : > { %v1083_v26 = vsel %vm5523_vm0, %v1080_v62, %v1082_v21  ;;  %v1087_v28 = vsel %vm5523_vm0, %v1082_v21, %v1080_v62  ;;  %vm1855_vm0 = vcmask 97280  }
 0x20f   : > { %v4583_v33 = vmul.f32 %v4331_v14, %v1087_v28  ;;  %v4586_v34 = vmul.f32 %v4336_v15, %v1083_v26 }
 0x211   : > { %v1034_v36 = vpop.permute.xlu0 %1033  ;;  %3696 = vmatprep.subr.msk.mxu1 %vm896_vm1, %v4583_v33  ;;  %v1049_v37 = vpop.permute.xlu1 %1048 }
 0x212   : > { %v1041_v40 = vsel %vm761_vm5, %v1034_v36, %v1037_v56  ;;  %v1050_v6 = vsel %vm5508_vm2, %v1047_v0, %v1049_v37  ;;  %v1054_v41 = vsel %vm5508_vm2, %v1049_v37, %v1047_v0  ;;  %3697 = vmatpush1.msk.msra.mxu1 %vm896_vm1, %v4586_v34  ;;  %v1038_v14 = vsel %vm761_vm5, %v1037_v56, %v1034_v36 }
 0x213   : > { %v1056_v15 = vmul.f32 %v1054_v41, %v4347_v22  ;;  %v1055_v42 = vmul.f32 %v1050_v6, %v4361_v27  ;;  %v1042_v44 = vmul.f32 %v1041_v40, %v4393_v57  ;;  %v1043_v48 = vmul.f32 %v1038_v14, %v4397_v58 }
 0x215   : > { %v1012_v45 = vpop.permute.xlu0 %1011  ;;  %v1060_v46 = vpop.permute.xlu1 %1059  ;;  %v1105_v51 = vrot.slane %v1056_v15, 4  ;;  %v1104_v55 = vrot.slane %v1055_v42, 4  ;;  %v1098_v62 = vrot.slane %v1042_v44, 4  ;;  %v1099_v26 = vrot.slane %v1043_v48, 4  ;;  %v1122_v48 = vld [vmem:[%s5562_s9] sm:$0xf] }
 0x216   : > { %v1061_v49 = vsel %vm5507_vm4, %v1058_v9, %v1060_v46  ;;  %v1065_v50 = vsel %vm5507_vm4, %v1060_v46, %v1058_v9  ;;  %v1019_v52 = vsel %vm721_vm6, %v1012_v45, %v1015_v61  ;;  %v1016_v56 = vsel %vm721_vm6, %v1015_v61, %v1012_v45  ;;  %s5574_s9 = smov 8  }
 0x217   : > { %v1066_v53 = vmul.f32 %v1061_v49, %v4366_v30  ;;  %v1067_v54 = vmul.f32 %v1065_v50, %v4379_v39  ;;  %v1020_v28 = vmul.f32 %v1019_v52, %v4416_v17  ;;  %v1021_v1 = vmul.f32 %v1016_v56, %v4420_v19  ;;  %v1220_v49 = vld [vmem:[%s5560_s29 + $0x88] sm:$0xff]  ;;  %v1203_v52 = vld [vmem:[%s5560_s29] sm:$0xff] }
 0x218   : > { %v4627_v37 = vsel %vm896_vm1, %v1045_v23, %v1105_v51  ;;  %v4631_v16 = vsel %vm896_vm1, %v1044_v60, %v1104_v55  ;;  %v1204_v50 = vld [vmem:[%s5560_s29 + $0x8] sm:$0xff]  ;;  %3834 = vmatprep.subr.mxu0 %v1220_v49  ;;  %v1219_v51 = vld [vmem:[%s5560_s29 + $0x80] sm:$0xff]  ;;  %vm1319_vm4 = vcmask 72704   ;;  %s5578_s29 = smov 9  }
 0x219   : > { %v1023_v0 = vpop.permute.xlu0 %1022  ;;  %v1026_v3 = vpop.permute.xlu1 %1025  ;;  %v4611_v21 = vsel %vm896_vm1, %v1067_v54, %v1111_v47  ;;  %v4614_v9 = vsel %vm896_vm1, %v1066_v53, %v1110_v7  ;;  %v1092_v42 = vrot.slane %v1020_v28, 4  ;;  %v1093_v7 = vrot.slane %v1021_v1, 4  ;;  %3835 = vmatpush3.msra.mxu0 %v1204_v50 }
 0x21a   : > { %v1027_v61 = vsel %vm741_vm7, %v1026_v3, %v1023_v0  ;;  %v1030_v32 = vsel %vm741_vm7, %v1023_v0, %v1026_v3  ;;  %1156 = vmatprep.subr.mxu1 %v4611_v21  ;;  %3836 = vmatprep.subr.mxu0 %v1219_v51 }
 0x21b   : > { %v1031_v35 = vmul.f32 %v1030_v32, %v4424_v20  ;;  %v1032_v36 = vmul.f32 %v1027_v61, %v4428_v4  ;;  %1157 = vmatpush1.msra.mxu1 %v4614_v9  ;;  %3837 = vmatpush3.msra.mxu0 %v1203_v52 }
 0x21c   : > { %1158 = vmatprep.subr.mxu1 %v4627_v37  ;;  %3943 = vmatprep.subr.mxu0 %v4107_v2 }
 0x21d   : > { %v1000_v38 = vpop.permute.xlu0 %999  ;;  %v1004_v40 = vpop.permute.xlu1 %1003  ;;  %1159 = vmatpush1.msra.mxu1 %v4631_v16  ;;  %v4635_v6 = vsel %vm896_vm1, %v1032_v36, %v1099_v26  ;;  %v4638_v41 = vsel %vm896_vm1, %v1031_v35, %v1098_v62 }
 0x21e   : > { %v1005_v14 = vsel %vm5506_vm8, %v1004_v40, %v1000_v38  ;;  %v1008_v15 = vsel %vm5506_vm8, %v1000_v38, %v1004_v40  ;;  %1160 = vmatprep.subr.mxu1 %v4635_v6  ;;  %vm1345_vm8 = vcmask 56320  }
 0x21f   : > { %v1009_v44 = vmul.f32 %v1008_v15, %v4434_v29  ;;  %v1010_v45 = vmul.f32 %v1005_v14, %v4438_v31  ;;  %1161 = vmatpush1.msra.mxu1 %v4638_v41 }
 0x221   : > { %v4647_v46 = vsel %vm896_vm1, %v1010_v45, %v1093_v7  ;;  %v4650_v47 = vsel %vm896_vm1, %v1009_v44, %v1092_v42 }
 0x222   : > { %1162 = vmatprep.subr.mxu1 %v4647_v46 }
 0x223   : > { %1163 = vmatpush1.msra.mxu1 %v4650_v47 }
 0x224   : > { %3698 = vmatmul.mubr.msk.f32.vlgmr.msra.gmra.mxu1 %vm905_vm9, %v1122_v48  ;;  %3898 = vmatprep.subr.mxu1 %v4107_v2 }
 0x225   : > { %3908 = vmatprep.mubr.msk.f32.mxu1 %vm4120_vm13, %v4107_v2 }
 0x2e4   : > { %v1198_v53 = vpop.f32.mrf.mxu1 }
 0x2e6   : > { %v1200_v54 = vpop.f32.mrf.mxu1 }
 0x2e7   : > { %1299 = vmatprep.mubr.f32.mxu0 %v1200_v54 }
 0x2e8   : > { %1300 = vmatmul.mubr.f32.vlgmr.msra.gmra.mxu0 %v1198_v53 }
 0x2e9   : > { %3953 = vmatprep.mubr.msk.f32.mxu0 %vm4120_vm13, %v4107_v2 }
 0x3a8   : > { %v3838_v55 = vpop.f32.mrf.mxu0 }
 0x3aa   : > { %v3839_v56 = vpop.f32.mrf.mxu0 }
 0x3ab   : > { %v3840_v60 = vadd.f32 %v3839_v56, %v3838_v55 }
 0x3ad   : > { %v1306_v62 = vmin.f32 %v3840_v60, 0.0  ;;  %vm1305_vm12 = vcmp.gt.f32.partialorder %v3840_v60, 0.0 }
 0x3af   : > { %v1307_v0 = vmul.f32 1.442695, %v1306_v62 }
 0x3b1   : > { %4071 = vpow2.f32 %v1307_v0 }
 0x3be   : > { %v4072_v3 = vpop.eup %4071 }
 0x3bf   : > { %v3699_v23 = vadd.f32 -1.0, %v4072_v3 }
 0x3c1   : > { %v4672_v26 = vsel %vm1305_vm12, %v3840_v60, %v3699_v23  ;;  %vm1332_vm12 = vcmask 64512  }
 0x3c2   : > { %1398 = vrot.lane.b32.xlu1 %v4672_v26, %s5513_s26  ;;  %1395 = vrot.lane.b32.xlu0 %v4672_v26, %s5500_s23  ;;  %s5565_s23 = sld [smem:[#allocation10_spill]] }
 0x3c6   : > { %1411 = vrot.lane.b32.xlu1 %v4672_v26, %s5498_s5  ;;  %1408 = vrot.lane.b32.xlu0 %v4672_v26, %s5484_s1  ;;  %s5492_s1 = smov 8   ;;  %s5569_s5 = smov 119  }
 0x3c8   : > { %v4713_v32 = vld [vmem:[%s5565_s23 + $0x8] ss:$0 sm:$0xff]  ;;  %v689_v36 = vld [vmem:[%s5565_s23] sm:$0xff]  ;;  %s5577_s23 = smov 71  }
 0x3c9   : > { %v4720_v40 = vrot.slane %v689_v36, %v4326_v13  ;;  %v4724_v15 = vrot.slane %v689_v36, %v4323_v12  ;;  %v4733_v50 = vrot.slane %v689_v36, %v4339_v18  ;;  %v4736_v53 = vrot.slane %v689_v36, %v4302_v5 }
 0x3ca   : > { %1372 = vrot.lane.b32.xlu1 %v4672_v26, %s5486_s25  ;;  %1369 = vrot.lane.b32.xlu0 %v4672_v26, %s5563_s24  ;;  %s5494_s25 = smov 72  }
 0x3cb   : > { %v1368_v23 = vmul.f32 %v4736_v53, %v4672_v26 }
 0x3ce   : > { %1385 = vrot.lane.b32.xlu1 %v4672_v26, %s5496_s6  ;;  %1382 = vrot.lane.b32.xlu0 %v4672_v26, %s5488_s2  ;;  %s5504_s2 = smov 7   ;;  %s5570_s6 = smov 63  }
 0x3d2   : > { %1355 = vrot.lane.b32.xlu1 %v4672_v26, %s5564_s30  ;;  %1352 = vrot.lane.b32.xlu0 %v4672_v26, %s5490_s4  ;;  %s5502_s4 = smov 71  }
 0x3d6   : > { %1329 = vrot.lane.b32.xlu1 %v4672_v26, %s5492_s1  ;;  %1326 = vrot.lane.b32.xlu0 %v4672_v26, %s5494_s25  ;;  %s5511_s1 = smov 9   ;;  %s5509_s25 = smov 73  }
 0x3da   : > { %1342 = vrot.lane.b32.xlu1 %v4672_v26, %s5504_s2  ;;  %1339 = vrot.lane.b32.xlu0 %v4672_v26, %s5502_s4  ;;  %s5567_s2 = smov 120   ;;  %s5568_s4 = smov 55  }
 0x3de   : > { %1316 = vrot.lane.b32.xlu1 %v4672_v26, %s5511_s1  ;;  %1313 = vrot.lane.b32.xlu0 %v4672_v26, %s5509_s25  ;;  %v4752_v26 = vrot.slane %v689_v36, %v4400_v59  ;;  %s5571_s25 = smov 57   ;;  %s5572_s1 = smov 121  }
 0x434   : > { %v1399_v28 = vpop.permute.xlu1 %1398  ;;  %v1396_v61 = vpop.permute.xlu0 %1395 }
 0x435   : > { %v1402_v42 = vsel %vm1401_vm15, %v1396_v61, %v1399_v28  ;;  %v4744_v28 = vrot.slane %v689_v36, %v4383_v43 }
 0x436   : > { %v1407_v48 = vmul.f32 %v4720_v40, %v1402_v42  ;;  %v4755_v42 = vrot.slane %v689_v36, %v4406_v63 }
 0x438   : > { %v1412_v1 = vpop.permute.xlu1 %1411  ;;  %v1409_v35 = vpop.permute.xlu0 %1408  ;;  %v1431_v55 = vrot.slane %v1407_v48, 4 }
 0x439   : > { %v1415_v38 = vsel %vm1414_vm14, %v1409_v35, %v1412_v1 }
 0x43a   : > { %v1420_v14 = vmul.f32 %v4713_v32, %v1415_v38 }
 0x43c   : > { %v1373_v7 = vpop.permute.xlu1 %1372  ;;  %3899 = vmatpush3.msk.msra.mxu1 %vm896_vm1, %v1420_v14  ;;  %v1370_v44 = vpop.permute.xlu0 %1369 }
 0x43d   : > { %v1376_v45 = vsel %vm1375_vm10, %v1370_v44, %v1373_v7  ;;  %3900 = vmatprep.subr.mxu1 %v4107_v2 }
 0x43e   : > { %v1381_v49 = vmul.f32 %v4724_v15, %v1376_v45 }
 0x440   : > { %v1386_v51 = vpop.permute.xlu1 %1385  ;;  %v1383_v52 = vpop.permute.xlu0 %1382  ;;  %v1428_v56 = vrot.slane %v1381_v49, 4 }
 0x441   : > { %v1389_v54 = vsel %vm1388_vm11, %v1383_v52, %v1386_v51 }
 0x442   : > { %v1394_v60 = vmul.f32 %v4733_v50, %v1389_v54  ;;  %v1435_v61 = vsel %vm896_vm1, %v1368_v23, %v1428_v56  ;;  %v4762_v54 = vrot.slane %v689_v36, %v4410_v8  ;;  %v1311_v23 = vld [vmem:[%s5566_s10] sm:$0xf]  ;;  %s5576_s10 = smov 7  }
 0x444   : > { %v1356_v62 = vpop.permute.xlu1 %1355  ;;  %v1353_v0 = vpop.permute.xlu0 %1352  ;;  %v1436_v3 = vsel %vm896_vm1, %v1394_v60, %v1431_v55 }
 0x445   : > { %3901 = vmatpush3.msra.mxu1 %v1436_v3  ;;  %v1358_v1 = vsel %vm761_vm5, %v1353_v0, %v1356_v62 }
 0x446   : > { %3902 = vmatprep.subr.mxu1 %v4107_v2  ;;  %v1363_v14 = vmul.f32 %v4744_v28, %v1358_v1 }
 0x447   : > { %3903 = vmatpush3.msra.mxu1 %v1435_v61 }
 0x448   : > { %v1330_v35 = vpop.permute.xlu1 %1329  ;;  %v1327_v38 = vpop.permute.xlu0 %1326  ;;  %3904 = vmatprep.subr.mxu1 %v4107_v2  ;;  %v1425_v49 = vrot.slane %v1363_v14, 4 }
 0x449   : > { %v1333_v7 = vsel %vm1332_vm12, %v1327_v38, %v1330_v35 }
 0x44a   : > { %v1338_v51 = vmul.f32 %v4752_v26, %v1333_v7 }
 0x44c   : > { %v1343_v44 = vpop.permute.xlu1 %1342  ;;  %v1340_v45 = vpop.permute.xlu0 %1339  ;;  %v1422_v0 = vrot.slane %v1338_v51, 4 }
 0x44d   : > { %v1346_v48 = vsel %vm1345_vm8, %v1340_v45, %v1343_v44 }
 0x44e   : > { %v1351_v52 = vmul.f32 %v4755_v42, %v1346_v48 }
 0x450   : > { %v1317_v55 = vpop.permute.xlu1 %1316  ;;  %v1314_v56 = vpop.permute.xlu0 %1313  ;;  %v1434_v60 = vsel %vm896_vm1, %v1351_v52, %v1425_v49 }
 0x451   : > { %v1320_v62 = vsel %vm1319_vm4, %v1314_v56, %v1317_v55  ;;  %3905 = vmatpush3.msra.mxu1 %v1434_v60 }
 0x452   : > { %v1325_v3 = vmul.f32 %v4762_v54, %v1320_v62  ;;  %3906 = vmatprep.subr.mxu1 %v4107_v2 }
 0x454   : > { %v1433_v61 = vsel %vm896_vm1, %v1325_v3, %v1422_v0 }
 0x455   : > { %3907 = vmatpush3.msra.mxu1 %v1433_v61 }
 0x456   : > { %3909 = vmatmul.mubr.msk.f32.vlgmr.msra.gmra.mxu1 %vm905_vm9, %v1311_v23  ;;  %3911 = vmatprep.subr.mxu1 %v4107_v2 }
 0x457   : > { %3921 = vmatprep.mubr.msk.f32.mxu1 %vm4120_vm13, %v4107_v2 }
 0x516   : > { %v1509_v36 = vpop.f32.mrf.mxu1 }
 0x517   : > { %v1514_v1 = vmin.f32 %v1509_v36, 0.0  ;;  %vm1513_vm2 = vcmp.gt.f32.partialorder %v1509_v36, 0.0 }
 0x518   : > { %v3910_v35 = vpop.f32.mrf.mxu1 }
 0x519   : > { %v1515_v38 = vmul.f32 1.442695, %v1514_v1 }
 0x51b   : > { %4073 = vpow2.f32 %v1515_v38 }
 0x528   : > { %v4074_v14 = vpop.eup %4073 }
 0x529   : > { %v3703_v7 = vadd.f32 -1.0, %v4074_v14 }
 0x52b   : > { %v1518_v44 = vsel %vm1513_vm2, %v1509_v36, %v3703_v7  ;;  %vm5528_vm2 = vcmask 523264  }
 0x52c   : > { %1572 = vrot.lane.b32.xlu1 %v1518_v44, %s5513_s26  ;;  %1569 = vrot.lane.b32.xlu0 %v1518_v44, %s5567_s2  ;;  %s5575_s26 = smov 72  }
 0x530   : > { %1580 = vrot.lane.b32.xlu1 %v1518_v44, %s5568_s4  ;;  %1577 = vrot.lane.b32.xlu0 %v1518_v44, %s5569_s5 }
 0x534   : > { %1556 = vrot.lane.b32.xlu1 %v1518_v44, %s5570_s6  ;;  %1553 = vrot.lane.b32.xlu0 %v1518_v44, %s5563_s24 }
 0x538   : > { %1564 = vrot.lane.b32.xlu1 %v1518_v44, %s5571_s25  ;;  %1561 = vrot.lane.b32.xlu0 %v1518_v44, %s5572_s1 }
 0x53c   : > { %1547 = vrot.lane.b32.xlu1 %v1518_v44, %s5564_s30  ;;  %1544 = vrot.lane.b32.xlu0 %v1518_v44, %s5573_s8 }
 0x540   : > { %1531 = vrot.lane.b32.xlu1 %v1518_v44, %s5574_s9  ;;  %1528 = vrot.lane.b32.xlu0 %v1518_v44, %s5575_s26 }
 0x544   : > { %1539 = vrot.lane.b32.xlu1 %v1518_v44, %s5576_s10  ;;  %1536 = vrot.lane.b32.xlu0 %v1518_v44, %s5577_s23 }
 0x548   : > { %1523 = vrot.lane.b32.xlu1 %v1518_v44, %s5578_s29  ;;  %1520 = vrot.lane.b32.xlu0 %v1518_v44, %s5579_s3 }
 0x59e   : > { %v1573_v45 = vpop.permute.xlu1 %1572  ;;  %v1570_v48 = vpop.permute.xlu0 %1569 }
 0x59f   : > { %v1575_v56 = vsel %vm1401_vm15, %v1570_v48, %v1573_v45 }
 0x5a0   : > { %v1576_v3 = vmul.f32 %v1575_v56, %v4720_v40 }
 0x5a2   : > { %v1581_v49 = vpop.permute.xlu1 %1580  ;;  %v1578_v51 = vpop.permute.xlu0 %1577  ;;  %v1595_v35 = vrot.slane %v1576_v3, 4 }
 0x5a3   : > { %v1583_v52 = vsel %vm1414_vm14, %v1578_v51, %v1581_v49  ;;  %v1552_v49 = vmul.f32 %v1518_v44, %v4736_v53 }
 0x5a4   : > { %v4794_v55 = vmul.f32 %v4713_v32, %v1583_v52 }
 0x5a6   : > { %v1557_v60 = vpop.permute.xlu1 %1556  ;;  %3912 = vmatpush3.msk.msra.mxu1 %vm896_vm1, %v4794_v55  ;;  %v1554_v62 = vpop.permute.xlu0 %1553 }
 0x5a7   : > { %v1559_v0 = vsel %vm1375_vm10, %v1554_v62, %v1557_v60  ;;  %3913 = vmatprep.subr.mxu1 %v4107_v2 }
 0x5a8   : > { %v1560_v23 = vmul.f32 %v1559_v0, %v4724_v15 }
 0x5aa   : > { %v1565_v61 = vpop.permute.xlu1 %1564  ;;  %v1562_v36 = vpop.permute.xlu0 %1561  ;;  %v1592_v38 = vrot.slane %v1560_v23, 4 }
 0x5ab   : > { %v1567_v1 = vsel %vm1388_vm11, %v1562_v36, %v1565_v61 }
 0x5ac   : > { %v1568_v14 = vmul.f32 %v1567_v1, %v4733_v50  ;;  %v4812_v51 = vsel %vm896_vm1, %v1552_v49, %v1592_v38 }
 0x5ae   : > { %v1548_v7 = vpop.permute.xlu1 %1547  ;;  %v1545_v45 = vpop.permute.xlu0 %1544  ;;  %v4806_v48 = vsel %vm896_vm1, %v1568_v14, %v1595_v35 }
 0x5af   : > { %3914 = vmatpush3.msra.mxu1 %v4806_v48  ;;  %v1550_v52 = vsel %vm761_vm5, %v1545_v45, %v1548_v7 }
 0x5b0   : > { %3915 = vmatprep.subr.mxu1 %v4107_v2  ;;  %v1551_v62 = vmul.f32 %v1550_v52, %v4744_v28  ;;  %v1601_v52 = vld [vmem:[%s5580_s11] sm:$0xf]  ;;  %s4125_s11 = smov 12  }
 0x5b1   : > { %3916 = vmatpush3.msra.mxu1 %v4812_v51 }
 0x5b2   : > { %v1532_v56 = vpop.permute.xlu1 %1531  ;;  %v1529_v60 = vpop.permute.xlu0 %1528  ;;  %3917 = vmatprep.subr.mxu1 %v4107_v2  ;;  %v1589_v61 = vrot.slane %v1551_v62, 4  ;;  %v1684_v62 = vld [vmem:[%s5581_s0 + $0x30] sm:$0xff] }
 0x5b3   : > { %v1534_v0 = vsel %vm1332_vm12, %v1529_v60, %v1532_v56  ;;  %v1685_v60 = vld [vmem:[%s5581_s0 + $0x38] sm:$0xff] }
 0x5b4   : > { %v1535_v36 = vmul.f32 %v1534_v0, %v4752_v26  ;;  %v1683_v0 = vld [vmem:[%s5581_s0 + $0x28] sm:$0xff] }
 0x5b6   : > { %v1540_v44 = vpop.permute.xlu1 %1539  ;;  %v1537_v3 = vpop.permute.xlu0 %1536  ;;  %v1586_v45 = vrot.slane %v1535_v36, 4  ;;  %v1678_v36 = vld [vmem:[%s5581_s0] sm:$0xff] }
 0x5b7   : > { %v1542_v23 = vsel %vm1345_vm8, %v1537_v3, %v1540_v44  ;;  %v1682_v44 = vld [vmem:[%s5581_s0 + $0x20] sm:$0xff]  ;;  %v1681_v3 = vld [vmem:[%s5581_s0 + $0x18] sm:$0xff] }
 0x5b8   : > { %v1543_v1 = vmul.f32 %v1542_v23, %v4755_v42  ;;  %v1680_v23 = vld [vmem:[%s5581_s0 + $0x10] sm:$0xff] }
 0x5ba   : > { %v1524_v35 = vpop.permute.xlu1 %1523  ;;  %v1521_v38 = vpop.permute.xlu0 %1520  ;;  %v4823_v14 = vsel %vm896_vm1, %v1543_v1, %v1589_v61  ;;  %v1679_v61 = vld [vmem:[%s5581_s0 + $0x8] sm:$0xff]  ;;  %s5583_s0 = smov 113  }
 0x5bb   : > { %v1526_v7 = vsel %vm1319_vm4, %v1521_v38, %v1524_v35  ;;  %3918 = vmatpush3.msra.mxu1 %v4823_v14 }
 0x5bc   : > { %v1527_v49 = vmul.f32 %v1526_v7, %v4762_v54  ;;  %3919 = vmatprep.subr.mxu1 %v4107_v2 }
 0x5be   : > { %v4833_v56 = vsel %vm896_vm1, %v1527_v49, %v1586_v45 }
 0x5bf   : > { %3920 = vmatpush3.msra.mxu1 %v4833_v56 }
 0x5c0   : > { %3922 = vmatmul.mubr.msk.f32.vlgmr.msra.gmra.mxu1 %vm905_vm9, %v1601_v52  ;;  %3924 = vmatprep.subr.mxu1 %v4107_v2 }
 0x5c1   : > { %3925 = vmatpush3.msra.mxu1 %v1685_v60  ;;  %3940 = vmatprep.mubr.msk.f32.mxu1 %vm4120_vm13, %v4107_v2 }
 0x5c2   : > { %3926 = vmatprep.subr.mxu1 %v4107_v2 }
 0x5c3   : > { %3927 = vmatpush3.msra.mxu1 %v1684_v62 }
 0x5c4   : > { %3928 = vmatprep.subr.mxu1 %v4107_v2 }
 0x5c5   : > { %3929 = vmatpush3.msra.mxu1 %v1683_v0 }
 0x5c6   : > { %3930 = vmatprep.subr.mxu1 %v4107_v2 }
 0x5c7   : > { %3931 = vmatpush3.msra.mxu1 %v1682_v44 }
 0x5c8   : > { %3932 = vmatprep.subr.mxu1 %v4107_v2 }
 0x5c9   : > { %3933 = vmatpush3.msra.mxu1 %v1681_v3  ;;  %v3708_v3 = vld [vmem:[%s5584_s7 + $0x8] ss:$0 sm:$0xff] }
 0x5ca   : > { %3934 = vmatprep.subr.mxu1 %v4107_v2 }
 0x5cb   : > { %3935 = vmatpush3.msra.mxu1 %v1680_v23 }
 0x5cc   : > { %3936 = vmatprep.subr.mxu1 %v4107_v2 }
 0x5cd   : > { %3937 = vmatpush3.msra.mxu1 %v1679_v61 }
 0x5ce   : > { %3938 = vmatprep.subr.mxu1 %v4107_v2 }
 0x5cf   : > { %3939 = vmatpush3.msra.mxu1 %v1678_v36  ;;  %v691_v36 = vld [vmem:[%s5584_s7] sm:$0xff]  ;;  %s5595_s7 = smov 15  }
 0x5d0   : > { %v1847_v4 = vrot.slane %v691_v36, %v4339_v18 }
 0x680   : > { %v1674_v1 = vpop.f32.mrf.mxu1 }
 0x681   : > { %3941 = vmatmul.mubr.msk.f32.vlgmr.msra.gmra.mxu1 %vm5528_vm2, %v1674_v1  ;;  %vm1842_vm2 = vcmask 105472  }
 0x682   : > { %v3923_v35 = vpop.f32.mrf.mxu1 }
 0x683   : > { %v1860_v35 = vrot.slane %v691_v36, %v4326_v13  ;;  %v1822_v13 = vrot.slane %v691_v36, %v4302_v5 }
 0x741   : > { %v1756_v38 = vpop.f32.mrf.mxu1 }
 0x742   : > { %v1761_v7 = vmin.f32 %v1756_v38, 0.0  ;;  %vm1760_vm3 = vcmp.gt.f32.partialorder %v1756_v38, 0.0 }
 0x743   : > { %v3942_v45 = vpop.f32.mrf.mxu1 }
 0x744   : > { %v1762_v49 = vmul.f32 1.442695, %v1761_v7  ;;  %v1834_v7 = vrot.slane %v691_v36, %v4323_v12 }
 0x746   : > { %4075 = vpow2.f32 %v1762_v49 }
 0x753   : > { %v4076_v52 = vpop.eup %4075 }
 0x754   : > { %v3707_v60 = vadd.f32 -1.0, %v4076_v52 }
 0x756   : > { %v1765_v62 = vsel %vm1760_vm3, %v1756_v38, %v3707_v60  ;;  %vm1868_vm3 = vcmask 89088  }
 0x757   : > { %1852 = vrot.lane.b32.xlu1 %v1765_v62, %s4125_s11  ;;  %1849 = vrot.lane.b32.xlu0 %v1765_v62, %s4126_s27  ;;  %s4132_s11 = smov 116   ;;  %s4133_s27 = smov 3  }
 0x75b   : > { %1865 = vrot.lane.b32.xlu1 %v1765_v62, %s4127_s21  ;;  %1862 = vrot.lane.b32.xlu0 %v1765_v62, %s4128_s22  ;;  %s4134_s21 = smov 115   ;;  %s4135_s22 = smov 5  }
 0x75f   : > { %1827 = vrot.lane.b32.xlu1 %v1765_v62, %s5582_s18  ;;  %1824 = vrot.lane.b32.xlu0 %v1765_v62, %s5563_s24  ;;  %s4136_s18 = smov 117  }
 0x763   : > { %1839 = vrot.lane.b32.xlu1 %v1765_v62, %s4129_s28  ;;  %1836 = vrot.lane.b32.xlu0 %v1765_v62, %s4130_s20  ;;  %s5592_s20 = smov 111   ;;  %s5625_s28 = sld [smem:[#allocation23_spill]] }
 0x767   : > { %1810 = vrot.lane.b32.xlu1 %v1765_v62, %s5564_s30  ;;  %1807 = vrot.lane.b32.xlu0 %v1765_v62, %s5583_s0 }
 0x76b   : > { %1784 = vrot.lane.b32.xlu1 %v1765_v62, %s4131_s19  ;;  %1781 = vrot.lane.b32.xlu0 %v1765_v62, %s4132_s11  ;;  %s5586_s19 = smov 56   ;;  %s5594_s11 = smov 16  }
 0x76f   : > { %1797 = vrot.lane.b32.xlu1 %v1765_v62, %s4133_s27  ;;  %1794 = vrot.lane.b32.xlu0 %v1765_v62, %s4134_s21 }
 0x773   : > { %1771 = vrot.lane.b32.xlu1 %v1765_v62, %s4135_s22  ;;  %1768 = vrot.lane.b32.xlu0 %v1765_v62, %s4136_s18  ;;  %s5585_s18 = sld [smem:[#allocation14_spill]] }
 0x774   : > { %s5614_s22 = sld [smem:[#allocation20_spill]] }
 0x7c9   : > { %v1853_v0 = vpop.permute.xlu1 %1852  ;;  %v1850_v44 = vpop.permute.xlu0 %1849 }
 0x7ca   : > { %v1856_v45 = vsel %vm1855_vm0, %v1850_v44, %v1853_v0  ;;  %vm1787_vm0 = vcmask 31744  }
 0x7cb   : > { %v1861_v31 = vmul.f32 %v1860_v35, %v1856_v45  ;;  %v1817_v35 = vrot.slane %v691_v36, %v4383_v43 }
 0x7cd   : > { %v1866_v23 = vpop.permute.xlu1 %1865  ;;  %v1863_v61 = vpop.permute.xlu0 %1862  ;;  %v1885_v12 = vrot.slane %v1861_v31, 4 }
 0x7ce   : > { %v1869_v1 = vsel %vm1868_vm3, %v1863_v61, %v1866_v23  ;;  %vm1774_vm3 = vcmask 39936  }
 0x7cf   : > { %v1874_v38 = vmul.f32 %v3708_v3, %v1869_v1 }
 0x7d1   : > { %v1828_v49 = vpop.permute.xlu1 %1827  ;;  %3944 = vmatpush3.msk.msra.mxu0 %vm896_vm1, %v1874_v38  ;;  %v1825_v52 = vpop.permute.xlu0 %1824 }
 0x7d2   : > { %v1830_v60 = vsel %vm741_vm7, %v1825_v52, %v1828_v49  ;;  %3945 = vmatprep.subr.mxu0 %v4107_v2  ;;  %v1823_v49 = vmul.f32 %v1822_v13, %v1765_v62  ;;  %v1779_v13 = vrot.slane %v691_v36, %v4410_v8  ;;  %v1973_v8 = vld [vmem:[%s5451_s13] sm:$0xff] }
 0x7d3   : > { %v1835_v29 = vmul.f32 %v1834_v7, %v1830_v60  ;;  %3958 = vmatprep.mubr.msk.f32.mxu1 %vm1787_vm0, %v1973_v8 }
 0x7d5   : > { %v1840_v23 = vpop.permute.xlu1 %1839  ;;  %v1837_v61 = vpop.permute.xlu0 %1836  ;;  %v1882_v0 = vrot.slane %v1835_v29, 4  ;;  %v1792_v29 = vrot.slane %v691_v36, %v4400_v59 }
 0x7d6   : > { %v1843_v3 = vsel %vm1842_vm2, %v1837_v61, %v1840_v23  ;;  %vm1800_vm2 = vcmask 23552  }
 0x7d7   : > { %v1848_v44 = vmul.f32 %v1847_v4, %v1843_v3  ;;  %v1889_v18 = vsel %vm896_vm1, %v1823_v49, %v1882_v0 }
 0x7d9   : > { %v1811_v1 = vpop.permute.xlu1 %1810  ;;  %v1808_v38 = vpop.permute.xlu0 %1807  ;;  %v1890_v20 = vsel %vm896_vm1, %v1848_v44, %v1885_v12 }
 0x7da   : > { %3946 = vmatpush3.msra.mxu0 %v1890_v20  ;;  %v1813_v7 = vsel %vm761_vm5, %v1808_v38, %v1811_v1  ;;  %v1805_v20 = vrot.slane %v691_v36, %v4406_v63  ;;  %v1766_v63 = vld [vmem:[%s5450_s12] sm:$0xf] }
 0x7db   : > { %3947 = vmatprep.subr.mxu0 %v4107_v2  ;;  %v1818_v4 = vmul.f32 %v1817_v35, %v1813_v7 }
 0x7dc   : > { %3948 = vmatpush3.msra.mxu0 %v1889_v18 }
 0x7dd   : > { %v1785_v5 = vpop.permute.xlu1 %1784  ;;  %v1782_v31 = vpop.permute.xlu0 %1781  ;;  %3949 = vmatprep.subr.mxu0 %v4107_v2  ;;  %v1879_v60 = vrot.slane %v1818_v4, 4  ;;  %v1974_v4 = vld [vmem:[%s5451_s13 + $0x8] sm:$0xff] }
 0x7de   : > { %v1788_v43 = vsel %vm1787_vm0, %v1782_v31, %v1785_v5 }
 0x7df   : > { %v1793_v23 = vmul.f32 %v1792_v29, %v1788_v43  ;;  %v3723_v29 = vld [vmem:[%s5585_s18 + $0x38] sm:$0xff]  ;;  %v3722_v43 = vld [vmem:[%s5585_s18 + $0x30] sm:$0xff] }
 0x7e1   : > { %v1798_v62 = vpop.permute.xlu1 %1797  ;;  %v1795_v45 = vpop.permute.xlu0 %1794  ;;  %v1876_v59 = vrot.slane %v1793_v23, 4 }
 0x7e2   : > { %v1801_v52 = vsel %vm1800_vm2, %v1795_v45, %v1798_v62  ;;  %v3715_v62 = vld [vmem:[%s5585_s18 + $0x10] sm:$0xff] }
 0x7e3   : > { %v1806_v61 = vmul.f32 %v1805_v20, %v1801_v52  ;;  %v3716_v20 = vld [vmem:[%s5585_s18 + $0x18] sm:$0xff] }
 0x7e5   : > { %v1772_v3 = vpop.permute.xlu1 %1771  ;;  %v1769_v12 = vpop.permute.xlu0 %1768  ;;  %v1888_v0 = vsel %vm896_vm1, %v1806_v61, %v1879_v60  ;;  %v2060_v61 = vld [vmem:[%s5585_s18 + $0x8] sm:$0xff] }
 0x7e6   : > { %v1775_v44 = vsel %vm1774_vm3, %v1769_v12, %v1772_v3  ;;  %3950 = vmatpush3.msra.mxu0 %v1888_v0  ;;  %v3720_v3 = vld [vmem:[%s5585_s18 + $0x28] sm:$0xff]  ;;  %v3719_v12 = vld [vmem:[%s5585_s18 + $0x20] sm:$0xff] }
 0x7e7   : > { %v1780_v1 = vmul.f32 %v1779_v13, %v1775_v44  ;;  %3951 = vmatprep.subr.mxu0 %v4107_v2  ;;  %v2059_v13 = vld [vmem:[%s5585_s18] sm:$0xff] }
 0x7e9   : > { %v1887_v38 = vsel %vm896_vm1, %v1780_v1, %v1876_v59 }
 0x7ea   : > { %3952 = vmatpush3.msra.mxu0 %v1887_v38 }
 0x7eb   : > { %3954 = vmatmul.mubr.msk.f32.vlgmr.msra.gmra.mxu0 %vm905_vm9, %v1766_v63  ;;  %3982 = vmatprep.subr.mxu0 %v4107_v2 }
 0x7ec   : > { %3986 = vmatprep.mubr.msk.f32.mxu0 %vm4120_vm13, %v4107_v2  ;;  %3983 = vmatpush3.msra.mxu0 %v3723_v29 }
 0x7ed   : > { %3984 = vmatprep.subr.mxu0 %v4107_v2 }
 0x7ee   : > { %3985 = vmatpush3.msra.mxu0 %v3722_v43 }
 0x7ef   : > { %4002 = vmatprep.subr.mxu0 %v4107_v2 }
 0x8ab   : > { %v1963_v36 = vpop.f32.mrf.mxu0 }
 0x8ac   : > { %v1968_v49 = vmin.f32 %v1963_v36, 0.0  ;;  %vm1967_vm2 = vcmp.gt.f32.partialorder %v1963_v36, 0.0 }
 0x8ad   : > { %v3955_v35 = vpop.f32.mrf.mxu0 }
 0x8ae   : > { %v1969_v18 = vmul.f32 1.442695, %v1968_v49 }
 0x8b0   : > { %4077 = vpow2.f32 %v1969_v18 }
 0x8bd   : > { %v4078_v7 = vpop.eup %4077 }
 0x8be   : > { %v3711_v5 = vadd.f32 -1.0, %v4078_v7 }
 0x8c0   : > { %v1972_v31 = vsel %vm1967_vm2, %v1963_v36, %v3711_v5  ;;  %v4137_v5 = vmov 0   ;;  %vm5599_vm2 = vcmask 908288  }
 0x8c1   : > { %3956 = vmatprep.subr.msk.mxu1 %vm896_vm1, %v1972_v31  ;;  %4065 = vset.pattern.permute.xlu0 %v4137_v5 }
 0x8c2   : > { %3957 = vmatpush3.msk.msra.mxu1 %vm896_vm1, %v1972_v31  ;;  %v2609_v31 = vld [vmem:[%s5454_s16] sm:$0xf] }
 0x8c3   : > { %3959 = vmatmul.mubr.msk.f32.vlgmr.msra.gmra.mxu1 %vm1787_vm0, %v1974_v4  ;;  %3961 = vmatprep.subr.mxu1 %v4107_v2 }
 0x8c4   : > { %3965 = vmatprep.mubr.msk.f32.mxu1 %vm4120_vm13, %v4107_v2  ;;  %3962 = vmatpush3.msra.mxu1 %v3716_v20 }
 0x8c5   : > { %3963 = vmatprep.subr.mxu1 %v4107_v2 }
 0x8c6   : > { %3964 = vmatpush3.msra.mxu1 %v3715_v62 }
 0x8c7   : > { %3968 = vmatprep.subr.mxu1 %v4107_v2 }
 0x983   : > { %v3960_v45 = vpop.f32.mrf.mxu1 }
 0x984   : > { %v2290_v52 = vrot.slane %v3960_v45, 4 }
 0x985   : > { %v2050_v60 = vpop.f32.mrf.mxu1 }
 0x986   : > { %v2065_v23 = vrot.slane %v2050_v60, 4  ;;  %3987 = vmatmul.mubr.msk.f32.vlgmr.msra.gmra.mxu0 %vm721_vm6, %v2290_v52 }
 0x987   : > { %4012 = vmatprep.mubr.msk.f32.mxu0 %vm4120_vm13, %v4107_v2 }
 0x988   : > { %3966 = vmatmul.mubr.msk.f32.vlgmr.msra.gmra.mxu1 %vm721_vm6, %v2065_v23 }
 0x989   : > { %3969 = vmatpush3.msra.mxu1 %v2060_v61  ;;  %3972 = vmatprep.mubr.msk.f32.mxu1 %vm4120_vm13, %v4107_v2 }
 0x98a   : > { %3970 = vmatprep.subr.mxu1 %v4107_v2 }
 0x98b   : > { %3971 = vmatpush3.msra.mxu1 %v2059_v13 }
 0x98c   : > { %3975 = vmatprep.subr.mxu1 %v4107_v2  ;;  %3973 = vmatmul.mubr.msk.f32.vlgmr.msra.gmra.mxu1 %vm721_vm6, %v2050_v60 }
 0x98d   : > { %3976 = vmatpush3.msra.mxu1 %v3720_v3  ;;  %3979 = vmatprep.mubr.msk.f32.mxu1 %vm4120_vm13, %v4107_v2 }
 0x98e   : > { %3977 = vmatprep.subr.mxu1 %v4107_v2 }
 0x98f   : > { %3978 = vmatpush3.msra.mxu1 %v3719_v12 }
 0x990   : > { %3989 = vmatprep.subr.mxu1 %v4107_v2  ;;  %3980 = vmatmul.mubr.msk.f32.vlgmr.msra.gmra.mxu1 %vm721_vm6, %v3960_v45 }
 0x991   : > { %3990 = vmatpush3.msk.msra.mxu1 %vm896_vm1, %v4794_v55  ;;  %3999 = vmatprep.mubr.msk.f32.mxu1 %vm4120_vm13, %v4107_v2 }
 0x992   : > { %3991 = vmatprep.subr.mxu1 %v4107_v2 }
 0x993   : > { %3992 = vmatpush3.msra.mxu1 %v4806_v48 }
 0x994   : > { %3993 = vmatprep.subr.mxu1 %v4107_v2 }
 0x995   : > { %3994 = vmatpush3.msra.mxu1 %v4812_v51 }
 0x996   : > { %3995 = vmatprep.subr.mxu1 %v4107_v2 }
 0x997   : > { %3996 = vmatpush3.msra.mxu1 %v4823_v14 }
 0x998   : > { %3997 = vmatprep.subr.mxu1 %v4107_v2 }
 0x999   : > { %3998 = vmatpush3.msra.mxu1 %v4833_v56  ;;  %v2453_v56 = vld [vmem:[%s5453_s15] sm:$0xf] }
 0x99a   : > { %4000 = vmatmul.mubr.msk.f32.vlgmr.msra.gmra.mxu1 %vm905_vm9, %v2453_v56 }
 0xa46   : > { %v2359_v55 = vpop.f32.mrf.mxu0 }
 0xa48   : > { %v2134_v0 = vpop.f32.mrf.mxu1  ;;  %v3988_v44 = vpop.f32.mrf.mxu0 }
 0xa4a   : > { %v3967_v59 = vpop.f32.mrf.mxu1 }
 0xa4c   : > { %v2206_v1 = vpop.f32.mrf.mxu1 }
 0xa4d   : > { %v2207_v38 = vadd.f32 %v2206_v1, %v2134_v0 }
 0xa4e   : > { %v3974_v63 = vpop.f32.mrf.mxu1 }
 0xa50   : > { %v2282_v48 = vpop.f32.mrf.mxu1 }
 0xa51   : > { %v2286_v8 = vadd.f32 %v2282_v48, %v2207_v38 }
 0xa52   : > { %v3981_v36 = vpop.f32.mrf.mxu1 }
 0xa53   : > { %v2363_v49 = vadd.f32 %v2359_v55, %v2286_v8 }
 0xa55   : > { %v2365_v51 = vmin.f32 %v2363_v49, 0.0  ;;  %vm2364_vm13 = vcmp.gt.f32.partialorder %v2363_v49, 0.0 }
 0xa57   : > { %v2366_v35 = vmul.f32 1.442695, %v2365_v51 }
 0xa59   : > { %4079 = vpow2.f32 %v2366_v35 }
 0xa66   : > { %v4080_v18 = vpop.eup %4079 }
 0xa67   : > { %v3725_v14 = vadd.f32 -1.0, %v4080_v18 }
 0xa69   : > { %v2369_v7 = vsel %vm2364_vm13, %v2363_v49, %v3725_v14  ;;  %vm5600_vm13 = vmmov %vm5599_vm2 }
 0xa6a   : > { %2424 = vrot.lane.b32.xlu1 %v2369_v7, %s5586_s19  ;;  %2421 = vrot.lane.b32.xlu0 %v2369_v7, %s5567_s2  ;;  %v2404_v48 = vmul.f32 %v2369_v7, %v4736_v53  ;;  %s5593_s19 = smov 112  }
 0xa6e   : > { %2432 = vrot.lane.b32.xlu1 %v2369_v7, %s5568_s4  ;;  %2429 = vrot.lane.b32.xlu0 %v2369_v7, %s5569_s5  ;;  %s5603_s4 = sld [smem:[#allocation9_spill]] }
 0xa72   : > { %2408 = vrot.lane.b32.xlu1 %v2369_v7, %s5570_s6  ;;  %2405 = vrot.lane.b32.xlu0 %v2369_v7, %s5563_s24 }
 0xa76   : > { %2416 = vrot.lane.b32.xlu1 %v2369_v7, %s5571_s25  ;;  %2413 = vrot.lane.b32.xlu0 %v2369_v7, %s5572_s1  ;;  %s5587_s25 = sld [smem:[#allocation15_spill]] }
 0xa7a   : > { %2399 = vrot.lane.b32.xlu1 %v2369_v7, %s5564_s30  ;;  %2396 = vrot.lane.b32.xlu0 %v2369_v7, %s5573_s8 }
 0xa7e   : > { %2383 = vrot.lane.b32.xlu1 %v2369_v7, %s5574_s9  ;;  %2380 = vrot.lane.b32.xlu0 %v2369_v7, %s5575_s26  ;;  %s5596_s9 = sld [smem:[#allocation21_spill]] }
 0xa7f   : > { %s5598_s26 = sld [smem:[#allocation22_spill]] }
 0xa82   : > { %2391 = vrot.lane.b32.xlu1 %v2369_v7, %s5576_s10  ;;  %2388 = vrot.lane.b32.xlu0 %v2369_v7, %s5577_s23  ;;  %s5597_s10 = smov 17  }
 0xa86   : > { %2375 = vrot.lane.b32.xlu1 %v2369_v7, %s5578_s29  ;;  %2372 = vrot.lane.b32.xlu0 %v2369_v7, %s5579_s3 }
 0xa8a   : > { %2612 = vperm.xlu0 %4065, %v2609_v31  }
 0xadc   : > { %v2425_v4 = vpop.permute.xlu1 %2424  ;;  %v2422_v29 = vpop.permute.xlu0 %2421 }
 0xadd   : > { %v2427_v52 = vsel %vm1401_vm15, %v2422_v29, %v2425_v4  ;;  %vm5588_vm15 = vcmask 523264  }
 0xade   : > { %v2428_v13 = vmul.f32 %v2427_v52, %v4720_v40  ;;  %v3748_v52 = vld [vmem:[%s5587_s25 + $0xe8] sm:$0xff] }
 0xae0   : > { %v2433_v20 = vpop.permute.xlu1 %2432  ;;  %v2430_v43 = vpop.permute.xlu0 %2429  ;;  %v2447_v44 = vrot.slane %v2428_v13, 4  ;;  %v3744_v13 = vld [vmem:[%s5587_s25 + $0xc8] sm:$0xff] }
 0xae1   : > { %v2435_v62 = vsel %vm1414_vm14, %v2430_v43, %v2433_v20  ;;  %v2370_v20 = vld [vmem:[%s5452_s14] sm:$0xf] }
 0xae2   : > { %v2436_v45 = vmul.f32 %v4713_v32, %v2435_v62  ;;  %v2628_v62 = vld [vmem:[%s5455_s17] sm:$0xff] }
 0xae3   : > { %4017 = vmatprep.mubr.msk.f32.mxu1 %vm1787_vm0, %v2628_v62  ;;  %v2721_v62 = vld [vmem:[%s5587_s25 + $0x38] sm:$0xff] }
 0xae4   : > { %v2409_v60 = vpop.permute.xlu1 %2408  ;;  %4003 = vmatpush3.msk.msra.mxu0 %vm896_vm1, %v2436_v45  ;;  %v2406_v23 = vpop.permute.xlu0 %2405  ;;  %v3749_v45 = vld [vmem:[%s5587_s25 + $0xf0] sm:$0xff] }
 0xae5   : > { %v2411_v61 = vsel %vm1375_vm10, %v2406_v23, %v2409_v60  ;;  %4004 = vmatprep.subr.mxu0 %v4107_v2  ;;  %v3747_v60 = vld [vmem:[%s5587_s25 + $0xe0] sm:$0xff]  ;;  %v3746_v23 = vld [vmem:[%s5587_s25 + $0xd8] sm:$0xff]  ;;  %vm5589_vm10 = vmmov %vm5588_vm15 }
 0xae6   : > { %v2412_v3 = vmul.f32 %v2411_v61, %v4724_v15  ;;  %v3745_v61 = vld [vmem:[%s5587_s25 + $0xd0] sm:$0xff] }
 0xae8   : > { %v2417_v12 = vpop.permute.xlu1 %2416  ;;  %v2414_v55 = vpop.permute.xlu0 %2413  ;;  %v2444_v32 = vrot.slane %v2412_v3, 4  ;;  %v3743_v3 = vld [vmem:[%s5587_s25 + $0xc0] sm:$0xff] }
 0xae9   : > { %v2419_v0 = vsel %vm1388_vm11, %v2414_v55, %v2417_v12  ;;  %v3742_v12 = vld [vmem:[%s5587_s25 + $0xb8] sm:$0xff]  ;;  %v3741_v55 = vld [vmem:[%s5587_s25 + $0xb0] sm:$0xff]  ;;  %vm5590_vm11 = vmmov %vm5589_vm10 }
 0xaea   : > { %v2420_v59 = vmul.f32 %v2419_v0, %v4733_v50  ;;  %v2451_v40 = vsel %vm896_vm1, %v2404_v48, %v2444_v32  ;;  %v3740_v0 = vld [vmem:[%s5587_s25 + $0xa8] sm:$0xff] }
 0xaec   : > { %v2400_v1 = vpop.permute.xlu1 %2399  ;;  %v2397_v63 = vpop.permute.xlu0 %2396  ;;  %v2452_v38 = vsel %vm896_vm1, %v2420_v59, %v2447_v44  ;;  %v3739_v44 = vld [vmem:[%s5587_s25 + $0xa0] sm:$0xff] }
 0xaed   : > { %4005 = vmatpush3.msra.mxu0 %v2452_v38  ;;  %v2402_v15 = vsel %vm761_vm5, %v2397_v63, %v2400_v1 }
 0xaee   : > { %4006 = vmatprep.subr.mxu0 %v4107_v2  ;;  %v2403_v50 = vmul.f32 %v2402_v15, %v4744_v28 }
 0xaef   : > { %4007 = vmatpush3.msra.mxu0 %v2451_v40 }
 0xaf0   : > { %v2384_v8 = vpop.permute.xlu1 %2383  ;;  %v2381_v36 = vpop.permute.xlu0 %2380  ;;  %4008 = vmatprep.subr.mxu0 %v4107_v2  ;;  %v2441_v18 = vrot.slane %v2403_v50, 4 }
 0xaf1   : > { %v2386_v49 = vsel %vm1332_vm12, %v2381_v36, %v2384_v8  ;;  %vm5591_vm12 = vmmov %vm5589_vm10 }
 0xaf2   : > { %v2387_v14 = vmul.f32 %v2386_v49, %v4752_v26 }
 0xaf4   : > { %v2392_v51 = vpop.permute.xlu1 %2391  ;;  %v2389_v35 = vpop.permute.xlu0 %2388  ;;  %v2438_v29 = vrot.slane %v2387_v14, 4 }
 0xaf5   : > { %v2394_v53 = vsel %vm1345_vm8, %v2389_v35, %v2392_v51  ;;  %vm2616_vm8 = vcmask 519168  }
 0xaf6   : > { %v2395_v7 = vmul.f32 %v2394_v53, %v4755_v42  ;;  %v2523_v42 = vpop.f32.mrf.mxu1 }
 0xaf8   : > { %v2376_v56 = vpop.permute.xlu1 %2375  ;;  %v2373_v5 = vpop.permute.xlu0 %2372  ;;  %v2450_v31 = vsel %vm896_vm1, %v2395_v7, %v2441_v18 }
 0xaf9   : > { %v2378_v4 = vsel %vm1319_vm4, %v2373_v5, %v2376_v56  ;;  %4009 = vmatpush3.msra.mxu0 %v2450_v31  ;;  %v4001_v43 = vpop.f32.mrf.mxu1  ;;  %v2629_v5 = vld [vmem:[%s5455_s17 + $0x8] sm:$0xff]  ;;  %v2729_v31 = vld [vmem:[%s5587_s25 + $0x78] sm:$0xff] }
 0xafa   : > { %v2379_v28 = vmul.f32 %v2378_v4, %v4762_v54  ;;  %4010 = vmatprep.subr.mxu0 %v4107_v2  ;;  %v3750_v54 = vld [vmem:[%s5587_s25 + $0xf8] sm:$0xff]  ;;  %v2728_v4 = vld [vmem:[%s5587_s25 + $0x70] sm:$0xff]  ;;  %v2722_v43 = vld [vmem:[%s5587_s25 + $0x40] sm:$0xff] }
 0xafc   : > { %v2449_v26 = vsel %vm896_vm1, %v2379_v28, %v2438_v29  ;;  %v2727_v29 = vld [vmem:[%s5587_s25 + $0x68] sm:$0xff]  ;;  %v2726_v28 = vld [vmem:[%s5587_s25 + $0x60] sm:$0xff] }
 0xafd   : > { %4011 = vmatpush3.msra.mxu0 %v2449_v26  ;;  %v2724_v26 = vld [vmem:[%s5587_s25 + $0x50] sm:$0xff] }
 0xafe   : > { %4013 = vmatmul.mubr.msk.f32.vlgmr.msra.gmra.mxu0 %vm905_vm9, %v2370_v20  ;;  %2767 = vmatprep.subr.mxu0 %v3750_v54  ;;  %v2725_v20 = vld [vmem:[%s5587_s25 + $0x58] sm:$0xff]  ;;  %v2720_v54 = vld [vmem:[%s5587_s25 + $0x30] sm:$0xff] }
 0xaff   : > { %2815 = vmatprep.mubr.f32.mxu0 %v4107_v2  ;;  %2768 = vmatpush1.msra.mxu0 %v3749_v45  ;;  %v2719_v45 = vld [vmem:[%s5587_s25 + $0x28] sm:$0xff] }
 0xb00   : > { %2769 = vmatprep.subr.mxu0 %v3748_v52  ;;  %v2718_v52 = vld [vmem:[%s5587_s25 + $0x20] sm:$0xff] }
 0xb01   : > { %2770 = vmatpush1.msra.mxu0 %v3747_v60  ;;  %v2717_v60 = vld [vmem:[%s5587_s25 + $0x18] sm:$0xff] }
 0xb02   : > { %2771 = vmatprep.subr.mxu0 %v3746_v23  ;;  %v2716_v23 = vld [vmem:[%s5587_s25 + $0x10] sm:$0xff] }
 0xb03   : > { %2772 = vmatpush1.msra.mxu0 %v3745_v61  ;;  %v3738_v61 = vld [vmem:[%s5587_s25 + $0x98] sm:$0xff] }
 0xb04   : > { %2773 = vmatprep.subr.mxu0 %v3744_v13  ;;  %v2715_v13 = vld [vmem:[%s5587_s25 + $0x8] sm:$0xff] }
 0xb05   : > { %2774 = vmatpush1.msra.mxu0 %v3743_v3  ;;  %v2613_v40 = vpop.permute.xlu0 %2612  ;;  %v3737_v3 = vld [vmem:[%s5587_s25 + $0x90] sm:$0xff] }
 0xb06   : > { %2775 = vmatprep.subr.mxu0 %v3742_v12  ;;  %v2714_v12 = vld [vmem:[%s5587_s25] sm:$0xff] }
 0xb07   : > { %2776 = vmatpush1.msra.mxu0 %v3741_v55  ;;  %v3736_v55 = vld [vmem:[%s5587_s25 + $0x88] sm:$0xff] }
 0xb08   : > { %2777 = vmatprep.subr.mxu0 %v3740_v0  ;;  %v3785_v0 = vld [vmem:[%s5587_s25 + $0x1f8] sm:$0xff] }
 0xb09   : > { %2778 = vmatpush1.msra.mxu0 %v3739_v44  ;;  %v3735_v44 = vld [vmem:[%s5587_s25 + $0x80] sm:$0xff] }
 0xb0a   : > { %2779 = vmatprep.subr.mxu0 %v3738_v61  ;;  %v3753_v61 = vld [vmem:[%s5587_s25 + $0x100] sm:$0xff] }
 0xb0b   : > { %2780 = vmatpush1.msra.mxu0 %v3737_v3 }
 0xb0c   : > { %2781 = vmatprep.subr.mxu0 %v3736_v55 }
 0xb0d   : > { %2782 = vmatpush1.msra.mxu0 %v3735_v44 }
 0xbbe   : > { %v2599_v32 = vpop.f32.mrf.mxu0 }
 0xbbf   : > { %v2600_v59 = vadd.f32 %v2599_v32, %v2523_v42  ;;  %v2723_v42 = vld [vmem:[%s5587_s25 + $0x48] sm:$0xff]  ;;  %v3768_v32 = vld [vmem:[%s5587_s25 + $0x178] sm:$0xff] }
 0xbc0   : > { %v4014_v1 = vpop.f32.mrf.mxu0  ;;  %2931 = vmatprep.subr.mxu0 %v3768_v32 }
 0xbc1   : > { %v2604_v63 = vmin.f32 %v2600_v59, 0.0  ;;  %vm2603_vm4 = vcmp.gt.f32.partialorder %v2600_v59, 0.0  ;;  %v3784_v1 = vld [vmem:[%s5587_s25 + $0x1f0] sm:$0xff] }
 0xbc3   : > { %v2605_v38 = vmul.f32 1.442695, %v2604_v63 }
 0xbc5   : > { %4081 = vpow2.f32 %v2605_v38  ;;  %v3783_v38 = vld [vmem:[%s5587_s25 + $0x1e8] sm:$0xff] }
 0xbd2   : > { %v4082_v48 = vpop.eup %4081 }
 0xbd3   : > { %v3730_v15 = vadd.f32 -1.0, %v4082_v48 }
 0xbd5   : > { %v2608_v8 = vsel %vm2603_vm4, %v2600_v59, %v3730_v15  ;;  %v3782_v15 = vld [vmem:[%s5587_s25 + $0x1e0] sm:$0xff]  ;;  %vm5601_vm4 = vcmask 916480  }
 0xbd6   : > { %v2615_v36 = vmul.f32 %v2613_v40, %v2608_v8  ;;  %v3767_v40 = vld [vmem:[%s5587_s25 + $0x170] sm:$0xff] }
 0xbd8   : > { %v2617_v50 = vsel %vm2616_vm8, %v2615_v36, 0.0  ;;  %v3781_v36 = vld [vmem:[%s5587_s25 + $0x1d8] sm:$0xff]  ;;  %vm5602_vm8 = vmmov %vm5601_vm4 }
 0xbd9   : > { %v2618_v49 = vrot.slane %v2617_v50, 4 }
 0xbdb   : > { %v2619_v51 = vadd.f32 %v2618_v49, %v2617_v50  ;;  %v3765_v50 = vld [vmem:[%s5587_s25 + $0x160] sm:$0xff]  ;;  %v3780_v49 = vld [vmem:[%s5587_s25 + $0x1d0] sm:$0xff] }
 0xbdd   : > { %v2620_v35 = vrot.slane %v2619_v51, 2 }
 0xbdf   : > { %v2621_v53 = vadd.f32 %v2620_v35, %v2619_v51  ;;  %v3764_v51 = vld [vmem:[%s5587_s25 + $0x158] sm:$0xff]  ;;  %v3779_v35 = vld [vmem:[%s5587_s25 + $0x1c8] sm:$0xff] }
 0xbe1   : > { %v2622_v18 = vrot.slane %v2621_v53, 1 }
 0xbe3   : > { %v2623_v14 = vadd.f32 %v2622_v18, %v2621_v53  ;;  %v3763_v53 = vld [vmem:[%s5587_s25 + $0x150] sm:$0xff]  ;;  %v3778_v18 = vld [vmem:[%s5587_s25 + $0x1c0] sm:$0xff] }
 0xbe5   : > { %vm2624_vm14 = vcmp.ge.f32.partialorder %v2623_v14, 0.0  ;;  %v3762_v14 = vld [vmem:[%s5587_s25 + $0x148] sm:$0xff] }
 0xbe6   : > { %v3731_v7 = vsel %vm2624_vm14, 1.0, %v4107_v2  ;;  %vm5604_vm14 = vcmask 1039360  }
 0xbe7   : > { %v2627_v56 = vmul.f32 %v3731_v7, %v2608_v8  ;;  %v3766_v8 = vld [vmem:[%s5587_s25 + $0x168] sm:$0xff]  ;;  %v3777_v7 = vld [vmem:[%s5587_s25 + $0x1b8] sm:$0xff] }
 0xbe9   : > { %4015 = vmatprep.subr.msk.mxu1 %vm896_vm1, %v2627_v56 }
 0xbea   : > { %4016 = vmatpush3.msk.msra.mxu1 %vm896_vm1, %v2627_v56  ;;  %v3761_v56 = vld [vmem:[%s5587_s25 + $0x140] sm:$0xff] }
 0xbeb   : > { %4018 = vmatmul.mubr.msk.f32.vlgmr.msra.gmra.mxu1 %vm1787_vm0, %v2629_v5  ;;  %2840 = vmatprep.subr.mxu1 %v2729_v31  ;;  %v3776_v5 = vld [vmem:[%s5587_s25 + $0x1b0] sm:$0xff]  ;;  %v3760_v31 = vld [vmem:[%s5587_s25 + $0x138] sm:$0xff] }
 0xbec   : > { %2841 = vmatpush1.msra.mxu1 %v2728_v4  ;;  %2888 = vmatprep.mubr.f32.mxu1 %v4107_v2  ;;  %v3775_v4 = vld [vmem:[%s5587_s25 + $0x1a8] sm:$0xff] }
 0xbed   : > { %2842 = vmatprep.subr.mxu1 %v2727_v29  ;;  %v3759_v29 = vld [vmem:[%s5587_s25 + $0x130] sm:$0xff] }
 0xbee   : > { %2843 = vmatpush1.msra.mxu1 %v2726_v28  ;;  %v3774_v28 = vld [vmem:[%s5587_s25 + $0x1a0] sm:$0xff] }
 0xbef   : > { %2844 = vmatprep.subr.mxu1 %v2725_v20  ;;  %v3758_v20 = vld [vmem:[%s5587_s25 + $0x128] sm:$0xff] }
 0xbf0   : > { %2845 = vmatpush1.msra.mxu1 %v2724_v26  ;;  %v3773_v26 = vld [vmem:[%s5587_s25 + $0x198] sm:$0xff] }
 0xbf1   : > { %2846 = vmatprep.subr.mxu1 %v2723_v42  ;;  %v3757_v42 = vld [vmem:[%s5587_s25 + $0x120] sm:$0xff] }
 0xbf2   : > { %2847 = vmatpush1.msra.mxu1 %v2722_v43  ;;  %v3772_v43 = vld [vmem:[%s5587_s25 + $0x190] sm:$0xff] }
 0xbf3   : > { %2848 = vmatprep.subr.mxu1 %v2721_v62  ;;  %v3756_v62 = vld [vmem:[%s5587_s25 + $0x118] sm:$0xff] }
 0xbf4   : > { %2849 = vmatpush1.msra.mxu1 %v2720_v54  ;;  %v3771_v54 = vld [vmem:[%s5587_s25 + $0x188] sm:$0xff] }
 0xbf5   : > { %2850 = vmatprep.subr.mxu1 %v2719_v45  ;;  %v3755_v45 = vld [vmem:[%s5587_s25 + $0x110] sm:$0xff] }
 0xbf6   : > { %2851 = vmatpush1.msra.mxu1 %v2718_v52  ;;  %v3770_v52 = vld [vmem:[%s5587_s25 + $0x180] sm:$0xff] }
 0xbf7   : > { %2852 = vmatprep.subr.mxu1 %v2717_v60  ;;  %v3754_v60 = vld [vmem:[%s5587_s25 + $0x108] sm:$0xff] }
 0xbf8   : > { %2853 = vmatpush1.msra.mxu1 %v2716_v23 }
 0xbf9   : > { %2854 = vmatprep.subr.mxu1 %v2715_v13 }
 0xbfa   : > { %2855 = vmatpush1.msra.mxu1 %v2714_v12 }
 0xbfb   : > { %3024 = vmatprep.subr.mxu1 %v3785_v0 }
 0xcab   : > { %v5144_v59 = vpop.f32.mrf.mxu1 }
 0xcac   : > { %v3005_v23 = vrot.slane %v5144_v59, 4 }
 0xcad   : > { %v2705_v63 = vpop.f32.mrf.mxu1 }
 0xcae   : > { %v2748_v48 = vrot.slane %v2705_v63, 4  ;;  %3752 = vmatmul.mubr.msk.f32.vlgmr.msra.gmra.mxu1 %vm5588_vm15, %v2705_v63  ;;  %vm5605_vm15 = vmmov %vm5604_vm14 }
 0xcaf   : > { %3025 = vmatpush1.msra.mxu1 %v3784_v1  ;;  %3072 = vmatprep.mubr.f32.mxu1 %v4107_v2 }
 0xcb0   : > { %3026 = vmatprep.subr.mxu1 %v3783_v38  ;;  %3751 = vmatmul.mubr.msk.f32.vlgmr.msra.gmra.mxu0 %vm5589_vm10, %v2748_v48  ;;  %vm5606_vm10 = vcmask 924672  }
 0xcb1   : > { %2932 = vmatpush1.msra.mxu0 %v3767_v40  ;;  %3027 = vmatpush1.msra.mxu1 %v3782_v15 }
 0xcb2   : > { %2933 = vmatprep.subr.mxu0 %v3766_v8  ;;  %3028 = vmatprep.subr.mxu1 %v3781_v36  ;;  %v3218_v8 = vld [vmem:[%s5596_s9] sm:$0xf] }
 0xcb3   : > { %2934 = vmatpush1.msra.mxu0 %v3765_v50  ;;  %3029 = vmatpush1.msra.mxu1 %v3780_v49  ;;  %v3385_v36 = vld [vmem:[%s5598_s26] sm:$0xf] }
 0xcb4   : > { %2935 = vmatprep.subr.mxu0 %v3764_v51  ;;  %3030 = vmatprep.subr.mxu1 %v3779_v35 }
 0xcb5   : > { %2936 = vmatpush1.msra.mxu0 %v3763_v53  ;;  %3031 = vmatpush1.msra.mxu1 %v3778_v18 }
 0xcb6   : > { %2937 = vmatprep.subr.mxu0 %v3762_v14  ;;  %3032 = vmatprep.subr.mxu1 %v3777_v7 }
 0xcb7   : > { %2938 = vmatpush1.msra.mxu0 %v3761_v56  ;;  %3033 = vmatpush1.msra.mxu1 %v3776_v5 }
 0xcb8   : > { %2939 = vmatprep.subr.mxu0 %v3760_v31  ;;  %3034 = vmatprep.subr.mxu1 %v3775_v4 }
 0xcb9   : > { %2940 = vmatpush1.msra.mxu0 %v3759_v29  ;;  %3035 = vmatpush1.msra.mxu1 %v3774_v28  ;;  %v5309_v28 = vld [vmem:[%s5603_s4 + $0x10] ss:$0 sm:$0xff] }
 0xcba   : > { %2941 = vmatprep.subr.mxu0 %v3758_v20  ;;  %3036 = vmatprep.subr.mxu1 %v3773_v26  ;;  %v5315_v26 = vld [vmem:[%s5603_s4 + $0x18] ss:$0 sm:$0xff] }
 0xcbb   : > { %2942 = vmatpush1.msra.mxu0 %v3757_v42  ;;  %3037 = vmatpush1.msra.mxu1 %v3772_v43 }
 0xcbc   : > { %2943 = vmatprep.subr.mxu0 %v3756_v62  ;;  %3038 = vmatprep.subr.mxu1 %v3771_v54 }
 0xcbd   : > { %2944 = vmatpush1.msra.mxu0 %v3755_v45  ;;  %3039 = vmatpush1.msra.mxu1 %v3770_v52 }
 0xcbe   : > { %2945 = vmatprep.subr.mxu0 %v3754_v60  ;;  %3786 = vmatmul.mubr.msk.f32.vlgmr.msra.gmra.mxu1 %vm5590_vm11, %v3005_v23  ;;  %vm5607_vm11 = vmmov %vm5606_vm10 }
 0xcbf   : > { %2946 = vmatpush1.msra.mxu0 %v3753_v61  ;;  %2979 = vmatprep.mubr.f32.mxu0 %v4107_v2 }
 0xcc0   : > { %3769 = vmatmul.mubr.msk.f32.vlgmr.msra.gmra.mxu0 %vm5591_vm12, %v5144_v59  ;;  %3789 = vmatprep.subr.msk.mxu0 %vm896_vm1, %v4583_v33  ;;  %vm5610_vm12 = vcmask 138240  }
 0xcc1   : > { %3790 = vmatpush1.msk.msra.mxu0 %vm896_vm1, %v4586_v34  ;;  %3286 = vmatprep.mubr.f32.mxu0 %v4107_v2 }
 0xcc2   : > { %3246 = vmatprep.subr.mxu0 %v4611_v21  ;;  %3366 = vmatprep.mubr.f32.mxu1 %v4107_v2 }
 0xcc3   : > { %3247 = vmatpush1.msra.mxu0 %v4614_v9 }
 0xcc4   : > { %3248 = vmatprep.subr.mxu0 %v4627_v37 }
 0xcc5   : > { %3249 = vmatpush1.msra.mxu0 %v4631_v16 }
 0xcc6   : > { %3250 = vmatprep.subr.mxu0 %v4635_v6 }
 0xcc7   : > { %3251 = vmatpush1.msra.mxu0 %v4638_v41 }
 0xcc8   : > { %3252 = vmatprep.subr.mxu0 %v4647_v46 }
 0xcc9   : > { %3253 = vmatpush1.msra.mxu0 %v4650_v47 }
 0xcca   : > { %3791 = vmatmul.mubr.msk.f32.vlgmr.msra.gmra.mxu0 %vm905_vm9, %v3218_v8 }
 0xccb   : > { %3613 = vmatprep.mubr.f32.mxu0 %v4107_v2 }
 0xd6e   : > { %v2890_v33 = vpop.f32.mrf.mxu1 }
 0xd70   : > { %v2817_v34 = vpop.f32.mrf.mxu0  ;;  %v2892_v13 = vpop.f32.mrf.mxu1 }
 0xd71   : > { %v2891_v3 = vadd.f32 %v2890_v33, %v2817_v34 }
 0xd72   : > { %v2819_v21 = vpop.f32.mrf.mxu0 }
 0xd73   : > { %v2893_v9 = vadd.f32 %v2892_v13, %v2819_v21 }
 0xd7e   : > { %v3074_v12 = vpop.f32.mrf.mxu1 }
 0xd80   : > { %v2981_v55 = vpop.f32.mrf.mxu0  ;;  %v3076_v32 = vpop.f32.mrf.mxu1 }
 0xd81   : > { %v2986_v0 = vadd.f32 %v2981_v55, %v2891_v3 }
 0xd82   : > { %v2983_v37 = vpop.f32.mrf.mxu0 }
 0xd83   : > { %v3079_v44 = vadd.f32 %v3074_v12, %v2986_v0  ;;  %v2987_v16 = vadd.f32 %v2983_v37, %v2893_v9 }
 0xd85   : > { %v3083_v6 = vmin.f32 %v3079_v44, 0.0  ;;  %v3080_v59 = vadd.f32 %v3076_v32, %v2987_v16  ;;  %vm3081_vm0 = vcmp.gt.f32.partialorder %v3079_v44, 0.0 }
 0xd87   : > { %v3085_v41 = vmul.f32 1.442695, %v3083_v6  ;;  %v3084_v46 = vmin.f32 %v3080_v59, 0.0  ;;  %vm3082_vm3 = vcmp.gt.f32.partialorder %v3080_v59, 0.0 }
 0xd89   : > { %4083 = vpow2.f32 %v3085_v41  ;;  %v3087_v1 = vmul.f32 1.442695, %v3084_v46 }
 0xd8b   : > { %4085 = vpow2.f32 %v3087_v1 }
 0xd96   : > { %v4084_v47 = vpop.eup %4083 }
 0xd97   : > { %v3787_v63 = vadd.f32 -1.0, %v4084_v47 }
 0xd98   : > { %v4086_v48 = vpop.eup %4085 }
 0xd99   : > { %v5258_v38 = vsel %vm3081_vm0, %v3079_v44, %v3787_v63  ;;  %v3788_v40 = vadd.f32 -1.0, %v4086_v48  ;;  %vm5611_vm0 = vmmov %vm5610_vm12 }
 0xd9a   : > { %3175 = vrot.lane.b32.xlu0 %v5258_v38, %s5592_s20  ;;  %3164 = vrot.lane.b32.xlu1 %v5258_v38, %s5593_s19  ;;  %v3140_v46 = vmul.f32 %v5258_v38, %v4316_v10 }
 0xd9b   : > { %v5272_v15 = vsel %vm3082_vm3, %v3080_v59, %v3788_v40 }
 0xd9c   : > { %v3141_v40 = vmul.f32 %v5272_v15, %v4320_v11 }
 0xd9e   : > { %3142 = vrot.lane.b32.xlu0 %v5258_v38, %s5563_s24  ;;  %3132 = vrot.lane.b32.xlu1 %v5258_v38, %s5564_s30 }
 0xda2   : > { %3153 = vrot.lane.b32.xlu0 %v5258_v38, %s5583_s0  ;;  %3110 = vrot.lane.b32.xlu1 %v5258_v38, %s5594_s11 }
 0xda6   : > { %3129 = vrot.lane.b32.xlu0 %v5272_v15, %s5564_s30  ;;  %3166 = vrot.lane.b32.xlu1 %v5272_v15, %s5593_s19 }
 0xdaa   : > { %3107 = vrot.lane.b32.xlu0 %v5272_v15, %s5594_s11  ;;  %3177 = vrot.lane.b32.xlu1 %v5272_v15, %s5592_s20 }
 0xdae   : > { %3118 = vrot.lane.b32.xlu0 %v5272_v15, %s5595_s7  ;;  %3144 = vrot.lane.b32.xlu1 %v5272_v15, %s5563_s24 }
 0xdb2   : > { %3095 = vrot.lane.b32.xlu0 %v5272_v15, %s5597_s10  ;;  %3155 = vrot.lane.b32.xlu1 %v5272_v15, %s5583_s0 }
 0xdb6   : > { %3388 = vperm.xlu0 %4065, %v3385_v36   ;;  %3121 = vrot.lane.b32.xlu1 %v5258_v38, %s5595_s7 }
 0xdba   : > { %3099 = vrot.lane.b32.xlu1 %v5258_v38, %s5597_s10  ;;  %v5608_v38 = vld [vmem:[#allocation4_spill] sm:$0xff] }
 0xe0c   : > { %v3176_v50 = vpop.permute.xlu0 %3175  ;;  %v3165_v49 = vpop.permute.xlu1 %3164 }
 0xe10   : > { %v3143_v51 = vpop.permute.xlu0 %3142  ;;  %v3133_v35 = vpop.permute.xlu1 %3132 }
 0xe14   : > { %v3154_v53 = vpop.permute.xlu0 %3153  ;;  %v3111_v18 = vpop.permute.xlu1 %3110 }
 0xe18   : > { %v3167_v14 = vpop.permute.xlu1 %3166  ;;  %v3130_v7 = vpop.permute.xlu0 %3129 }
 0xe19   : > { %v3168_v4 = vsel %vm5601_vm4, %v3165_v49, %v3167_v14  ;;  %v3172_v29 = vsel %vm5602_vm8, %v3167_v14, %v3165_v49  ;;  %v3134_v43 = vsel %vm761_vm5, %v3133_v35, %v3130_v7  ;;  %v3137_v62 = vsel %vm761_vm5, %v3130_v7, %v3133_v35 }
 0xe1a   : > { %v3173_v52 = vmul.f32 %v3168_v4, %v4352_v24  ;;  %v3174_v60 = vmul.f32 %v3172_v29, %v4356_v25  ;;  %v3138_v13 = vmul.f32 %v3137_v62, %v4393_v57  ;;  %v3139_v21 = vmul.f32 %v3134_v43, %v4397_v58  ;;  %v5612_v43 = vld [vmem:[#allocation6_spill] sm:$0xff] }
 0xe1c   : > { %v3178_v56 = vpop.permute.xlu1 %3177  ;;  %v3108_v54 = vpop.permute.xlu0 %3107  ;;  %v3206_v12 = vrot.slane %v3173_v52, 4  ;;  %v3207_v55 = vrot.slane %v3174_v60, 4  ;;  %v3194_v1 = vrot.slane %v3138_v13, 4  ;;  %v3195_v8 = vrot.slane %v3139_v21, 4 }
 0xe1d   : > { %v3179_v5 = vsel %vm5599_vm2, %v3176_v50, %v3178_v56  ;;  %v3183_v31 = vsel %vm5600_vm13, %v3178_v56, %v3176_v50  ;;  %v3115_v37 = vsel %vm721_vm6, %v3108_v54, %v3111_v18  ;;  %v3112_v59 = vsel %vm721_vm6, %v3111_v18, %v3108_v54  ;;  %v5613_v54 = vld [vmem:[#allocation7_spill] sm:$0xff] }
 0xe1e   : > { %v3184_v20 = vmul.f32 %v5309_v28, %v3179_v5  ;;  %v3185_v42 = vmul.f32 %v5315_v26, %v3183_v31  ;;  %v3116_v36 = vmul.f32 %v3115_v37, %v4416_v17 }
 0xe20   : > { %3792 = vmatprep.subr.msk.mxu1 %vm896_vm1, %v3185_v42  ;;  %v3145_v45 = vpop.permute.xlu1 %3144  ;;  %v3119_v44 = vpop.permute.xlu0 %3118 }
 0xe21   : > { %v3146_v23 = vsel %vm5604_vm14, %v3143_v51, %v3145_v45  ;;  %v3150_v61 = vsel %vm5605_vm15, %v3145_v45, %v3143_v51  ;;  %3793 = vmatpush1.msk.msra.mxu1 %vm896_vm1, %v3184_v20  ;;  %v3117_v51 = vmul.f32 %v3112_v59, %v4420_v19  ;;  %v3188_v20 = vrot.slane %v3116_v36, 4 }
 0xe22   : > { %v3152_v33 = vmul.f32 %v3150_v61, %v4347_v22  ;;  %v3151_v34 = vmul.f32 %v3146_v23, %v4361_v27  ;;  %v3093_v23 = vld [vmem:[%s5614_s22] sm:$0xf]  ;;  %v3288_v61 = vpop.f32.mrf.mxu0  ;;  %vm5615_vm14 = vcmask 908288  }
 0xe23   : > { %v3189_v42 = vrot.slane %v3117_v51, 4  ;;  %vm5616_vm15 = vmmov %vm5615_vm14 }
 0xe24   : > { %v3156_v3 = vpop.permute.xlu1 %3155  ;;  %v3201_v16 = vrot.slane %v3152_v33, 4  ;;  %v3200_v41 = vrot.slane %v3151_v34, 4  ;;  %v3096_v7 = vpop.permute.xlu0 %3095 }
 0xe25   : > { %v3157_v9 = vsel %vm5606_vm10, %v3154_v53, %v3156_v3  ;;  %v3161_v0 = vsel %vm5607_vm11, %v3156_v3, %v3154_v53  ;;  %v5609_v53 = vld [vmem:[#allocation5_spill] sm:$0xff]  ;;  %v3290_v13 = vpop.f32.mrf.mxu0  ;;  %vm5617_vm10 = vmmov %vm5602_vm8  ;;  %vm5618_vm11 = vcmask 1039360  }
 0xe26   : > { %v3162_v32 = vmul.f32 %v3157_v9, %v4366_v30  ;;  %v3163_v6 = vmul.f32 %v3161_v0, %v4379_v39  ;;  %v3215_v14 = vsel %vm896_vm1, %v3141_v40, %v3201_v16  ;;  %v3214_v15 = vsel %vm896_vm1, %v3140_v46, %v3200_v41 }
 0xe28   : > { %v3122_v47 = vpop.permute.xlu1 %3121  ;;  %v3217_v63 = vsel %vm896_vm1, %v3163_v6, %v3207_v55  ;;  %v3216_v48 = vsel %vm896_vm1, %v3162_v32, %v3206_v12 }
 0xe29   : > { %v3123_v50 = vsel %vm741_vm7, %v3122_v47, %v3119_v44  ;;  %v3126_v49 = vsel %vm741_vm7, %v3119_v44, %v3122_v47  ;;  %3326 = vmatprep.subr.mxu1 %v3217_v63 }
 0xe2a   : > { %v3127_v35 = vmul.f32 %v3126_v49, %v5608_v38  ;;  %v3128_v18 = vmul.f32 %v3123_v50, %v5609_v53  ;;  %3327 = vmatpush1.msra.mxu1 %v3216_v48 }
 0xe2b   : > { %3328 = vmatprep.subr.mxu1 %v3215_v14 }
 0xe2c   : > { %v3100_v56 = vpop.permute.xlu1 %3099  ;;  %3329 = vmatpush1.msra.mxu1 %v3214_v15  ;;  %v3213_v5 = vsel %vm896_vm1, %v3128_v18, %v3195_v8  ;;  %v3212_v31 = vsel %vm896_vm1, %v3127_v35, %v3194_v1 }
 0xe2d   : > { %v3101_v4 = vsel %vm5610_vm12, %v3100_v56, %v3096_v7  ;;  %v3104_v29 = vsel %vm5611_vm0, %v3096_v7, %v3100_v56  ;;  %3330 = vmatprep.subr.mxu1 %v3213_v5  ;;  %vm5619_vm12 = vmmov %vm5618_vm11  ;;  %vm5620_vm0 = vcmask 924672  }
 0xe2e   : > { %v3105_v62 = vmul.f32 %v3104_v29, %v5612_v43  ;;  %v3106_v45 = vmul.f32 %v3101_v4, %v5613_v54  ;;  %3331 = vmatpush1.msra.mxu1 %v3212_v31 }
 0xe30   : > { %v3211_v52 = vsel %vm896_vm1, %v3106_v45, %v3189_v42  ;;  %v3210_v60 = vsel %vm896_vm1, %v3105_v62, %v3188_v20 }
 0xe31   : > { %3332 = vmatprep.subr.mxu1 %v3211_v52  ;;  %v3389_v32 = vpop.permute.xlu0 %3388 }
 0xe32   : > { %3333 = vmatpush1.msra.mxu1 %v3210_v60 }
 0xe33   : > { %3794 = vmatmul.mubr.msk.f32.vlgmr.msra.gmra.mxu1 %vm905_vm9, %v3093_v23 }
 0xef3   : > { %v3368_v33 = vpop.f32.mrf.mxu1 }
 0xef4   : > { %v3369_v34 = vadd.f32 %v3368_v33, %v3288_v61 }
 0xef5   : > { %v3370_v21 = vpop.f32.mrf.mxu1 }
 0xef6   : > { %v3375_v3 = vmin.f32 %v3369_v34, 0.0  ;;  %v3371_v12 = vadd.f32 %v3370_v21, %v3290_v13  ;;  %vm3373_vm3 = vcmp.gt.f32.partialorder %v3369_v34, 0.0 }
 0xef8   : > { %v3377_v55 = vmul.f32 1.442695, %v3375_v3  ;;  %v3376_v9 = vmin.f32 %v3371_v12, 0.0  ;;  %vm3374_vm2 = vcmp.gt.f32.partialorder %v3371_v12, 0.0 }
 0xefa   : > { %4087 = vpow2.f32 %v3377_v55  ;;  %v3379_v0 = vmul.f32 1.442695, %v3376_v9 }
 0xefc   : > { %4089 = vpow2.f32 %v3379_v0 }
 0xf07   : > { %v4088_v37 = vpop.eup %4087 }
 0xf08   : > { %v3795_v44 = vadd.f32 -1.0, %v4088_v37 }
 0xf09   : > { %v4090_v16 = vpop.eup %4089 }
 0xf0a   : > { %v3383_v6 = vsel %vm3373_vm3, %v3369_v34, %v3795_v44  ;;  %v3796_v59 = vadd.f32 -1.0, %v4090_v16  ;;  %vm5621_vm3 = vmmov %vm5620_vm0 }
 0xf0b   : > { %v3391_v41 = vmul.f32 %v3389_v32, %v3383_v6 }
 0xf0c   : > { %v3384_v46 = vsel %vm3374_vm2, %v3371_v12, %v3796_v59 }
 0xf0d   : > { %v3393_v1 = vsel %vm896_vm1, %v3391_v41, 0.0  ;;  %v3392_v47 = vmul.f32 %v3389_v32, %v3384_v46 }
 0xf0e   : > { %v3394_v63 = vrot.slane %v3393_v1, 4 }
 0xf0f   : > { %v3400_v48 = vsel %vm896_vm1, %v3392_v47, 0.0 }
 0xf10   : > { %v3395_v40 = vadd.f32 %v3394_v63, %v3393_v1  ;;  %v3401_v8 = vrot.slane %v3400_v48, 4 }
 0xf12   : > { %v3396_v36 = vrot.slane %v3395_v40, 2  ;;  %v3402_v50 = vadd.f32 %v3401_v8, %v3400_v48 }
 0xf14   : > { %v3397_v49 = vadd.f32 %v3396_v36, %v3395_v40  ;;  %v3403_v51 = vrot.slane %v3402_v50, 2 }
 0xf16   : > { %v3398_v35 = vrot.slane %v3397_v49, 1  ;;  %v3404_v18 = vadd.f32 %v3403_v51, %v3402_v50 }
 0xf18   : > { %v3399_v14 = vadd.f32 %v3398_v35, %v3397_v49  ;;  %v3405_v15 = vrot.slane %v3404_v18, 1 }
 0xf1a   : > { %vm3407_vm13 = vcmp.ge.f32.partialorder %v3399_v14, 0.0  ;;  %v3406_v7 = vadd.f32 %v3405_v15, %v3404_v18 }
 0xf1b   : > { %v3797_v56 = vsel %vm3407_vm13, 1.0, %v4107_v2 }
 0xf1c   : > { %v3413_v5 = vmul.f32 %v3797_v56, %v3383_v6  ;;  %vm3408_vm4 = vcmp.ge.f32.partialorder %v3406_v7, 0.0 }
 0xf1d   : > { %v3798_v31 = vsel %vm3408_vm4, 1.0, %v4107_v2 }
 0xf1e   : > { %3454 = vrot.lane.b32.xlu0 %v3413_v5, %s5564_s30  ;;  %3486 = vrot.lane.b32.xlu1 %v3413_v5, %s5593_s19  ;;  %v3414_v4 = vmul.f32 %v3798_v31, %v3384_v46 }
 0xf20   : > { %v3463_v51 = vmul.f32 %v3414_v4, %v4320_v11 }
 0xf22   : > { %3432 = vrot.lane.b32.xlu0 %v3413_v5, %s5594_s11  ;;  %3497 = vrot.lane.b32.xlu1 %v3413_v5, %s5592_s20 }
 0xf26   : > { %3488 = vrot.lane.b32.xlu0 %v3414_v4, %s5593_s19  ;;  %3464 = vrot.lane.b32.xlu1 %v3413_v5, %s5563_s24 }
 0xf2a   : > { %3499 = vrot.lane.b32.xlu0 %v3414_v4, %s5592_s20  ;;  %3475 = vrot.lane.b32.xlu1 %v3413_v5, %s5583_s0 }
 0xf2e   : > { %3466 = vrot.lane.b32.xlu0 %v3414_v4, %s5563_s24  ;;  %3451 = vrot.lane.b32.xlu1 %v3414_v4, %s5564_s30 }
 0xf32   : > { %3477 = vrot.lane.b32.xlu0 %v3414_v4, %s5583_s0  ;;  %3429 = vrot.lane.b32.xlu1 %v3414_v4, %s5594_s11  ;;  %s5623_s0 = sld [smem:[#allocation3_spill]] }
 0xf36   : > { %3443 = vrot.lane.b32.xlu0 %v3413_v5, %s5595_s7  ;;  %3440 = vrot.lane.b32.xlu1 %v3414_v4, %s5595_s7  ;;  %s5627_s7 = sld [smem:[#allocation24_spill]] }
 0xf38   : > { %s5626_s20 = sshll.u32 %s5623_s0, 3 }
 0xf3a   : > { %3421 = vrot.lane.b32.xlu0 %v3413_v5, %s5597_s10  ;;  %3417 = vrot.lane.b32.xlu1 %v3414_v4, %s5597_s10 }
 0xf3c   : > { %s683_s8 = scalar_lea.vmem %s5627_s7, %s5626_s20 }
 0xf90   : > { %v3455_v2 = vpop.permute.xlu0 %3454  ;;  %v3487_v29 = vpop.permute.xlu1 %3486 }
 0xf94   : > { %v3433_v20 = vpop.permute.xlu0 %3432  ;;  %v3498_v42 = vpop.permute.xlu1 %3497 }
 0xf98   : > { %v3489_v62 = vpop.permute.xlu0 %3488  ;;  %v3465_v45 = vpop.permute.xlu1 %3464 }
 0xf99   : > { %v3490_v23 = vsel %vm5602_vm8, %v3487_v29, %v3489_v62  ;;  %v3494_v34 = vsel %vm5617_vm10, %v3489_v62, %v3487_v29  ;;  %v3415_v62 = vld [vmem:[%s5625_s28] sm:$0x7] }
 0xf9a   : > { %v3495_v3 = vmul.f32 %v3490_v23, %v4352_v24  ;;  %v3496_v9 = vmul.f32 %v3494_v34, %v4356_v25 }
 0xf9c   : > { %v3500_v52 = vpop.permute.xlu0 %3499  ;;  %v3476_v60 = vpop.permute.xlu1 %3475  ;;  %v3528_v16 = vrot.slane %v3495_v3, 4  ;;  %v3529_v25 = vrot.slane %v3496_v9, 4 }
 0xf9d   : > { %v3501_v61 = vsel %vm5615_vm14, %v3498_v42, %v3500_v52  ;;  %v3505_v33 = vsel %vm5616_vm15, %v3500_v52, %v3498_v42 }
 0xf9e   : > { %v3506_v13 = vmul.f32 %v5309_v28, %v3501_v61  ;;  %v3507_v21 = vmul.f32 %v5315_v26, %v3505_v33 }
 0xfa0   : > { %v3467_v12 = vpop.permute.xlu0 %3466  ;;  %3799 = vmatprep.subr.msk.mxu0 %vm896_vm1, %v3507_v21  ;;  %v3452_v55 = vpop.permute.xlu1 %3451 }
 0xfa1   : > { %v3468_v0 = vsel %vm5618_vm11, %v3465_v45, %v3467_v12  ;;  %v3472_v37 = vsel %vm5619_vm12, %v3467_v12, %v3465_v45  ;;  %v3459_v44 = vsel %vm761_vm5, %v3452_v55, %v3455_v2  ;;  %3800 = vmatpush1.msk.msra.mxu0 %vm896_vm1, %v3506_v13  ;;  %v3456_v26 = vsel %vm761_vm5, %v3455_v2, %v3452_v55 }
 0xfa2   : > { %v3474_v28 = vmul.f32 %v3472_v37, %v4347_v22  ;;  %v3473_v24 = vmul.f32 %v3468_v0, %v4361_v27  ;;  %v3460_v32 = vmul.f32 %v3459_v44, %v4393_v57  ;;  %v3461_v41 = vmul.f32 %v3456_v26, %v4397_v58 }
 0xfa3   : > { %v3462_v57 = vmul.f32 %v3413_v5, %v4316_v10  ;;  %vm5622_vm5 = vcmask 138240  }
 0xfa4   : > { %v3478_v6 = vpop.permute.xlu0 %3477  ;;  %v3430_v59 = vpop.permute.xlu1 %3429  ;;  %v3523_v47 = vrot.slane %v3474_v28, 4  ;;  %v3522_v27 = vrot.slane %v3473_v24, 4  ;;  %v3516_v8 = vrot.slane %v3460_v32, 4  ;;  %v3517_v35 = vrot.slane %v3461_v41, 4 }
 0xfa5   : > { %v3479_v46 = vsel %vm5620_vm0, %v3476_v60, %v3478_v6  ;;  %v3483_v1 = vsel %vm5621_vm3, %v3478_v6, %v3476_v60  ;;  %v3437_v48 = vsel %vm721_vm6, %v3430_v59, %v3433_v20  ;;  %v3434_v40 = vsel %vm721_vm6, %v3433_v20, %v3430_v59  ;;  %vm5624_vm6 = vmmov %vm5622_vm5 }
 0xfa6   : > { %v3484_v63 = vmul.f32 %v3479_v46, %v4366_v30  ;;  %v3485_v22 = vmul.f32 %v3483_v1, %v4379_v39  ;;  %v3438_v30 = vmul.f32 %v3437_v48, %v4416_v17  ;;  %v3439_v14 = vmul.f32 %v3434_v40, %v4420_v19 }
 0xfa7   : > { %v3537_v7 = vsel %vm896_vm1, %v3463_v51, %v3523_v47  ;;  %v3536_v11 = vsel %vm896_vm1, %v3462_v57, %v3522_v27 }
 0xfa8   : > { %v3444_v36 = vpop.permute.xlu0 %3443  ;;  %v3441_v50 = vpop.permute.xlu1 %3440  ;;  %v3539_v58 = vsel %vm896_vm1, %v3485_v22, %v3529_v25  ;;  %v3538_v49 = vsel %vm896_vm1, %v3484_v63, %v3528_v16  ;;  %v3511_v4 = vrot.slane %v3439_v14, 4 }
 0xfa9   : > { %v3445_v39 = vsel %vm741_vm7, %v3444_v36, %v3441_v50  ;;  %v3448_v18 = vsel %vm741_vm7, %v3441_v50, %v3444_v36  ;;  %3573 = vmatprep.subr.mxu0 %v3539_v58 }
 0xfaa   : > { %v3449_v10 = vmul.f32 %v3448_v18, %v5608_v38  ;;  %v3450_v15 = vmul.f32 %v3445_v39, %v5609_v53  ;;  %3574 = vmatpush1.msra.mxu0 %v3538_v49  ;;  %v3510_v53 = vrot.slane %v3438_v30, 4 }
 0xfab   : > { %3575 = vmatprep.subr.mxu0 %v3537_v7 }
 0xfac   : > { %v3422_v56 = vpop.permute.xlu0 %3421  ;;  %v3418_v5 = vpop.permute.xlu1 %3417  ;;  %3576 = vmatpush1.msra.mxu0 %v3536_v11  ;;  %v3535_v17 = vsel %vm896_vm1, %v3450_v15, %v3517_v35  ;;  %v3534_v31 = vsel %vm896_vm1, %v3449_v10, %v3516_v8 }
 0xfad   : > { %v3423_v19 = vsel %vm5622_vm5, %v3422_v56, %v3418_v5  ;;  %v3426_v38 = vsel %vm5624_vm6, %v3418_v5, %v3422_v56  ;;  %3577 = vmatprep.subr.mxu0 %v3535_v17 }
 0xfae   : > { %v3427_v2 = vmul.f32 %v3426_v38, %v5612_v43  ;;  %v3428_v29 = vmul.f32 %v3423_v19, %v5613_v54  ;;  %3578 = vmatpush1.msra.mxu0 %v3534_v31 }
 0xfb0   : > { %v3533_v20 = vsel %vm896_vm1, %v3428_v29, %v3511_v4  ;;  %v3532_v42 = vsel %vm896_vm1, %v3427_v2, %v3510_v53 }
 0xfb1   : > { %3579 = vmatprep.subr.mxu0 %v3533_v20 }
 0xfb2   : > { %3580 = vmatpush1.msra.mxu0 %v3532_v42 }
 0xfb3   : > { %3801 = vmatmul.mubr.msk.f32.vlgmr.msra.gmra.mxu0 %vm905_vm9, %v3415_v62 }
0x1073   : > { %v3615_v45 = vpop.f32.mrf.mxu0 }
0x1075   : > { %v3617_v43 = vpop.f32.mrf.mxu0 }
0x1076   : > { %v3622_v54 = vcombine.low %v3615_v45, %v3617_v43 }
0x1078   : > { %3624 = vst [vmem:[%s683_s8] sm:$0x77] %v3622_v54 }
0x1079 PF: > { %s5628_s1 = sld [smem:[#allocation2_spill]] }
0x107f   : > { %s32_s3 = sadd.s32 1, %s5628_s1  }
0x1080   : > { %p29_p4 = scmp.ge.s32.totalorder %s32_s3, 4  }
0x1082   :  { %31 = sbr.rel (!%p29_p4) target bundleno = 18 (0x12), region = 144 }

</bundles_post_ra>
